<compile_context>
chip_gen: v7x
topology: tpu7x:2x2x1
jax: 0.10.0
libtpu: 0.0.40
codegen_flags: <defaults>
</compile_context>

<pallas_src>
import functools

import jax
import jax.numpy as jnp
import numpy as np
from jax.experimental import pallas as pl
from jax.experimental.pallas import tpu as pltpu

EPS = 1e-5
LANE = 128                      # pad final logits to this lane width (dense store)
C1, C2, C3 = 16, 32, 64         # conv output channels
FC_DIMS = (256, 128, 64, 32)    # hidden fc widths (fc5 -> num_classes)


# ------------------------------ Pallas kernel ------------------------------ #

def _audio_cnn_kernel(
    x_ref,
    c1w0_ref, c1w1_ref, c1s_ref, c1t_ref,
    c2w0_ref, c2w1_ref, c2s_ref, c2t_ref,
    c3w0_ref, c3w1_ref, c3s_ref, c3t_ref,
    f1w_ref, f1s_ref, f1t_ref,
    f2w_ref, f2s_ref, f2t_ref,
    f3w_ref, f3s_ref, f3t_ref,
    f4w_ref, f4s_ref, f4t_ref,
    f5w_ref, f5b_ref,
    o_ref,
    pad1_ref, pad2_ref, flat_ref,
    *, B, T0,
):
    f32, bf16 = jnp.float32, jnp.bfloat16
    T1, T2, T3 = T0 + 1, T0 + 2, T0 + 3

    # Zero the padded activation slabs (their halo rows must be zero).
    pad1_ref[...] = jnp.zeros_like(pad1_ref)
    pad2_ref[...] = jnp.zeros_like(pad2_ref)

    # ---- Conv1 (Cin = 1): VPU broadcast FMA + BN affine + ReLU ----
    w10, w11 = c1w0_ref[...], c1w1_ref[...]            # (1, C1) f32
    s1, t1 = c1s_ref[...], c1t_ref[...]
    for b in range(B):
        r = b * (T0 + 2)
        x0 = x_ref[pl.ds(r, T1), :]                    # (T1, 1)
        x1 = x_ref[pl.ds(r + 1, T1), :]
        y = x0 * w10 + x1 * w11                        # (T1, C1)
        y = jnp.maximum(y * s1 + t1, 0.0)
        pad1_ref[pl.ds(b * (T1 + 2) + 1, T1), :] = y

    # ---- Conv2: two shifted-slice matmuls on the MXU ----
    w20, w21 = c2w0_ref[...], c2w1_ref[...]            # (C1, C2) bf16
    s2, t2 = c2s_ref[...], c2t_ref[...]
    for b in range(B):
        r = b * (T1 + 2)
        x0 = pad1_ref[pl.ds(r, T2), :].astype(bf16)
        x1 = pad1_ref[pl.ds(r + 1, T2), :].astype(bf16)
        acc = jnp.dot(x0, w20, preferred_element_type=f32)
        acc = acc + jnp.dot(x1, w21, preferred_element_type=f32)
        y = jnp.maximum(acc * s2 + t2, 0.0)            # (T2, C2) f32
        pad2_ref[pl.ds(b * (T2 + 2) + 1, T2), :] = y

    # ---- Conv3 + flatten into (B, T3*C3) rows (lane index = t*C3 + c) ----
    w30, w31 = c3w0_ref[...], c3w1_ref[...]            # (C2, C3) bf16
    s3, t3 = c3s_ref[...], c3t_ref[...]
    for b in range(B):
        r = b * (T2 + 2)
        x0 = pad2_ref[pl.ds(r, T3), :].astype(bf16)
        x1 = pad2_ref[pl.ds(r + 1, T3), :].astype(bf16)
        acc = jnp.dot(x0, w30, preferred_element_type=f32)
        acc = acc + jnp.dot(x1, w31, preferred_element_type=f32)
        y = jnp.maximum(acc * s3 + t3, 0.0)            # (T3, C3) f32
        for t in range(T3):                            # layout relocation in VMEM
            flat_ref[pl.ds(b, 1), pl.ds(t * C3, C3)] = y[t:t + 1, :]

    # ---- Fully-connected stack (weights pre-transposed, BN folded) ----
    h = flat_ref[...]                                  # (B, T3*C3) f32
    h = jnp.dot(h.astype(bf16), f1w_ref[...], preferred_element_type=f32)
    h = jnp.maximum(h * f1s_ref[...] + f1t_ref[...], 0.0)
    h = jnp.dot(h.astype(bf16), f2w_ref[...], preferred_element_type=f32)
    h = jnp.maximum(h * f2s_ref[...] + f2t_ref[...], 0.0)
    h = jnp.dot(h.astype(bf16), f3w_ref[...], preferred_element_type=f32)
    h = jnp.maximum(h * f3s_ref[...] + f3t_ref[...], 0.0)
    h = jnp.dot(h.astype(bf16), f4w_ref[...], preferred_element_type=f32)
    h = jnp.maximum(h * f4s_ref[...] + f4t_ref[...], 0.0)
    out = jnp.dot(h.astype(bf16), f5w_ref[...], preferred_element_type=f32)
    o_ref[...] = (out + f5b_ref[...]).astype(o_ref.dtype)


# ------------------------- one-time parameter prep ------------------------- #

def prepare_params(params, seq_len):
    """Fold BN running stats, pre-transpose / permute / bf16-cast weights.

    Runs ONCE, outside the jitted forward (no per-call transposes or rsqrt).
    """
    f32, bf16 = jnp.float32, jnp.bfloat16
    T3 = seq_len + 3

    def fold(p):
        scale = p["gamma"] / jnp.sqrt(p["var"] + EPS)
        shift = (p["b"] - p["mean"]) * scale + p["beta"]
        return scale, shift

    args = []

    # conv1 (Cin == 1): per-tap row vectors for the VPU FMA, kept in f32.
    p = params["convs"][0]
    s, t = fold(p)
    args += [p["w"][:, 0, 0].reshape(1, C1).astype(f32),
             p["w"][:, 0, 1].reshape(1, C1).astype(f32),
             s.reshape(1, C1).astype(f32), t.reshape(1, C1).astype(f32)]

    # conv2 / conv3: per-tap (Cin, Cout) matrices, bf16 for the MXU.
    for p, cout in zip(params["convs"][1:], (C2, C3)):
        s, t = fold(p)
        args += [jnp.transpose(p["w"][:, :, 0]).astype(bf16),
                 jnp.transpose(p["w"][:, :, 1]).astype(bf16),
                 s.reshape(1, cout).astype(f32), t.reshape(1, cout).astype(f32)]

    fcs = params["fcs"]

    # fc1: permute columns once so they match the kernel's (t, c) flatten
    # order (PyTorch flattens (B, C, T) as c*T + t; the kernel uses t*C + c).
    p = fcs[0]
    s, t = fold(p)
    w = p["w"].reshape(FC_DIMS[0], C3, T3)                 # [o, c, t]
    w = jnp.transpose(w, (2, 1, 0)).reshape(T3 * C3, FC_DIMS[0])
    args += [w.astype(bf16),
             s.reshape(1, FC_DIMS[0]).astype(f32),
             t.reshape(1, FC_DIMS[0]).astype(f32)]

    # fc2..fc4: plain transpose + bf16.
    for p, fout in zip(fcs[1:4], FC_DIMS[1:]):
        s, t = fold(p)
        args += [jnp.transpose(p["w"]).astype(bf16),
                 s.reshape(1, fout).astype(f32), t.reshape(1, fout).astype(f32)]

    # fc5: no BN; zero-pad the output lanes to LANE for a dense final store.
    p = fcs[4]
    nc = p["w"].shape[0]
    ncp = ((nc + LANE - 1) // LANE) * LANE
    wt = jnp.transpose(p["w"])                             # (32, nc)
    args += [jnp.pad(wt, ((0, 0), (0, ncp - nc))).astype(bf16),
             jnp.pad(p["b"], (0, ncp - nc)).reshape(1, ncp).astype(f32)]

    return tuple(args)


# --------------------------------- forward --------------------------------- #

def audio_cnn_forward(prepped, x, *, num_classes):
    """Forward pass of AudioCNN. x: (B, 1, T) NCW like PyTorch."""
    B, _, T0 = x.shape
    T3 = T0 + 3
    ncp = ((num_classes + LANE - 1) // LANE) * LANE

    # Single tiny input prep: per-batch zero-pad of the time axis, as a
    # (B*(T0+2), 1) column slab the kernel slices for both conv taps.
    xp = jnp.pad(x[:, 0, :], ((0, 0), (1, 1))).reshape(B * (T0 + 2), 1)

    out = pl.pallas_call(
        functools.partial(_audio_cnn_kernel, B=B, T0=T0),
        out_shape=jax.ShapeDtypeStruct((B, ncp), jnp.float32),
        scratch_shapes=[
            pltpu.VMEM((B * (T0 + 3), C1), jnp.float32),   # padded conv1 output
            pltpu.VMEM((B * (T0 + 4), C2), jnp.float32),   # padded conv2 output
            pltpu.VMEM((B, T3 * C3), jnp.float32),         # flattened conv3 output
        ],
    )(xp, *prepped)
    return out[:, :num_classes]


# ----------------------- deterministic parameter init ---------------------- #

def init_params(key, num_classes, seq_len):
    keys = iter(jax.random.split(key, 64))

    def nk():
        return next(keys)

    def bn(c):
        return dict(
            gamma=jax.random.uniform(nk(), (c,), jnp.float32, 0.8, 1.2),
            beta=jax.random.normal(nk(), (c,), jnp.float32) * 0.1,
            mean=jax.random.normal(nk(), (c,), jnp.float32) * 0.1,
            var=jax.random.uniform(nk(), (c,), jnp.float32, 0.5, 1.5),
        )

    convs = []
    for cin, cout in [(1, C1), (C1, C2), (C2, C3)]:
        p = dict(
            w=jax.random.normal(nk(), (cout, cin, 2), jnp.float32)
            * (1.0 / np.sqrt(cin * 2)),
            b=jax.random.normal(nk(), (cout,), jnp.float32) * 0.05,
        )
        p.update(bn(cout))
        convs.append(p)

    # Mirrors self.num_flat_features = 64 * (seq_len + 3) (three k=2/pad=1 convs).
    num_flat = C3 * (seq_len + 3)
    dims = [num_flat, *FC_DIMS, num_classes]
    fcs = []
    for i in range(5):
        fin, fout = dims[i], dims[i + 1]
        p = dict(
            w=jax.random.normal(nk(), (fout, fin), jnp.float32)
            * (1.0 / np.sqrt(fin)),
            b=jax.random.normal(nk(), (fout,), jnp.float32) * 0.05,
        )
        if i < 4:
            p.update(bn(fout))
        fcs.append(p)

    return dict(convs=convs, fcs=fcs)


# ------------------------------ pure-JAX reference -------------------------- #

def reference_forward(params, x):
    h = x
    for p in params["convs"]:
        y = jax.lax.conv_general_dilated(
            h, p["w"], window_strides=(1,), padding=((1, 1),),
            dimension_numbers=("NCH", "OIH", "NCH"))
        y = y + p["b"][None, :, None]
        scale = p["gamma"] / jnp.sqrt(p["var"] + EPS)
        y = (y - p["mean"][None, :, None]) * scale[None, :, None] \
            + p["beta"][None, :, None]
        h = jnp.maximum(y, 0.0)
    h = h.reshape(h.shape[0], -1)
    fcs = params["fcs"]
    for i, p in enumerate(fcs):
        y = h @ p["w"].T + p["b"]
        if i < len(fcs) - 1:
            scale = p["gamma"] / jnp.sqrt(p["var"] + EPS)
            y = (y - p["mean"]) * scale + p["beta"]
            y = jnp.maximum(y, 0.0)
        h = y
    return h


# ----------------------------------- main ----------------------------------- #

if __name__ == "__main__":
    B, SEQ_LEN, NUM_CLASSES = 4, 13, 10   # flat features = 64*(13+3) = 1024

    key = jax.random.PRNGKey(0)
    pkey, xkey = jax.random.split(key)
    params = init_params(pkey, NUM_CLASSES, SEQ_LEN)
    x = jax.random.normal(xkey, (B, 1, SEQ_LEN), jnp.float32)

    # One-time prep (BN fold, weight transposes/permutation, bf16 casts).
    prepped = prepare_params(params, SEQ_LEN)

    fwd = jax.jit(functools.partial(audio_cnn_forward, num_classes=NUM_CLASSES))
    out = jax.block_until_ready(fwd(prepped, x))

    assert out.shape == (B, NUM_CLASSES), out.shape
    assert bool(jnp.all(jnp.isfinite(out)))

    ref = reference_forward(params, x)
    # Tolerance covers bf16 MXU operands with f32 accumulation.
    np.testing.assert_allclose(np.asarray(out), np.asarray(ref),
                               rtol=2e-2, atol=2e-2)

    print("KERNEL_OK")
</pallas_src>

<mosaic_0001>
module attributes {stable_mosaic.version = 11 : i64} {
  func.func @_audio_cnn_kernel(%arg0: memref<60x1xf32, #tpu.memory_space<vmem>>, %arg1: memref<1x16xf32, #tpu.memory_space<vmem>>, %arg2: memref<1x16xf32, #tpu.memory_space<vmem>>, %arg3: memref<1x16xf32, #tpu.memory_space<vmem>>, %arg4: memref<1x16xf32, #tpu.memory_space<vmem>>, %arg5: memref<16x32xbf16, #tpu.memory_space<vmem>>, %arg6: memref<16x32xbf16, #tpu.memory_space<vmem>>, %arg7: memref<1x32xf32, #tpu.memory_space<vmem>>, %arg8: memref<1x32xf32, #tpu.memory_space<vmem>>, %arg9: memref<32x64xbf16, #tpu.memory_space<vmem>>, %arg10: memref<32x64xbf16, #tpu.memory_space<vmem>>, %arg11: memref<1x64xf32, #tpu.memory_space<vmem>>, %arg12: memref<1x64xf32, #tpu.memory_space<vmem>>, %arg13: memref<1024x256xbf16, #tpu.memory_space<vmem>>, %arg14: memref<1x256xf32, #tpu.memory_space<vmem>>, %arg15: memref<1x256xf32, #tpu.memory_space<vmem>>, %arg16: memref<256x128xbf16, #tpu.memory_space<vmem>>, %arg17: memref<1x128xf32, #tpu.memory_space<vmem>>, %arg18: memref<1x128xf32, #tpu.memory_space<vmem>>, %arg19: memref<128x64xbf16, #tpu.memory_space<vmem>>, %arg20: memref<1x64xf32, #tpu.memory_space<vmem>>, %arg21: memref<1x64xf32, #tpu.memory_space<vmem>>, %arg22: memref<64x32xbf16, #tpu.memory_space<vmem>>, %arg23: memref<1x32xf32, #tpu.memory_space<vmem>>, %arg24: memref<1x32xf32, #tpu.memory_space<vmem>>, %arg25: memref<32x128xbf16, #tpu.memory_space<vmem>>, %arg26: memref<1x128xf32, #tpu.memory_space<vmem>>, %arg27: memref<4x128xf32, #tpu.memory_space<vmem>>, %arg28: memref<64x16xf32, #tpu.memory_space<vmem>>, %arg29: memref<68x32xf32, #tpu.memory_space<vmem>>, %arg30: memref<4x1024xf32, #tpu.memory_space<vmem>>) attributes {dimension_semantics = [], scalar_prefetch = 0 : i64, scratch_operands = 3 : i64, tpu.core_type = #tpu.core_type<tc>} {
    %cst = arith.constant 0.000000e+00 : f32
    %0 = vector.broadcast %cst : f32 to vector<64x16xf32>
    %c0 = arith.constant 0 : index
    %c0_0 = arith.constant 0 : index
    %1 = vector.load %arg28[%c0, %c0_0] : memref<64x16xf32, #tpu.memory_space<vmem>>, vector<64x16xf32>
    tpu.vector_store %arg28[%c0, %c0_0], %0 {strides = array<i32>} : memref<64x16xf32, #tpu.memory_space<vmem>>, vector<64x16xf32>,
    %cst_1 = arith.constant 0.000000e+00 : f32
    %2 = vector.broadcast %cst_1 : f32 to vector<68x32xf32>
    %c0_2 = arith.constant 0 : index
    %c0_3 = arith.constant 0 : index
    %3 = vector.load %arg29[%c0_2, %c0_3] : memref<68x32xf32, #tpu.memory_space<vmem>>, vector<68x32xf32>
    tpu.vector_store %arg29[%c0_2, %c0_3], %2 {strides = array<i32>} : memref<68x32xf32, #tpu.memory_space<vmem>>, vector<68x32xf32>,
    %c0_4 = arith.constant 0 : index
    %c0_5 = arith.constant 0 : index
    %4 = vector.load %arg1[%c0_4, %c0_5] : memref<1x16xf32, #tpu.memory_space<vmem>>, vector<1x16xf32>
    %c0_6 = arith.constant 0 : index
    %c0_7 = arith.constant 0 : index
    %5 = vector.load %arg2[%c0_6, %c0_7] : memref<1x16xf32, #tpu.memory_space<vmem>>, vector<1x16xf32>
    %c0_8 = arith.constant 0 : index
    %c0_9 = arith.constant 0 : index
    %6 = vector.load %arg3[%c0_8, %c0_9] : memref<1x16xf32, #tpu.memory_space<vmem>>, vector<1x16xf32>
    %c0_10 = arith.constant 0 : index
    %c0_11 = arith.constant 0 : index
    %7 = vector.load %arg4[%c0_10, %c0_11] : memref<1x16xf32, #tpu.memory_space<vmem>>, vector<1x16xf32>
    %c0_12 = arith.constant 0 : index
    %c0_13 = arith.constant 0 : index
    %8 = vector.load %arg0[%c0_12, %c0_13] : memref<60x1xf32, #tpu.memory_space<vmem>>, vector<14x1xf32>
    %c1 = arith.constant 1 : index
    %c0_14 = arith.constant 0 : index
    %9 = vector.load %arg0[%c1, %c0_14] : memref<60x1xf32, #tpu.memory_space<vmem>>, vector<14x1xf32>
    %10 = vector.broadcast %8 : vector<14x1xf32> to vector<14x16xf32>
    %11 = vector.broadcast %4 : vector<1x16xf32> to vector<14x16xf32>
    %12 = arith.mulf %10, %11 : vector<14x16xf32>
    %13 = vector.broadcast %9 : vector<14x1xf32> to vector<14x16xf32>
    %14 = vector.broadcast %5 : vector<1x16xf32> to vector<14x16xf32>
    %15 = arith.mulf %13, %14 : vector<14x16xf32>
    %16 = arith.addf %12, %15 : vector<14x16xf32>
    %17 = vector.broadcast %6 : vector<1x16xf32> to vector<14x16xf32>
    %18 = arith.mulf %16, %17 : vector<14x16xf32>
    %19 = vector.broadcast %7 : vector<1x16xf32> to vector<14x16xf32>
    %20 = arith.addf %18, %19 : vector<14x16xf32>
    %cst_15 = arith.constant 0.000000e+00 : f32
    %21 = vector.broadcast %cst_15 : f32 to vector<14x16xf32>
    %22 = arith.maximumf %20, %21 : vector<14x16xf32>
    %c1_16 = arith.constant 1 : index
    %c0_17 = arith.constant 0 : index
    %23 = vector.load %arg28[%c1_16, %c0_17] : memref<64x16xf32, #tpu.memory_space<vmem>>, vector<14x16xf32>
    tpu.vector_store %arg28[%c1_16, %c0_17], %22 {strides = array<i32>} : memref<64x16xf32, #tpu.memory_space<vmem>>, vector<14x16xf32>,
    %c15 = arith.constant 15 : index
    %c0_18 = arith.constant 0 : index
    %24 = vector.load %arg0[%c15, %c0_18] : memref<60x1xf32, #tpu.memory_space<vmem>>, vector<14x1xf32>
    %c16 = arith.constant 16 : index
    %c0_19 = arith.constant 0 : index
    %25 = vector.load %arg0[%c16, %c0_19] : memref<60x1xf32, #tpu.memory_space<vmem>>, vector<14x1xf32>
    %26 = vector.broadcast %24 : vector<14x1xf32> to vector<14x16xf32>
    %27 = vector.broadcast %4 : vector<1x16xf32> to vector<14x16xf32>
    %28 = arith.mulf %26, %27 : vector<14x16xf32>
    %29 = vector.broadcast %25 : vector<14x1xf32> to vector<14x16xf32>
    %30 = vector.broadcast %5 : vector<1x16xf32> to vector<14x16xf32>
    %31 = arith.mulf %29, %30 : vector<14x16xf32>
    %32 = arith.addf %28, %31 : vector<14x16xf32>
    %33 = vector.broadcast %6 : vector<1x16xf32> to vector<14x16xf32>
    %34 = arith.mulf %32, %33 : vector<14x16xf32>
    %35 = vector.broadcast %7 : vector<1x16xf32> to vector<14x16xf32>
    %36 = arith.addf %34, %35 : vector<14x16xf32>
    %cst_20 = arith.constant 0.000000e+00 : f32
    %37 = vector.broadcast %cst_20 : f32 to vector<14x16xf32>
    %38 = arith.maximumf %36, %37 : vector<14x16xf32>
    %c17 = arith.constant 17 : index
    %c0_21 = arith.constant 0 : index
    %39 = vector.load %arg28[%c17, %c0_21] : memref<64x16xf32, #tpu.memory_space<vmem>>, vector<14x16xf32>
    tpu.vector_store %arg28[%c17, %c0_21], %38 {strides = array<i32>} : memref<64x16xf32, #tpu.memory_space<vmem>>, vector<14x16xf32>,
    %c30 = arith.constant 30 : index
    %c0_22 = arith.constant 0 : index
    %40 = vector.load %arg0[%c30, %c0_22] : memref<60x1xf32, #tpu.memory_space<vmem>>, vector<14x1xf32>
    %c31 = arith.constant 31 : index
    %c0_23 = arith.constant 0 : index
    %41 = vector.load %arg0[%c31, %c0_23] : memref<60x1xf32, #tpu.memory_space<vmem>>, vector<14x1xf32>
    %42 = vector.broadcast %40 : vector<14x1xf32> to vector<14x16xf32>
    %43 = vector.broadcast %4 : vector<1x16xf32> to vector<14x16xf32>
    %44 = arith.mulf %42, %43 : vector<14x16xf32>
    %45 = vector.broadcast %41 : vector<14x1xf32> to vector<14x16xf32>
    %46 = vector.broadcast %5 : vector<1x16xf32> to vector<14x16xf32>
    %47 = arith.mulf %45, %46 : vector<14x16xf32>
    %48 = arith.addf %44, %47 : vector<14x16xf32>
    %49 = vector.broadcast %6 : vector<1x16xf32> to vector<14x16xf32>
    %50 = arith.mulf %48, %49 : vector<14x16xf32>
    %51 = vector.broadcast %7 : vector<1x16xf32> to vector<14x16xf32>
    %52 = arith.addf %50, %51 : vector<14x16xf32>
    %cst_24 = arith.constant 0.000000e+00 : f32
    %53 = vector.broadcast %cst_24 : f32 to vector<14x16xf32>
    %54 = arith.maximumf %52, %53 : vector<14x16xf32>
    %c33 = arith.constant 33 : index
    %c0_25 = arith.constant 0 : index
    %55 = vector.load %arg28[%c33, %c0_25] : memref<64x16xf32, #tpu.memory_space<vmem>>, vector<14x16xf32>
    tpu.vector_store %arg28[%c33, %c0_25], %54 {strides = array<i32>} : memref<64x16xf32, #tpu.memory_space<vmem>>, vector<14x16xf32>,
    %c45 = arith.constant 45 : index
    %c0_26 = arith.constant 0 : index
    %56 = vector.load %arg0[%c45, %c0_26] : memref<60x1xf32, #tpu.memory_space<vmem>>, vector<14x1xf32>
    %c46 = arith.constant 46 : index
    %c0_27 = arith.constant 0 : index
    %57 = vector.load %arg0[%c46, %c0_27] : memref<60x1xf32, #tpu.memory_space<vmem>>, vector<14x1xf32>
    %58 = vector.broadcast %56 : vector<14x1xf32> to vector<14x16xf32>
    %59 = vector.broadcast %4 : vector<1x16xf32> to vector<14x16xf32>
    %60 = arith.mulf %58, %59 : vector<14x16xf32>
    %61 = vector.broadcast %57 : vector<14x1xf32> to vector<14x16xf32>
    %62 = vector.broadcast %5 : vector<1x16xf32> to vector<14x16xf32>
    %63 = arith.mulf %61, %62 : vector<14x16xf32>
    %64 = arith.addf %60, %63 : vector<14x16xf32>
    %65 = vector.broadcast %6 : vector<1x16xf32> to vector<14x16xf32>
    %66 = arith.mulf %64, %65 : vector<14x16xf32>
    %67 = vector.broadcast %7 : vector<1x16xf32> to vector<14x16xf32>
    %68 = arith.addf %66, %67 : vector<14x16xf32>
    %cst_28 = arith.constant 0.000000e+00 : f32
    %69 = vector.broadcast %cst_28 : f32 to vector<14x16xf32>
    %70 = arith.maximumf %68, %69 : vector<14x16xf32>
    %c49 = arith.constant 49 : index
    %c0_29 = arith.constant 0 : index
    %71 = vector.load %arg28[%c49, %c0_29] : memref<64x16xf32, #tpu.memory_space<vmem>>, vector<14x16xf32>
    tpu.vector_store %arg28[%c49, %c0_29], %70 {strides = array<i32>} : memref<64x16xf32, #tpu.memory_space<vmem>>, vector<14x16xf32>,
    %c0_30 = arith.constant 0 : index
    %c0_31 = arith.constant 0 : index
    %72 = vector.load %arg5[%c0_30, %c0_31] : memref<16x32xbf16, #tpu.memory_space<vmem>>, vector<16x32xbf16>
    %c0_32 = arith.constant 0 : index
    %c0_33 = arith.constant 0 : index
    %73 = vector.load %arg6[%c0_32, %c0_33] : memref<16x32xbf16, #tpu.memory_space<vmem>>, vector<16x32xbf16>
    %c0_34 = arith.constant 0 : index
    %c0_35 = arith.constant 0 : index
    %74 = vector.load %arg7[%c0_34, %c0_35] : memref<1x32xf32, #tpu.memory_space<vmem>>, vector<1x32xf32>
    %c0_36 = arith.constant 0 : index
    %c0_37 = arith.constant 0 : index
    %75 = vector.load %arg8[%c0_36, %c0_37] : memref<1x32xf32, #tpu.memory_space<vmem>>, vector<1x32xf32>
    %c0_38 = arith.constant 0 : index
    %c0_39 = arith.constant 0 : index
    %76 = vector.load %arg28[%c0_38, %c0_39] : memref<64x16xf32, #tpu.memory_space<vmem>>, vector<15x16xf32>
    %77 = arith.truncf %76 : vector<15x16xf32> to vector<15x16xbf16>
    %c1_40 = arith.constant 1 : index
    %c0_41 = arith.constant 0 : index
    %78 = vector.load %arg28[%c1_40, %c0_41] : memref<64x16xf32, #tpu.memory_space<vmem>>, vector<15x16xf32>
    %79 = arith.truncf %78 : vector<15x16xf32> to vector<15x16xbf16>
    %cst_42 = arith.constant dense<0.000000e+00> : vector<15x32xf32>
    %80 = tpu.matmul %77, %72, %cst_42 {dimension_numbers = #tpu.dot_dimension_numbers<[1], [0], [0], [1], [0, 0, 1, 1], [], []>} : vector<15x16xbf16>, vector<16x32xbf16>, vector<15x32xf32> -> vector<15x32xf32>
    %cst_43 = arith.constant dense<0.000000e+00> : vector<15x32xf32>
    %81 = tpu.matmul %79, %73, %cst_43 {dimension_numbers = #tpu.dot_dimension_numbers<[1], [0], [0], [1], [0, 0, 1, 1], [], []>} : vector<15x16xbf16>, vector<16x32xbf16>, vector<15x32xf32> -> vector<15x32xf32>
    %82 = arith.addf %80, %81 : vector<15x32xf32>
    %83 = vector.broadcast %74 : vector<1x32xf32> to vector<15x32xf32>
    %84 = arith.mulf %82, %83 : vector<15x32xf32>
    %85 = vector.broadcast %75 : vector<1x32xf32> to vector<15x32xf32>
    %86 = arith.addf %84, %85 : vector<15x32xf32>
    %cst_44 = arith.constant 0.000000e+00 : f32
    %87 = vector.broadcast %cst_44 : f32 to vector<15x32xf32>
    %88 = arith.maximumf %86, %87 : vector<15x32xf32>
    %c1_45 = arith.constant 1 : index
    %c0_46 = arith.constant 0 : index
    %89 = vector.load %arg29[%c1_45, %c0_46] : memref<68x32xf32, #tpu.memory_space<vmem>>, vector<15x32xf32>
    tpu.vector_store %arg29[%c1_45, %c0_46], %88 {strides = array<i32>} : memref<68x32xf32, #tpu.memory_space<vmem>>, vector<15x32xf32>,
    %c16_47 = arith.constant 16 : index
    %c0_48 = arith.constant 0 : index
    %90 = vector.load %arg28[%c16_47, %c0_48] : memref<64x16xf32, #tpu.memory_space<vmem>>, vector<15x16xf32>
    %91 = arith.truncf %90 : vector<15x16xf32> to vector<15x16xbf16>
    %c17_49 = arith.constant 17 : index
    %c0_50 = arith.constant 0 : index
    %92 = vector.load %arg28[%c17_49, %c0_50] : memref<64x16xf32, #tpu.memory_space<vmem>>, vector<15x16xf32>
    %93 = arith.truncf %92 : vector<15x16xf32> to vector<15x16xbf16>
    %cst_51 = arith.constant dense<0.000000e+00> : vector<15x32xf32>
    %94 = tpu.matmul %91, %72, %cst_51 {dimension_numbers = #tpu.dot_dimension_numbers<[1], [0], [0], [1], [0, 0, 1, 1], [], []>} : vector<15x16xbf16>, vector<16x32xbf16>, vector<15x32xf32> -> vector<15x32xf32>
    %cst_52 = arith.constant dense<0.000000e+00> : vector<15x32xf32>
    %95 = tpu.matmul %93, %73, %cst_52 {dimension_numbers = #tpu.dot_dimension_numbers<[1], [0], [0], [1], [0, 0, 1, 1], [], []>} : vector<15x16xbf16>, vector<16x32xbf16>, vector<15x32xf32> -> vector<15x32xf32>
    %96 = arith.addf %94, %95 : vector<15x32xf32>
    %97 = vector.broadcast %74 : vector<1x32xf32> to vector<15x32xf32>
    %98 = arith.mulf %96, %97 : vector<15x32xf32>
    %99 = vector.broadcast %75 : vector<1x32xf32> to vector<15x32xf32>
    %100 = arith.addf %98, %99 : vector<15x32xf32>
    %cst_53 = arith.constant 0.000000e+00 : f32
    %101 = vector.broadcast %cst_53 : f32 to vector<15x32xf32>
    %102 = arith.maximumf %100, %101 : vector<15x32xf32>
    %c18 = arith.constant 18 : index
    %c0_54 = arith.constant 0 : index
    %103 = vector.load %arg29[%c18, %c0_54] : memref<68x32xf32, #tpu.memory_space<vmem>>, vector<15x32xf32>
    tpu.vector_store %arg29[%c18, %c0_54], %102 {strides = array<i32>} : memref<68x32xf32, #tpu.memory_space<vmem>>, vector<15x32xf32>,
    %c32 = arith.constant 32 : index
    %c0_55 = arith.constant 0 : index
    %104 = vector.load %arg28[%c32, %c0_55] : memref<64x16xf32, #tpu.memory_space<vmem>>, vector<15x16xf32>
    %105 = arith.truncf %104 : vector<15x16xf32> to vector<15x16xbf16>
    %c33_56 = arith.constant 33 : index
    %c0_57 = arith.constant 0 : index
    %106 = vector.load %arg28[%c33_56, %c0_57] : memref<64x16xf32, #tpu.memory_space<vmem>>, vector<15x16xf32>
    %107 = arith.truncf %106 : vector<15x16xf32> to vector<15x16xbf16>
    %cst_58 = arith.constant dense<0.000000e+00> : vector<15x32xf32>
    %108 = tpu.matmul %105, %72, %cst_58 {dimension_numbers = #tpu.dot_dimension_numbers<[1], [0], [0], [1], [0, 0, 1, 1], [], []>} : vector<15x16xbf16>, vector<16x32xbf16>, vector<15x32xf32> -> vector<15x32xf32>
    %cst_59 = arith.constant dense<0.000000e+00> : vector<15x32xf32>
    %109 = tpu.matmul %107, %73, %cst_59 {dimension_numbers = #tpu.dot_dimension_numbers<[1], [0], [0], [1], [0, 0, 1, 1], [], []>} : vector<15x16xbf16>, vector<16x32xbf16>, vector<15x32xf32> -> vector<15x32xf32>
    %110 = arith.addf %108, %109 : vector<15x32xf32>
    %111 = vector.broadcast %74 : vector<1x32xf32> to vector<15x32xf32>
    %112 = arith.mulf %110, %111 : vector<15x32xf32>
    %113 = vector.broadcast %75 : vector<1x32xf32> to vector<15x32xf32>
    %114 = arith.addf %112, %113 : vector<15x32xf32>
    %cst_60 = arith.constant 0.000000e+00 : f32
    %115 = vector.broadcast %cst_60 : f32 to vector<15x32xf32>
    %116 = arith.maximumf %114, %115 : vector<15x32xf32>
    %c35 = arith.constant 35 : index
    %c0_61 = arith.constant 0 : index
    %117 = vector.load %arg29[%c35, %c0_61] : memref<68x32xf32, #tpu.memory_space<vmem>>, vector<15x32xf32>
    tpu.vector_store %arg29[%c35, %c0_61], %116 {strides = array<i32>} : memref<68x32xf32, #tpu.memory_space<vmem>>, vector<15x32xf32>,
    %c48 = arith.constant 48 : index
    %c0_62 = arith.constant 0 : index
    %118 = vector.load %arg28[%c48, %c0_62] : memref<64x16xf32, #tpu.memory_space<vmem>>, vector<15x16xf32>
    %119 = arith.truncf %118 : vector<15x16xf32> to vector<15x16xbf16>
    %c49_63 = arith.constant 49 : index
    %c0_64 = arith.constant 0 : index
    %120 = vector.load %arg28[%c49_63, %c0_64] : memref<64x16xf32, #tpu.memory_space<vmem>>, vector<15x16xf32>
    %121 = arith.truncf %120 : vector<15x16xf32> to vector<15x16xbf16>
    %cst_65 = arith.constant dense<0.000000e+00> : vector<15x32xf32>
    %122 = tpu.matmul %119, %72, %cst_65 {dimension_numbers = #tpu.dot_dimension_numbers<[1], [0], [0], [1], [0, 0, 1, 1], [], []>} : vector<15x16xbf16>, vector<16x32xbf16>, vector<15x32xf32> -> vector<15x32xf32>
    %cst_66 = arith.constant dense<0.000000e+00> : vector<15x32xf32>
    %123 = tpu.matmul %121, %73, %cst_66 {dimension_numbers = #tpu.dot_dimension_numbers<[1], [0], [0], [1], [0, 0, 1, 1], [], []>} : vector<15x16xbf16>, vector<16x32xbf16>, vector<15x32xf32> -> vector<15x32xf32>
    %124 = arith.addf %122, %123 : vector<15x32xf32>
    %125 = vector.broadcast %74 : vector<1x32xf32> to vector<15x32xf32>
    %126 = arith.mulf %124, %125 : vector<15x32xf32>
    %127 = vector.broadcast %75 : vector<1x32xf32> to vector<15x32xf32>
    %128 = arith.addf %126, %127 : vector<15x32xf32>
    %cst_67 = arith.constant 0.000000e+00 : f32
    %129 = vector.broadcast %cst_67 : f32 to vector<15x32xf32>
    %130 = arith.maximumf %128, %129 : vector<15x32xf32>
    %c52 = arith.constant 52 : index
    %c0_68 = arith.constant 0 : index
    %131 = vector.load %arg29[%c52, %c0_68] : memref<68x32xf32, #tpu.memory_space<vmem>>, vector<15x32xf32>
    tpu.vector_store %arg29[%c52, %c0_68], %130 {strides = array<i32>} : memref<68x32xf32, #tpu.memory_space<vmem>>, vector<15x32xf32>,
    %c0_69 = arith.constant 0 : index
    %c0_70 = arith.constant 0 : index
    %132 = vector.load %arg9[%c0_69, %c0_70] : memref<32x64xbf16, #tpu.memory_space<vmem>>, vector<32x64xbf16>
    %c0_71 = arith.constant 0 : index
    %c0_72 = arith.constant 0 : index
    %133 = vector.load %arg10[%c0_71, %c0_72] : memref<32x64xbf16, #tpu.memory_space<vmem>>, vector<32x64xbf16>
    %c0_73 = arith.constant 0 : index
    %c0_74 = arith.constant 0 : index
    %134 = vector.load %arg11[%c0_73, %c0_74] : memref<1x64xf32, #tpu.memory_space<vmem>>, vector<1x64xf32>
    %c0_75 = arith.constant 0 : index
    %c0_76 = arith.constant 0 : index
    %135 = vector.load %arg12[%c0_75, %c0_76] : memref<1x64xf32, #tpu.memory_space<vmem>>, vector<1x64xf32>
    %c0_77 = arith.constant 0 : index
    %c0_78 = arith.constant 0 : index
    %136 = vector.load %arg29[%c0_77, %c0_78] : memref<68x32xf32, #tpu.memory_space<vmem>>, vector<16x32xf32>
    %137 = arith.truncf %136 : vector<16x32xf32> to vector<16x32xbf16>
    %c1_79 = arith.constant 1 : index
    %c0_80 = arith.constant 0 : index
    %138 = vector.load %arg29[%c1_79, %c0_80] : memref<68x32xf32, #tpu.memory_space<vmem>>, vector<16x32xf32>
    %139 = arith.truncf %138 : vector<16x32xf32> to vector<16x32xbf16>
    %cst_81 = arith.constant dense<0.000000e+00> : vector<16x64xf32>
    %140 = tpu.matmul %137, %132, %cst_81 {dimension_numbers = #tpu.dot_dimension_numbers<[1], [0], [0], [1], [0, 0, 1, 1], [], []>} : vector<16x32xbf16>, vector<32x64xbf16>, vector<16x64xf32> -> vector<16x64xf32>
    %cst_82 = arith.constant dense<0.000000e+00> : vector<16x64xf32>
    %141 = tpu.matmul %139, %133, %cst_82 {dimension_numbers = #tpu.dot_dimension_numbers<[1], [0], [0], [1], [0, 0, 1, 1], [], []>} : vector<16x32xbf16>, vector<32x64xbf16>, vector<16x64xf32> -> vector<16x64xf32>
    %142 = arith.addf %140, %141 : vector<16x64xf32>
    %143 = vector.broadcast %134 : vector<1x64xf32> to vector<16x64xf32>
    %144 = arith.mulf %142, %143 : vector<16x64xf32>
    %145 = vector.broadcast %135 : vector<1x64xf32> to vector<16x64xf32>
    %146 = arith.addf %144, %145 : vector<16x64xf32>
    %cst_83 = arith.constant 0.000000e+00 : f32
    %147 = vector.broadcast %cst_83 : f32 to vector<16x64xf32>
    %148 = arith.maximumf %146, %147 : vector<16x64xf32>
    %149 = vector.extract_strided_slice %148 {offsets = [0, 0], sizes = [1, 64], strides = [1, 1]} : vector<16x64xf32> to vector<1x64xf32>
    %c0_84 = arith.constant 0 : index
    %c0_85 = arith.constant 0 : index
    %150 = vector.load %arg30[%c0_84, %c0_85] : memref<4x1024xf32, #tpu.memory_space<vmem>>, vector<1x64xf32>
    tpu.vector_store %arg30[%c0_84, %c0_85], %149 {strides = array<i32>} : memref<4x1024xf32, #tpu.memory_space<vmem>>, vector<1x64xf32>,
    %151 = vector.extract_strided_slice %148 {offsets = [1, 0], sizes = [1, 64], strides = [1, 1]} : vector<16x64xf32> to vector<1x64xf32>
    %c0_86 = arith.constant 0 : index
    %c64 = arith.constant 64 : index
    %152 = vector.load %arg30[%c0_86, %c64] : memref<4x1024xf32, #tpu.memory_space<vmem>>, vector<1x64xf32>
    tpu.vector_store %arg30[%c0_86, %c64], %151 {strides = array<i32>} : memref<4x1024xf32, #tpu.memory_space<vmem>>, vector<1x64xf32>,
    %153 = vector.extract_strided_slice %148 {offsets = [2, 0], sizes = [1, 64], strides = [1, 1]} : vector<16x64xf32> to vector<1x64xf32>
    %c0_87 = arith.constant 0 : index
    %c128 = arith.constant 128 : index
    %154 = vector.load %arg30[%c0_87, %c128] : memref<4x1024xf32, #tpu.memory_space<vmem>>, vector<1x64xf32>
    tpu.vector_store %arg30[%c0_87, %c128], %153 {strides = array<i32>} : memref<4x1024xf32, #tpu.memory_space<vmem>>, vector<1x64xf32>,
    %155 = vector.extract_strided_slice %148 {offsets = [3, 0], sizes = [1, 64], strides = [1, 1]} : vector<16x64xf32> to vector<1x64xf32>
    %c0_88 = arith.constant 0 : index
    %c192 = arith.constant 192 : index
    %156 = vector.load %arg30[%c0_88, %c192] : memref<4x1024xf32, #tpu.memory_space<vmem>>, vector<1x64xf32>
    tpu.vector_store %arg30[%c0_88, %c192], %155 {strides = array<i32>} : memref<4x1024xf32, #tpu.memory_space<vmem>>, vector<1x64xf32>,
    %157 = vector.extract_strided_slice %148 {offsets = [4, 0], sizes = [1, 64], strides = [1, 1]} : vector<16x64xf32> to vector<1x64xf32>
    %c0_89 = arith.constant 0 : index
    %c256 = arith.constant 256 : index
    %158 = vector.load %arg30[%c0_89, %c256] : memref<4x1024xf32, #tpu.memory_space<vmem>>, vector<1x64xf32>
    tpu.vector_store %arg30[%c0_89, %c256], %157 {strides = array<i32>} : memref<4x1024xf32, #tpu.memory_space<vmem>>, vector<1x64xf32>,
    %159 = vector.extract_strided_slice %148 {offsets = [5, 0], sizes = [1, 64], strides = [1, 1]} : vector<16x64xf32> to vector<1x64xf32>
    %c0_90 = arith.constant 0 : index
    %c320 = arith.constant 320 : index
    %160 = vector.load %arg30[%c0_90, %c320] : memref<4x1024xf32, #tpu.memory_space<vmem>>, vector<1x64xf32>
    tpu.vector_store %arg30[%c0_90, %c320], %159 {strides = array<i32>} : memref<4x1024xf32, #tpu.memory_space<vmem>>, vector<1x64xf32>,
    %161 = vector.extract_strided_slice %148 {offsets = [6, 0], sizes = [1, 64], strides = [1, 1]} : vector<16x64xf32> to vector<1x64xf32>
    %c0_91 = arith.constant 0 : index
    %c384 = arith.constant 384 : index
    %162 = vector.load %arg30[%c0_91, %c384] : memref<4x1024xf32, #tpu.memory_space<vmem>>, vector<1x64xf32>
    tpu.vector_store %arg30[%c0_91, %c384], %161 {strides = array<i32>} : memref<4x1024xf32, #tpu.memory_space<vmem>>, vector<1x64xf32>,
    %163 = vector.extract_strided_slice %148 {offsets = [7, 0], sizes = [1, 64], strides = [1, 1]} : vector<16x64xf32> to vector<1x64xf32>
    %c0_92 = arith.constant 0 : index
    %c448 = arith.constant 448 : index
    %164 = vector.load %arg30[%c0_92, %c448] : memref<4x1024xf32, #tpu.memory_space<vmem>>, vector<1x64xf32>
    tpu.vector_store %arg30[%c0_92, %c448], %163 {strides = array<i32>} : memref<4x1024xf32, #tpu.memory_space<vmem>>, vector<1x64xf32>,
    %165 = vector.extract_strided_slice %148 {offsets = [8, 0], sizes = [1, 64], strides = [1, 1]} : vector<16x64xf32> to vector<1x64xf32>
    %c0_93 = arith.constant 0 : index
    %c512 = arith.constant 512 : index
    %166 = vector.load %arg30[%c0_93, %c512] : memref<4x1024xf32, #tpu.memory_space<vmem>>, vector<1x64xf32>
    tpu.vector_store %arg30[%c0_93, %c512], %165 {strides = array<i32>} : memref<4x1024xf32, #tpu.memory_space<vmem>>, vector<1x64xf32>,
    %167 = vector.extract_strided_slice %148 {offsets = [9, 0], sizes = [1, 64], strides = [1, 1]} : vector<16x64xf32> to vector<1x64xf32>
    %c0_94 = arith.constant 0 : index
    %c576 = arith.constant 576 : index
    %168 = vector.load %arg30[%c0_94, %c576] : memref<4x1024xf32, #tpu.memory_space<vmem>>, vector<1x64xf32>
    tpu.vector_store %arg30[%c0_94, %c576], %167 {strides = array<i32>} : memref<4x1024xf32, #tpu.memory_space<vmem>>, vector<1x64xf32>,
    %169 = vector.extract_strided_slice %148 {offsets = [10, 0], sizes = [1, 64], strides = [1, 1]} : vector<16x64xf32> to vector<1x64xf32>
    %c0_95 = arith.constant 0 : index
    %c640 = arith.constant 640 : index
    %170 = vector.load %arg30[%c0_95, %c640] : memref<4x1024xf32, #tpu.memory_space<vmem>>, vector<1x64xf32>
    tpu.vector_store %arg30[%c0_95, %c640], %169 {strides = array<i32>} : memref<4x1024xf32, #tpu.memory_space<vmem>>, vector<1x64xf32>,
    %171 = vector.extract_strided_slice %148 {offsets = [11, 0], sizes = [1, 64], strides = [1, 1]} : vector<16x64xf32> to vector<1x64xf32>
    %c0_96 = arith.constant 0 : index
    %c704 = arith.constant 704 : index
    %172 = vector.load %arg30[%c0_96, %c704] : memref<4x1024xf32, #tpu.memory_space<vmem>>, vector<1x64xf32>
    tpu.vector_store %arg30[%c0_96, %c704], %171 {strides = array<i32>} : memref<4x1024xf32, #tpu.memory_space<vmem>>, vector<1x64xf32>,
    %173 = vector.extract_strided_slice %148 {offsets = [12, 0], sizes = [1, 64], strides = [1, 1]} : vector<16x64xf32> to vector<1x64xf32>
    %c0_97 = arith.constant 0 : index
    %c768 = arith.constant 768 : index
    %174 = vector.load %arg30[%c0_97, %c768] : memref<4x1024xf32, #tpu.memory_space<vmem>>, vector<1x64xf32>
    tpu.vector_store %arg30[%c0_97, %c768], %173 {strides = array<i32>} : memref<4x1024xf32, #tpu.memory_space<vmem>>, vector<1x64xf32>,
    %175 = vector.extract_strided_slice %148 {offsets = [13, 0], sizes = [1, 64], strides = [1, 1]} : vector<16x64xf32> to vector<1x64xf32>
    %c0_98 = arith.constant 0 : index
    %c832 = arith.constant 832 : index
    %176 = vector.load %arg30[%c0_98, %c832] : memref<4x1024xf32, #tpu.memory_space<vmem>>, vector<1x64xf32>
    tpu.vector_store %arg30[%c0_98, %c832], %175 {strides = array<i32>} : memref<4x1024xf32, #tpu.memory_space<vmem>>, vector<1x64xf32>,
    %177 = vector.extract_strided_slice %148 {offsets = [14, 0], sizes = [1, 64], strides = [1, 1]} : vector<16x64xf32> to vector<1x64xf32>
    %c0_99 = arith.constant 0 : index
    %c896 = arith.constant 896 : index
    %178 = vector.load %arg30[%c0_99, %c896] : memref<4x1024xf32, #tpu.memory_space<vmem>>, vector<1x64xf32>
    tpu.vector_store %arg30[%c0_99, %c896], %177 {strides = array<i32>} : memref<4x1024xf32, #tpu.memory_space<vmem>>, vector<1x64xf32>,
    %179 = vector.extract_strided_slice %148 {offsets = [15, 0], sizes = [1, 64], strides = [1, 1]} : vector<16x64xf32> to vector<1x64xf32>
    %c0_100 = arith.constant 0 : index
    %c960 = arith.constant 960 : index
    %180 = vector.load %arg30[%c0_100, %c960] : memref<4x1024xf32, #tpu.memory_space<vmem>>, vector<1x64xf32>
    tpu.vector_store %arg30[%c0_100, %c960], %179 {strides = array<i32>} : memref<4x1024xf32, #tpu.memory_space<vmem>>, vector<1x64xf32>,
    %c17_101 = arith.constant 17 : index
    %c0_102 = arith.constant 0 : index
    %181 = vector.load %arg29[%c17_101, %c0_102] : memref<68x32xf32, #tpu.memory_space<vmem>>, vector<16x32xf32>
    %182 = arith.truncf %181 : vector<16x32xf32> to vector<16x32xbf16>
    %c18_103 = arith.constant 18 : index
    %c0_104 = arith.constant 0 : index
    %183 = vector.load %arg29[%c18_103, %c0_104] : memref<68x32xf32, #tpu.memory_space<vmem>>, vector<16x32xf32>
    %184 = arith.truncf %183 : vector<16x32xf32> to vector<16x32xbf16>
    %cst_105 = arith.constant dense<0.000000e+00> : vector<16x64xf32>
    %185 = tpu.matmul %182, %132, %cst_105 {dimension_numbers = #tpu.dot_dimension_numbers<[1], [0], [0], [1], [0, 0, 1, 1], [], []>} : vector<16x32xbf16>, vector<32x64xbf16>, vector<16x64xf32> -> vector<16x64xf32>
    %cst_106 = arith.constant dense<0.000000e+00> : vector<16x64xf32>
    %186 = tpu.matmul %184, %133, %cst_106 {dimension_numbers = #tpu.dot_dimension_numbers<[1], [0], [0], [1], [0, 0, 1, 1], [], []>} : vector<16x32xbf16>, vector<32x64xbf16>, vector<16x64xf32> -> vector<16x64xf32>
    %187 = arith.addf %185, %186 : vector<16x64xf32>
    %188 = vector.broadcast %134 : vector<1x64xf32> to vector<16x64xf32>
    %189 = arith.mulf %187, %188 : vector<16x64xf32>
    %190 = vector.broadcast %135 : vector<1x64xf32> to vector<16x64xf32>
    %191 = arith.addf %189, %190 : vector<16x64xf32>
    %cst_107 = arith.constant 0.000000e+00 : f32
    %192 = vector.broadcast %cst_107 : f32 to vector<16x64xf32>
    %193 = arith.maximumf %191, %192 : vector<16x64xf32>
    %194 = vector.extract_strided_slice %193 {offsets = [0, 0], sizes = [1, 64], strides = [1, 1]} : vector<16x64xf32> to vector<1x64xf32>
    %c1_108 = arith.constant 1 : index
    %c0_109 = arith.constant 0 : index
    %195 = vector.load %arg30[%c1_108, %c0_109] : memref<4x1024xf32, #tpu.memory_space<vmem>>, vector<1x64xf32>
    tpu.vector_store %arg30[%c1_108, %c0_109], %194 {strides = array<i32>} : memref<4x1024xf32, #tpu.memory_space<vmem>>, vector<1x64xf32>,
    %196 = vector.extract_strided_slice %193 {offsets = [1, 0], sizes = [1, 64], strides = [1, 1]} : vector<16x64xf32> to vector<1x64xf32>
    %c1_110 = arith.constant 1 : index
    %c64_111 = arith.constant 64 : index
    %197 = vector.load %arg30[%c1_110, %c64_111] : memref<4x1024xf32, #tpu.memory_space<vmem>>, vector<1x64xf32>
    tpu.vector_store %arg30[%c1_110, %c64_111], %196 {strides = array<i32>} : memref<4x1024xf32, #tpu.memory_space<vmem>>, vector<1x64xf32>,
    %198 = vector.extract_strided_slice %193 {offsets = [2, 0], sizes = [1, 64], strides = [1, 1]} : vector<16x64xf32> to vector<1x64xf32>
    %c1_112 = arith.constant 1 : index
    %c128_113 = arith.constant 128 : index
    %199 = vector.load %arg30[%c1_112, %c128_113] : memref<4x1024xf32, #tpu.memory_space<vmem>>, vector<1x64xf32>
    tpu.vector_store %arg30[%c1_112, %c128_113], %198 {strides = array<i32>} : memref<4x1024xf32, #tpu.memory_space<vmem>>, vector<1x64xf32>,
    %200 = vector.extract_strided_slice %193 {offsets = [3, 0], sizes = [1, 64], strides = [1, 1]} : vector<16x64xf32> to vector<1x64xf32>
    %c1_114 = arith.constant 1 : index
    %c192_115 = arith.constant 192 : index
    %201 = vector.load %arg30[%c1_114, %c192_115] : memref<4x1024xf32, #tpu.memory_space<vmem>>, vector<1x64xf32>
    tpu.vector_store %arg30[%c1_114, %c192_115], %200 {strides = array<i32>} : memref<4x1024xf32, #tpu.memory_space<vmem>>, vector<1x64xf32>,
    %202 = vector.extract_strided_slice %193 {offsets = [4, 0], sizes = [1, 64], strides = [1, 1]} : vector<16x64xf32> to vector<1x64xf32>
    %c1_116 = arith.constant 1 : index
    %c256_117 = arith.constant 256 : index
    %203 = vector.load %arg30[%c1_116, %c256_117] : memref<4x1024xf32, #tpu.memory_space<vmem>>, vector<1x64xf32>
    tpu.vector_store %arg30[%c1_116, %c256_117], %202 {strides = array<i32>} : memref<4x1024xf32, #tpu.memory_space<vmem>>, vector<1x64xf32>,
    %204 = vector.extract_strided_slice %193 {offsets = [5, 0], sizes = [1, 64], strides = [1, 1]} : vector<16x64xf32> to vector<1x64xf32>
    %c1_118 = arith.constant 1 : index
    %c320_119 = arith.constant 320 : index
    %205 = vector.load %arg30[%c1_118, %c320_119] : memref<4x1024xf32, #tpu.memory_space<vmem>>, vector<1x64xf32>
    tpu.vector_store %arg30[%c1_118, %c320_119], %204 {strides = array<i32>} : memref<4x1024xf32, #tpu.memory_space<vmem>>, vector<1x64xf32>,
    %206 = vector.extract_strided_slice %193 {offsets = [6, 0], sizes = [1, 64], strides = [1, 1]} : vector<16x64xf32> to vector<1x64xf32>
    %c1_120 = arith.constant 1 : index
    %c384_121 = arith.constant 384 : index
    %207 = vector.load %arg30[%c1_120, %c384_121] : memref<4x1024xf32, #tpu.memory_space<vmem>>, vector<1x64xf32>
    tpu.vector_store %arg30[%c1_120, %c384_121], %206 {strides = array<i32>} : memref<4x1024xf32, #tpu.memory_space<vmem>>, vector<1x64xf32>,
    %208 = vector.extract_strided_slice %193 {offsets = [7, 0], sizes = [1, 64], strides = [1, 1]} : vector<16x64xf32> to vector<1x64xf32>
    %c1_122 = arith.constant 1 : index
    %c448_123 = arith.constant 448 : index
    %209 = vector.load %arg30[%c1_122, %c448_123] : memref<4x1024xf32, #tpu.memory_space<vmem>>, vector<1x64xf32>
    tpu.vector_store %arg30[%c1_122, %c448_123], %208 {strides = array<i32>} : memref<4x1024xf32, #tpu.memory_space<vmem>>, vector<1x64xf32>,
    %210 = vector.extract_strided_slice %193 {offsets = [8, 0], sizes = [1, 64], strides = [1, 1]} : vector<16x64xf32> to vector<1x64xf32>
    %c1_124 = arith.constant 1 : index
    %c512_125 = arith.constant 512 : index
    %211 = vector.load %arg30[%c1_124, %c512_125] : memref<4x1024xf32, #tpu.memory_space<vmem>>, vector<1x64xf32>
    tpu.vector_store %arg30[%c1_124, %c512_125], %210 {strides = array<i32>} : memref<4x1024xf32, #tpu.memory_space<vmem>>, vector<1x64xf32>,
    %212 = vector.extract_strided_slice %193 {offsets = [9, 0], sizes = [1, 64], strides = [1, 1]} : vector<16x64xf32> to vector<1x64xf32>
    %c1_126 = arith.constant 1 : index
    %c576_127 = arith.constant 576 : index
    %213 = vector.load %arg30[%c1_126, %c576_127] : memref<4x1024xf32, #tpu.memory_space<vmem>>, vector<1x64xf32>
    tpu.vector_store %arg30[%c1_126, %c576_127], %212 {strides = array<i32>} : memref<4x1024xf32, #tpu.memory_space<vmem>>, vector<1x64xf32>,
    %214 = vector.extract_strided_slice %193 {offsets = [10, 0], sizes = [1, 64], strides = [1, 1]} : vector<16x64xf32> to vector<1x64xf32>
    %c1_128 = arith.constant 1 : index
    %c640_129 = arith.constant 640 : index
    %215 = vector.load %arg30[%c1_128, %c640_129] : memref<4x1024xf32, #tpu.memory_space<vmem>>, vector<1x64xf32>
    tpu.vector_store %arg30[%c1_128, %c640_129], %214 {strides = array<i32>} : memref<4x1024xf32, #tpu.memory_space<vmem>>, vector<1x64xf32>,
    %216 = vector.extract_strided_slice %193 {offsets = [11, 0], sizes = [1, 64], strides = [1, 1]} : vector<16x64xf32> to vector<1x64xf32>
    %c1_130 = arith.constant 1 : index
    %c704_131 = arith.constant 704 : index
    %217 = vector.load %arg30[%c1_130, %c704_131] : memref<4x1024xf32, #tpu.memory_space<vmem>>, vector<1x64xf32>
    tpu.vector_store %arg30[%c1_130, %c704_131], %216 {strides = array<i32>} : memref<4x1024xf32, #tpu.memory_space<vmem>>, vector<1x64xf32>,
    %218 = vector.extract_strided_slice %193 {offsets = [12, 0], sizes = [1, 64], strides = [1, 1]} : vector<16x64xf32> to vector<1x64xf32>
    %c1_132 = arith.constant 1 : index
    %c768_133 = arith.constant 768 : index
    %219 = vector.load %arg30[%c1_132, %c768_133] : memref<4x1024xf32, #tpu.memory_space<vmem>>, vector<1x64xf32>
    tpu.vector_store %arg30[%c1_132, %c768_133], %218 {strides = array<i32>} : memref<4x1024xf32, #tpu.memory_space<vmem>>, vector<1x64xf32>,
    %220 = vector.extract_strided_slice %193 {offsets = [13, 0], sizes = [1, 64], strides = [1, 1]} : vector<16x64xf32> to vector<1x64xf32>
    %c1_134 = arith.constant 1 : index
    %c832_135 = arith.constant 832 : index
    %221 = vector.load %arg30[%c1_134, %c832_135] : memref<4x1024xf32, #tpu.memory_space<vmem>>, vector<1x64xf32>
    tpu.vector_store %arg30[%c1_134, %c832_135], %220 {strides = array<i32>} : memref<4x1024xf32, #tpu.memory_space<vmem>>, vector<1x64xf32>,
    %222 = vector.extract_strided_slice %193 {offsets = [14, 0], sizes = [1, 64], strides = [1, 1]} : vector<16x64xf32> to vector<1x64xf32>
    %c1_136 = arith.constant 1 : index
    %c896_137 = arith.constant 896 : index
    %223 = vector.load %arg30[%c1_136, %c896_137] : memref<4x1024xf32, #tpu.memory_space<vmem>>, vector<1x64xf32>
    tpu.vector_store %arg30[%c1_136, %c896_137], %222 {strides = array<i32>} : memref<4x1024xf32, #tpu.memory_space<vmem>>, vector<1x64xf32>,
    %224 = vector.extract_strided_slice %193 {offsets = [15, 0], sizes = [1, 64], strides = [1, 1]} : vector<16x64xf32> to vector<1x64xf32>
    %c1_138 = arith.constant 1 : index
    %c960_139 = arith.constant 960 : index
    %225 = vector.load %arg30[%c1_138, %c960_139] : memref<4x1024xf32, #tpu.memory_space<vmem>>, vector<1x64xf32>
    tpu.vector_store %arg30[%c1_138, %c960_139], %224 {strides = array<i32>} : memref<4x1024xf32, #tpu.memory_space<vmem>>, vector<1x64xf32>,
    %c34 = arith.constant 34 : index
    %c0_140 = arith.constant 0 : index
    %226 = vector.load %arg29[%c34, %c0_140] : memref<68x32xf32, #tpu.memory_space<vmem>>, vector<16x32xf32>
    %227 = arith.truncf %226 : vector<16x32xf32> to vector<16x32xbf16>
    %c35_141 = arith.constant 35 : index
    %c0_142 = arith.constant 0 : index
    %228 = vector.load %arg29[%c35_141, %c0_142] : memref<68x32xf32, #tpu.memory_space<vmem>>, vector<16x32xf32>
    %229 = arith.truncf %228 : vector<16x32xf32> to vector<16x32xbf16>
    %cst_143 = arith.constant dense<0.000000e+00> : vector<16x64xf32>
    %230 = tpu.matmul %227, %132, %cst_143 {dimension_numbers = #tpu.dot_dimension_numbers<[1], [0], [0], [1], [0, 0, 1, 1], [], []>} : vector<16x32xbf16>, vector<32x64xbf16>, vector<16x64xf32> -> vector<16x64xf32>
    %cst_144 = arith.constant dense<0.000000e+00> : vector<16x64xf32>
    %231 = tpu.matmul %229, %133, %cst_144 {dimension_numbers = #tpu.dot_dimension_numbers<[1], [0], [0], [1], [0, 0, 1, 1], [], []>} : vector<16x32xbf16>, vector<32x64xbf16>, vector<16x64xf32> -> vector<16x64xf32>
    %232 = arith.addf %230, %231 : vector<16x64xf32>
    %233 = vector.broadcast %134 : vector<1x64xf32> to vector<16x64xf32>
    %234 = arith.mulf %232, %233 : vector<16x64xf32>
    %235 = vector.broadcast %135 : vector<1x64xf32> to vector<16x64xf32>
    %236 = arith.addf %234, %235 : vector<16x64xf32>
    %cst_145 = arith.constant 0.000000e+00 : f32
    %237 = vector.broadcast %cst_145 : f32 to vector<16x64xf32>
    %238 = arith.maximumf %236, %237 : vector<16x64xf32>
    %239 = vector.extract_strided_slice %238 {offsets = [0, 0], sizes = [1, 64], strides = [1, 1]} : vector<16x64xf32> to vector<1x64xf32>
    %c2 = arith.constant 2 : index
    %c0_146 = arith.constant 0 : index
    %240 = vector.load %arg30[%c2, %c0_146] : memref<4x1024xf32, #tpu.memory_space<vmem>>, vector<1x64xf32>
    tpu.vector_store %arg30[%c2, %c0_146], %239 {strides = array<i32>} : memref<4x1024xf32, #tpu.memory_space<vmem>>, vector<1x64xf32>,
    %241 = vector.extract_strided_slice %238 {offsets = [1, 0], sizes = [1, 64], strides = [1, 1]} : vector<16x64xf32> to vector<1x64xf32>
    %c2_147 = arith.constant 2 : index
    %c64_148 = arith.constant 64 : index
    %242 = vector.load %arg30[%c2_147, %c64_148] : memref<4x1024xf32, #tpu.memory_space<vmem>>, vector<1x64xf32>
    tpu.vector_store %arg30[%c2_147, %c64_148], %241 {strides = array<i32>} : memref<4x1024xf32, #tpu.memory_space<vmem>>, vector<1x64xf32>,
    %243 = vector.extract_strided_slice %238 {offsets = [2, 0], sizes = [1, 64], strides = [1, 1]} : vector<16x64xf32> to vector<1x64xf32>
    %c2_149 = arith.constant 2 : index
    %c128_150 = arith.constant 128 : index
    %244 = vector.load %arg30[%c2_149, %c128_150] : memref<4x1024xf32, #tpu.memory_space<vmem>>, vector<1x64xf32>
    tpu.vector_store %arg30[%c2_149, %c128_150], %243 {strides = array<i32>} : memref<4x1024xf32, #tpu.memory_space<vmem>>, vector<1x64xf32>,
    %245 = vector.extract_strided_slice %238 {offsets = [3, 0], sizes = [1, 64], strides = [1, 1]} : vector<16x64xf32> to vector<1x64xf32>
    %c2_151 = arith.constant 2 : index
    %c192_152 = arith.constant 192 : index
    %246 = vector.load %arg30[%c2_151, %c192_152] : memref<4x1024xf32, #tpu.memory_space<vmem>>, vector<1x64xf32>
    tpu.vector_store %arg30[%c2_151, %c192_152], %245 {strides = array<i32>} : memref<4x1024xf32, #tpu.memory_space<vmem>>, vector<1x64xf32>,
    %247 = vector.extract_strided_slice %238 {offsets = [4, 0], sizes = [1, 64], strides = [1, 1]} : vector<16x64xf32> to vector<1x64xf32>
    %c2_153 = arith.constant 2 : index
    %c256_154 = arith.constant 256 : index
    %248 = vector.load %arg30[%c2_153, %c256_154] : memref<4x1024xf32, #tpu.memory_space<vmem>>, vector<1x64xf32>
    tpu.vector_store %arg30[%c2_153, %c256_154], %247 {strides = array<i32>} : memref<4x1024xf32, #tpu.memory_space<vmem>>, vector<1x64xf32>,
    %249 = vector.extract_strided_slice %238 {offsets = [5, 0], sizes = [1, 64], strides = [1, 1]} : vector<16x64xf32> to vector<1x64xf32>
    %c2_155 = arith.constant 2 : index
    %c320_156 = arith.constant 320 : index
    %250 = vector.load %arg30[%c2_155, %c320_156] : memref<4x1024xf32, #tpu.memory_space<vmem>>, vector<1x64xf32>
    tpu.vector_store %arg30[%c2_155, %c320_156], %249 {strides = array<i32>} : memref<4x1024xf32, #tpu.memory_space<vmem>>, vector<1x64xf32>,
    %251 = vector.extract_strided_slice %238 {offsets = [6, 0], sizes = [1, 64], strides = [1, 1]} : vector<16x64xf32> to vector<1x64xf32>
    %c2_157 = arith.constant 2 : index
    %c384_158 = arith.constant 384 : index
    %252 = vector.load %arg30[%c2_157, %c384_158] : memref<4x1024xf32, #tpu.memory_space<vmem>>, vector<1x64xf32>
    tpu.vector_store %arg30[%c2_157, %c384_158], %251 {strides = array<i32>} : memref<4x1024xf32, #tpu.memory_space<vmem>>, vector<1x64xf32>,
    %253 = vector.extract_strided_slice %238 {offsets = [7, 0], sizes = [1, 64], strides = [1, 1]} : vector<16x64xf32> to vector<1x64xf32>
    %c2_159 = arith.constant 2 : index
    %c448_160 = arith.constant 448 : index
    %254 = vector.load %arg30[%c2_159, %c448_160] : memref<4x1024xf32, #tpu.memory_space<vmem>>, vector<1x64xf32>
    tpu.vector_store %arg30[%c2_159, %c448_160], %253 {strides = array<i32>} : memref<4x1024xf32, #tpu.memory_space<vmem>>, vector<1x64xf32>,
    %255 = vector.extract_strided_slice %238 {offsets = [8, 0], sizes = [1, 64], strides = [1, 1]} : vector<16x64xf32> to vector<1x64xf32>
    %c2_161 = arith.constant 2 : index
    %c512_162 = arith.constant 512 : index
    %256 = vector.load %arg30[%c2_161, %c512_162] : memref<4x1024xf32, #tpu.memory_space<vmem>>, vector<1x64xf32>
    tpu.vector_store %arg30[%c2_161, %c512_162], %255 {strides = array<i32>} : memref<4x1024xf32, #tpu.memory_space<vmem>>, vector<1x64xf32>,
    %257 = vector.extract_strided_slice %238 {offsets = [9, 0], sizes = [1, 64], strides = [1, 1]} : vector<16x64xf32> to vector<1x64xf32>
    %c2_163 = arith.constant 2 : index
    %c576_164 = arith.constant 576 : index
    %258 = vector.load %arg30[%c2_163, %c576_164] : memref<4x1024xf32, #tpu.memory_space<vmem>>, vector<1x64xf32>
    tpu.vector_store %arg30[%c2_163, %c576_164], %257 {strides = array<i32>} : memref<4x1024xf32, #tpu.memory_space<vmem>>, vector<1x64xf32>,
    %259 = vector.extract_strided_slice %238 {offsets = [10, 0], sizes = [1, 64], strides = [1, 1]} : vector<16x64xf32> to vector<1x64xf32>
    %c2_165 = arith.constant 2 : index
    %c640_166 = arith.constant 640 : index
    %260 = vector.load %arg30[%c2_165, %c640_166] : memref<4x1024xf32, #tpu.memory_space<vmem>>, vector<1x64xf32>
    tpu.vector_store %arg30[%c2_165, %c640_166], %259 {strides = array<i32>} : memref<4x1024xf32, #tpu.memory_space<vmem>>, vector<1x64xf32>,
    %261 = vector.extract_strided_slice %238 {offsets = [11, 0], sizes = [1, 64], strides = [1, 1]} : vector<16x64xf32> to vector<1x64xf32>
    %c2_167 = arith.constant 2 : index
    %c704_168 = arith.constant 704 : index
    %262 = vector.load %arg30[%c2_167, %c704_168] : memref<4x1024xf32, #tpu.memory_space<vmem>>, vector<1x64xf32>
    tpu.vector_store %arg30[%c2_167, %c704_168], %261 {strides = array<i32>} : memref<4x1024xf32, #tpu.memory_space<vmem>>, vector<1x64xf32>,
    %263 = vector.extract_strided_slice %238 {offsets = [12, 0], sizes = [1, 64], strides = [1, 1]} : vector<16x64xf32> to vector<1x64xf32>
    %c2_169 = arith.constant 2 : index
    %c768_170 = arith.constant 768 : index
    %264 = vector.load %arg30[%c2_169, %c768_170] : memref<4x1024xf32, #tpu.memory_space<vmem>>, vector<1x64xf32>
    tpu.vector_store %arg30[%c2_169, %c768_170], %263 {strides = array<i32>} : memref<4x1024xf32, #tpu.memory_space<vmem>>, vector<1x64xf32>,
    %265 = vector.extract_strided_slice %238 {offsets = [13, 0], sizes = [1, 64], strides = [1, 1]} : vector<16x64xf32> to vector<1x64xf32>
    %c2_171 = arith.constant 2 : index
    %c832_172 = arith.constant 832 : index
    %266 = vector.load %arg30[%c2_171, %c832_172] : memref<4x1024xf32, #tpu.memory_space<vmem>>, vector<1x64xf32>
    tpu.vector_store %arg30[%c2_171, %c832_172], %265 {strides = array<i32>} : memref<4x1024xf32, #tpu.memory_space<vmem>>, vector<1x64xf32>,
    %267 = vector.extract_strided_slice %238 {offsets = [14, 0], sizes = [1, 64], strides = [1, 1]} : vector<16x64xf32> to vector<1x64xf32>
    %c2_173 = arith.constant 2 : index
    %c896_174 = arith.constant 896 : index
    %268 = vector.load %arg30[%c2_173, %c896_174] : memref<4x1024xf32, #tpu.memory_space<vmem>>, vector<1x64xf32>
    tpu.vector_store %arg30[%c2_173, %c896_174], %267 {strides = array<i32>} : memref<4x1024xf32, #tpu.memory_space<vmem>>, vector<1x64xf32>,
    %269 = vector.extract_strided_slice %238 {offsets = [15, 0], sizes = [1, 64], strides = [1, 1]} : vector<16x64xf32> to vector<1x64xf32>
    %c2_175 = arith.constant 2 : index
    %c960_176 = arith.constant 960 : index
    %270 = vector.load %arg30[%c2_175, %c960_176] : memref<4x1024xf32, #tpu.memory_space<vmem>>, vector<1x64xf32>
    tpu.vector_store %arg30[%c2_175, %c960_176], %269 {strides = array<i32>} : memref<4x1024xf32, #tpu.memory_space<vmem>>, vector<1x64xf32>,
    %c51 = arith.constant 51 : index
    %c0_177 = arith.constant 0 : index
    %271 = vector.load %arg29[%c51, %c0_177] : memref<68x32xf32, #tpu.memory_space<vmem>>, vector<16x32xf32>
    %272 = arith.truncf %271 : vector<16x32xf32> to vector<16x32xbf16>
    %c52_178 = arith.constant 52 : index
    %c0_179 = arith.constant 0 : index
    %273 = vector.load %arg29[%c52_178, %c0_179] : memref<68x32xf32, #tpu.memory_space<vmem>>, vector<16x32xf32>
    %274 = arith.truncf %273 : vector<16x32xf32> to vector<16x32xbf16>
    %cst_180 = arith.constant dense<0.000000e+00> : vector<16x64xf32>
    %275 = tpu.matmul %272, %132, %cst_180 {dimension_numbers = #tpu.dot_dimension_numbers<[1], [0], [0], [1], [0, 0, 1, 1], [], []>} : vector<16x32xbf16>, vector<32x64xbf16>, vector<16x64xf32> -> vector<16x64xf32>
    %cst_181 = arith.constant dense<0.000000e+00> : vector<16x64xf32>
    %276 = tpu.matmul %274, %133, %cst_181 {dimension_numbers = #tpu.dot_dimension_numbers<[1], [0], [0], [1], [0, 0, 1, 1], [], []>} : vector<16x32xbf16>, vector<32x64xbf16>, vector<16x64xf32> -> vector<16x64xf32>
    %277 = arith.addf %275, %276 : vector<16x64xf32>
    %278 = vector.broadcast %134 : vector<1x64xf32> to vector<16x64xf32>
    %279 = arith.mulf %277, %278 : vector<16x64xf32>
    %280 = vector.broadcast %135 : vector<1x64xf32> to vector<16x64xf32>
    %281 = arith.addf %279, %280 : vector<16x64xf32>
    %cst_182 = arith.constant 0.000000e+00 : f32
    %282 = vector.broadcast %cst_182 : f32 to vector<16x64xf32>
    %283 = arith.maximumf %281, %282 : vector<16x64xf32>
    %284 = vector.extract_strided_slice %283 {offsets = [0, 0], sizes = [1, 64], strides = [1, 1]} : vector<16x64xf32> to vector<1x64xf32>
    %c3 = arith.constant 3 : index
    %c0_183 = arith.constant 0 : index
    %285 = vector.load %arg30[%c3, %c0_183] : memref<4x1024xf32, #tpu.memory_space<vmem>>, vector<1x64xf32>
    tpu.vector_store %arg30[%c3, %c0_183], %284 {strides = array<i32>} : memref<4x1024xf32, #tpu.memory_space<vmem>>, vector<1x64xf32>,
    %286 = vector.extract_strided_slice %283 {offsets = [1, 0], sizes = [1, 64], strides = [1, 1]} : vector<16x64xf32> to vector<1x64xf32>
    %c3_184 = arith.constant 3 : index
    %c64_185 = arith.constant 64 : index
    %287 = vector.load %arg30[%c3_184, %c64_185] : memref<4x1024xf32, #tpu.memory_space<vmem>>, vector<1x64xf32>
    tpu.vector_store %arg30[%c3_184, %c64_185], %286 {strides = array<i32>} : memref<4x1024xf32, #tpu.memory_space<vmem>>, vector<1x64xf32>,
    %288 = vector.extract_strided_slice %283 {offsets = [2, 0], sizes = [1, 64], strides = [1, 1]} : vector<16x64xf32> to vector<1x64xf32>
    %c3_186 = arith.constant 3 : index
    %c128_187 = arith.constant 128 : index
    %289 = vector.load %arg30[%c3_186, %c128_187] : memref<4x1024xf32, #tpu.memory_space<vmem>>, vector<1x64xf32>
    tpu.vector_store %arg30[%c3_186, %c128_187], %288 {strides = array<i32>} : memref<4x1024xf32, #tpu.memory_space<vmem>>, vector<1x64xf32>,
    %290 = vector.extract_strided_slice %283 {offsets = [3, 0], sizes = [1, 64], strides = [1, 1]} : vector<16x64xf32> to vector<1x64xf32>
    %c3_188 = arith.constant 3 : index
    %c192_189 = arith.constant 192 : index
    %291 = vector.load %arg30[%c3_188, %c192_189] : memref<4x1024xf32, #tpu.memory_space<vmem>>, vector<1x64xf32>
    tpu.vector_store %arg30[%c3_188, %c192_189], %290 {strides = array<i32>} : memref<4x1024xf32, #tpu.memory_space<vmem>>, vector<1x64xf32>,
    %292 = vector.extract_strided_slice %283 {offsets = [4, 0], sizes = [1, 64], strides = [1, 1]} : vector<16x64xf32> to vector<1x64xf32>
    %c3_190 = arith.constant 3 : index
    %c256_191 = arith.constant 256 : index
    %293 = vector.load %arg30[%c3_190, %c256_191] : memref<4x1024xf32, #tpu.memory_space<vmem>>, vector<1x64xf32>
    tpu.vector_store %arg30[%c3_190, %c256_191], %292 {strides = array<i32>} : memref<4x1024xf32, #tpu.memory_space<vmem>>, vector<1x64xf32>,
    %294 = vector.extract_strided_slice %283 {offsets = [5, 0], sizes = [1, 64], strides = [1, 1]} : vector<16x64xf32> to vector<1x64xf32>
    %c3_192 = arith.constant 3 : index
    %c320_193 = arith.constant 320 : index
    %295 = vector.load %arg30[%c3_192, %c320_193] : memref<4x1024xf32, #tpu.memory_space<vmem>>, vector<1x64xf32>
    tpu.vector_store %arg30[%c3_192, %c320_193], %294 {strides = array<i32>} : memref<4x1024xf32, #tpu.memory_space<vmem>>, vector<1x64xf32>,
    %296 = vector.extract_strided_slice %283 {offsets = [6, 0], sizes = [1, 64], strides = [1, 1]} : vector<16x64xf32> to vector<1x64xf32>
    %c3_194 = arith.constant 3 : index
    %c384_195 = arith.constant 384 : index
    %297 = vector.load %arg30[%c3_194, %c384_195] : memref<4x1024xf32, #tpu.memory_space<vmem>>, vector<1x64xf32>
    tpu.vector_store %arg30[%c3_194, %c384_195], %296 {strides = array<i32>} : memref<4x1024xf32, #tpu.memory_space<vmem>>, vector<1x64xf32>,
    %298 = vector.extract_strided_slice %283 {offsets = [7, 0], sizes = [1, 64], strides = [1, 1]} : vector<16x64xf32> to vector<1x64xf32>
    %c3_196 = arith.constant 3 : index
    %c448_197 = arith.constant 448 : index
    %299 = vector.load %arg30[%c3_196, %c448_197] : memref<4x1024xf32, #tpu.memory_space<vmem>>, vector<1x64xf32>
    tpu.vector_store %arg30[%c3_196, %c448_197], %298 {strides = array<i32>} : memref<4x1024xf32, #tpu.memory_space<vmem>>, vector<1x64xf32>,
    %300 = vector.extract_strided_slice %283 {offsets = [8, 0], sizes = [1, 64], strides = [1, 1]} : vector<16x64xf32> to vector<1x64xf32>
    %c3_198 = arith.constant 3 : index
    %c512_199 = arith.constant 512 : index
    %301 = vector.load %arg30[%c3_198, %c512_199] : memref<4x1024xf32, #tpu.memory_space<vmem>>, vector<1x64xf32>
    tpu.vector_store %arg30[%c3_198, %c512_199], %300 {strides = array<i32>} : memref<4x1024xf32, #tpu.memory_space<vmem>>, vector<1x64xf32>,
    %302 = vector.extract_strided_slice %283 {offsets = [9, 0], sizes = [1, 64], strides = [1, 1]} : vector<16x64xf32> to vector<1x64xf32>
    %c3_200 = arith.constant 3 : index
    %c576_201 = arith.constant 576 : index
    %303 = vector.load %arg30[%c3_200, %c576_201] : memref<4x1024xf32, #tpu.memory_space<vmem>>, vector<1x64xf32>
    tpu.vector_store %arg30[%c3_200, %c576_201], %302 {strides = array<i32>} : memref<4x1024xf32, #tpu.memory_space<vmem>>, vector<1x64xf32>,
    %304 = vector.extract_strided_slice %283 {offsets = [10, 0], sizes = [1, 64], strides = [1, 1]} : vector<16x64xf32> to vector<1x64xf32>
    %c3_202 = arith.constant 3 : index
    %c640_203 = arith.constant 640 : index
    %305 = vector.load %arg30[%c3_202, %c640_203] : memref<4x1024xf32, #tpu.memory_space<vmem>>, vector<1x64xf32>
    tpu.vector_store %arg30[%c3_202, %c640_203], %304 {strides = array<i32>} : memref<4x1024xf32, #tpu.memory_space<vmem>>, vector<1x64xf32>,
    %306 = vector.extract_strided_slice %283 {offsets = [11, 0], sizes = [1, 64], strides = [1, 1]} : vector<16x64xf32> to vector<1x64xf32>
    %c3_204 = arith.constant 3 : index
    %c704_205 = arith.constant 704 : index
    %307 = vector.load %arg30[%c3_204, %c704_205] : memref<4x1024xf32, #tpu.memory_space<vmem>>, vector<1x64xf32>
    tpu.vector_store %arg30[%c3_204, %c704_205], %306 {strides = array<i32>} : memref<4x1024xf32, #tpu.memory_space<vmem>>, vector<1x64xf32>,
    %308 = vector.extract_strided_slice %283 {offsets = [12, 0], sizes = [1, 64], strides = [1, 1]} : vector<16x64xf32> to vector<1x64xf32>
    %c3_206 = arith.constant 3 : index
    %c768_207 = arith.constant 768 : index
    %309 = vector.load %arg30[%c3_206, %c768_207] : memref<4x1024xf32, #tpu.memory_space<vmem>>, vector<1x64xf32>
    tpu.vector_store %arg30[%c3_206, %c768_207], %308 {strides = array<i32>} : memref<4x1024xf32, #tpu.memory_space<vmem>>, vector<1x64xf32>,
    %310 = vector.extract_strided_slice %283 {offsets = [13, 0], sizes = [1, 64], strides = [1, 1]} : vector<16x64xf32> to vector<1x64xf32>
    %c3_208 = arith.constant 3 : index
    %c832_209 = arith.constant 832 : index
    %311 = vector.load %arg30[%c3_208, %c832_209] : memref<4x1024xf32, #tpu.memory_space<vmem>>, vector<1x64xf32>
    tpu.vector_store %arg30[%c3_208, %c832_209], %310 {strides = array<i32>} : memref<4x1024xf32, #tpu.memory_space<vmem>>, vector<1x64xf32>,
    %312 = vector.extract_strided_slice %283 {offsets = [14, 0], sizes = [1, 64], strides = [1, 1]} : vector<16x64xf32> to vector<1x64xf32>
    %c3_210 = arith.constant 3 : index
    %c896_211 = arith.constant 896 : index
    %313 = vector.load %arg30[%c3_210, %c896_211] : memref<4x1024xf32, #tpu.memory_space<vmem>>, vector<1x64xf32>
    tpu.vector_store %arg30[%c3_210, %c896_211], %312 {strides = array<i32>} : memref<4x1024xf32, #tpu.memory_space<vmem>>, vector<1x64xf32>,
    %314 = vector.extract_strided_slice %283 {offsets = [15, 0], sizes = [1, 64], strides = [1, 1]} : vector<16x64xf32> to vector<1x64xf32>
    %c3_212 = arith.constant 3 : index
    %c960_213 = arith.constant 960 : index
    %315 = vector.load %arg30[%c3_212, %c960_213] : memref<4x1024xf32, #tpu.memory_space<vmem>>, vector<1x64xf32>
    tpu.vector_store %arg30[%c3_212, %c960_213], %314 {strides = array<i32>} : memref<4x1024xf32, #tpu.memory_space<vmem>>, vector<1x64xf32>,
    %c0_214 = arith.constant 0 : index
    %c0_215 = arith.constant 0 : index
    %316 = vector.load %arg30[%c0_214, %c0_215] : memref<4x1024xf32, #tpu.memory_space<vmem>>, vector<4x1024xf32>
    %317 = arith.truncf %316 : vector<4x1024xf32> to vector<4x1024xbf16>
    %c0_216 = arith.constant 0 : index
    %c0_217 = arith.constant 0 : index
    %318 = vector.load %arg13[%c0_216, %c0_217] : memref<1024x256xbf16, #tpu.memory_space<vmem>>, vector<1024x256xbf16>
    %cst_218 = arith.constant dense<0.000000e+00> : vector<4x256xf32>
    %319 = tpu.matmul %317, %318, %cst_218 {dimension_numbers = #tpu.dot_dimension_numbers<[1], [0], [0], [1], [0, 0, 1, 1], [], []>} : vector<4x1024xbf16>, vector<1024x256xbf16>, vector<4x256xf32> -> vector<4x256xf32>
    %c0_219 = arith.constant 0 : index
    %c0_220 = arith.constant 0 : index
    %320 = vector.load %arg14[%c0_219, %c0_220] : memref<1x256xf32, #tpu.memory_space<vmem>>, vector<1x256xf32>
    %321 = vector.broadcast %320 : vector<1x256xf32> to vector<4x256xf32>
    %322 = arith.mulf %319, %321 : vector<4x256xf32>
    %c0_221 = arith.constant 0 : index
    %c0_222 = arith.constant 0 : index
    %323 = vector.load %arg15[%c0_221, %c0_222] : memref<1x256xf32, #tpu.memory_space<vmem>>, vector<1x256xf32>
    %324 = vector.broadcast %323 : vector<1x256xf32> to vector<4x256xf32>
    %325 = arith.addf %322, %324 : vector<4x256xf32>
    %cst_223 = arith.constant 0.000000e+00 : f32
    %326 = vector.broadcast %cst_223 : f32 to vector<4x256xf32>
    %327 = arith.maximumf %325, %326 : vector<4x256xf32>
    %328 = arith.truncf %327 : vector<4x256xf32> to vector<4x256xbf16>
    %c0_224 = arith.constant 0 : index
    %c0_225 = arith.constant 0 : index
    %329 = vector.load %arg16[%c0_224, %c0_225] : memref<256x128xbf16, #tpu.memory_space<vmem>>, vector<256x128xbf16>
    %cst_226 = arith.constant dense<0.000000e+00> : vector<4x128xf32>
    %330 = tpu.matmul %328, %329, %cst_226 {dimension_numbers = #tpu.dot_dimension_numbers<[1], [0], [0], [1], [0, 0, 1, 1], [], []>} : vector<4x256xbf16>, vector<256x128xbf16>, vector<4x128xf32> -> vector<4x128xf32>
    %c0_227 = arith.constant 0 : index
    %c0_228 = arith.constant 0 : index
    %331 = vector.load %arg17[%c0_227, %c0_228] : memref<1x128xf32, #tpu.memory_space<vmem>>, vector<1x128xf32>
    %332 = vector.broadcast %331 : vector<1x128xf32> to vector<4x128xf32>
    %333 = arith.mulf %330, %332 : vector<4x128xf32>
    %c0_229 = arith.constant 0 : index
    %c0_230 = arith.constant 0 : index
    %334 = vector.load %arg18[%c0_229, %c0_230] : memref<1x128xf32, #tpu.memory_space<vmem>>, vector<1x128xf32>
    %335 = vector.broadcast %334 : vector<1x128xf32> to vector<4x128xf32>
    %336 = arith.addf %333, %335 : vector<4x128xf32>
    %cst_231 = arith.constant 0.000000e+00 : f32
    %337 = vector.broadcast %cst_231 : f32 to vector<4x128xf32>
    %338 = arith.maximumf %336, %337 : vector<4x128xf32>
    %339 = arith.truncf %338 : vector<4x128xf32> to vector<4x128xbf16>
    %c0_232 = arith.constant 0 : index
    %c0_233 = arith.constant 0 : index
    %340 = vector.load %arg19[%c0_232, %c0_233] : memref<128x64xbf16, #tpu.memory_space<vmem>>, vector<128x64xbf16>
    %cst_234 = arith.constant dense<0.000000e+00> : vector<4x64xf32>
    %341 = tpu.matmul %339, %340, %cst_234 {dimension_numbers = #tpu.dot_dimension_numbers<[1], [0], [0], [1], [0, 0, 1, 1], [], []>} : vector<4x128xbf16>, vector<128x64xbf16>, vector<4x64xf32> -> vector<4x64xf32>
    %c0_235 = arith.constant 0 : index
    %c0_236 = arith.constant 0 : index
    %342 = vector.load %arg20[%c0_235, %c0_236] : memref<1x64xf32, #tpu.memory_space<vmem>>, vector<1x64xf32>
    %343 = vector.broadcast %342 : vector<1x64xf32> to vector<4x64xf32>
    %344 = arith.mulf %341, %343 : vector<4x64xf32>
    %c0_237 = arith.constant 0 : index
    %c0_238 = arith.constant 0 : index
    %345 = vector.load %arg21[%c0_237, %c0_238] : memref<1x64xf32, #tpu.memory_space<vmem>>, vector<1x64xf32>
    %346 = vector.broadcast %345 : vector<1x64xf32> to vector<4x64xf32>
    %347 = arith.addf %344, %346 : vector<4x64xf32>
    %cst_239 = arith.constant 0.000000e+00 : f32
    %348 = vector.broadcast %cst_239 : f32 to vector<4x64xf32>
    %349 = arith.maximumf %347, %348 : vector<4x64xf32>
    %350 = arith.truncf %349 : vector<4x64xf32> to vector<4x64xbf16>
    %c0_240 = arith.constant 0 : index
    %c0_241 = arith.constant 0 : index
    %351 = vector.load %arg22[%c0_240, %c0_241] : memref<64x32xbf16, #tpu.memory_space<vmem>>, vector<64x32xbf16>
    %cst_242 = arith.constant dense<0.000000e+00> : vector<4x32xf32>
    %352 = tpu.matmul %350, %351, %cst_242 {dimension_numbers = #tpu.dot_dimension_numbers<[1], [0], [0], [1], [0, 0, 1, 1], [], []>} : vector<4x64xbf16>, vector<64x32xbf16>, vector<4x32xf32> -> vector<4x32xf32>
    %c0_243 = arith.constant 0 : index
    %c0_244 = arith.constant 0 : index
    %353 = vector.load %arg23[%c0_243, %c0_244] : memref<1x32xf32, #tpu.memory_space<vmem>>, vector<1x32xf32>
    %354 = vector.broadcast %353 : vector<1x32xf32> to vector<4x32xf32>
    %355 = arith.mulf %352, %354 : vector<4x32xf32>
    %c0_245 = arith.constant 0 : index
    %c0_246 = arith.constant 0 : index
    %356 = vector.load %arg24[%c0_245, %c0_246] : memref<1x32xf32, #tpu.memory_space<vmem>>, vector<1x32xf32>
    %357 = vector.broadcast %356 : vector<1x32xf32> to vector<4x32xf32>
    %358 = arith.addf %355, %357 : vector<4x32xf32>
    %cst_247 = arith.constant 0.000000e+00 : f32
    %359 = vector.broadcast %cst_247 : f32 to vector<4x32xf32>
    %360 = arith.maximumf %358, %359 : vector<4x32xf32>
    %361 = arith.truncf %360 : vector<4x32xf32> to vector<4x32xbf16>
    %c0_248 = arith.constant 0 : index
    %c0_249 = arith.constant 0 : index
    %362 = vector.load %arg25[%c0_248, %c0_249] : memref<32x128xbf16, #tpu.memory_space<vmem>>, vector<32x128xbf16>
    %cst_250 = arith.constant dense<0.000000e+00> : vector<4x128xf32>
    %363 = tpu.matmul %361, %362, %cst_250 {dimension_numbers = #tpu.dot_dimension_numbers<[1], [0], [0], [1], [0, 0, 1, 1], [], []>} : vector<4x32xbf16>, vector<32x128xbf16>, vector<4x128xf32> -> vector<4x128xf32>
    %c0_251 = arith.constant 0 : index
    %c0_252 = arith.constant 0 : index
    %364 = vector.load %arg26[%c0_251, %c0_252] : memref<1x128xf32, #tpu.memory_space<vmem>>, vector<1x128xf32>
    %365 = vector.broadcast %364 : vector<1x128xf32> to vector<4x128xf32>
    %366 = arith.addf %363, %365 : vector<4x128xf32>
    %c0_253 = arith.constant 0 : index
    %c0_254 = arith.constant 0 : index
    %367 = vector.load %arg27[%c0_253, %c0_254] : memref<4x128xf32, #tpu.memory_space<vmem>>, vector<4x128xf32>
    tpu.vector_store %arg27[%c0_253, %c0_254], %366 {strides = array<i32>} : memref<4x128xf32, #tpu.memory_space<vmem>>, vector<4x128xf32>,
    return
  }
}

</mosaic_0001>

<bundles_post_ra>
// kernel: audio_cnn_forward.1
= control target key start
LH: loop header
LB: loop body
LE: loop exit
PB: predicated region body
PF: predicated region fallthrough
CT: control target
= control target key end

     0   :  { %s4591_s0 = inlined_call_operand.vmem [shape: f32[60,1], index: 0, kind: input, shape index: {}]   ;;  %s4592_s1 = inlined_call_operand.vmem [shape: f32[1,16], index: 1, kind: input, shape index: {}]   ;;  %s4593_s2 = inlined_call_operand.vmem [shape: f32[1,16], index: 2, kind: input, shape index: {}]   ;;  %s4594_s3 = inlined_call_operand.vmem [shape: f32[1,16], index: 3, kind: input, shape index: {}]   ;;  %s4595_s4 = inlined_call_operand.vmem [shape: f32[1,16], index: 4, kind: input, shape index: {}]   ;;  %s4596_s5 = inlined_call_operand.vmem [shape: bf16[16,32], index: 5, kind: input, shape index: {}]   ;;  %s4597_s6 = inlined_call_operand.vmem [shape: bf16[16,32], index: 6, kind: input, shape index: {}]   ;;  %s4598_s7 = inlined_call_operand.vmem [shape: f32[1,32], index: 7, kind: input, shape index: {}]   ;;  %s4599_s8 = inlined_call_operand.vmem [shape: f32[1,32], index: 8, kind: input, shape index: {}]   ;;  %s4600_s9 = inlined_call_operand.vmem [shape: bf16[32,64], index: 9, kind: input, shape index: {}]   ;;  %s4601_s10 = inlined_call_operand.vmem [shape: bf16[32,64], index: 10, kind: input, shape index: {}]   ;;  %s4602_s11 = inlined_call_operand.vmem [shape: f32[1,64], index: 11, kind: input, shape index: {}]   ;;  %s4603_s12 = inlined_call_operand.vmem [shape: f32[1,64], index: 12, kind: input, shape index: {}]   ;;  %s4604_s13 = inlined_call_operand.hbm [shape: bf16[1024,256], index: 13, kind: input, shape index: {}]   ;;  %s4605_s14 = inlined_call_operand.vmem [shape: f32[1,256], index: 14, kind: input, shape index: {}]   ;;  %s4606_s15 = inlined_call_operand.vmem [shape: f32[1,256], index: 15, kind: input, shape index: {}]   ;;  %s4607_s16 = inlined_call_operand.vmem [shape: bf16[256,128], index: 16, kind: input, shape index: {}]   ;;  %s4608_s17 = inlined_call_operand.vmem [shape: f32[1,128], index: 17, kind: input, shape index: {}]   ;;  %s4609_s18 = inlined_call_operand.vmem [shape: f32[1,128], index: 18, kind: input, shape index: {}]   ;;  %s4610_s19 = inlined_call_operand.vmem [shape: bf16[128,64], index: 19, kind: input, shape index: {}]   ;;  %s4611_s20 = inlined_call_operand.vmem [shape: f32[1,64], index: 20, kind: input, shape index: {}]   ;;  %s4612_s21 = inlined_call_operand.vmem [shape: f32[1,64], index: 21, kind: input, shape index: {}]   ;;  %s4613_s22 = inlined_call_operand.vmem [shape: bf16[64,32], index: 22, kind: input, shape index: {}]   ;;  %s4614_s23 = inlined_call_operand.vmem [shape: f32[1,32], index: 23, kind: input, shape index: {}]   ;;  %s4615_s24 = inlined_call_operand.vmem [shape: f32[1,32], index: 24, kind: input, shape index: {}]   ;;  %s4616_s25 = inlined_call_operand.vmem [shape: bf16[32,128], index: 25, kind: input, shape index: {}]   ;;  %s4617_s26 = inlined_call_operand.vmem [shape: f32[1,128], index: 26, kind: input, shape index: {}]   ;;  %s4618_s27 = inlined_call_operand.hbm [shape: f32[4,128], index: 27, kind: output, shape index: {}]  }
   0x1   :  { %4622 = sst [smem:[#allocation11_spill]] %s4591_s0 }
   0x2   :  { %4623 = sst [smem:[#allocation12_spill]] %s4592_s1 }
   0x3   :  { %4624 = sst [smem:[#allocation13_spill]] %s4593_s2 }
   0x4   :  { %4625 = sst [smem:[#allocation14_spill]] %s4594_s3 }
   0x5   :  { %4626 = sst [smem:[#allocation15_spill]] %s4595_s4 }
   0x6   :  { %4627 = sst [smem:[#allocation16_spill]] %s4596_s5 }
   0x7   :  { %4628 = sst [smem:[#allocation17_spill]] %s4597_s6 }
   0x8   :  { %4629 = sst [smem:[#allocation18_spill]] %s4598_s7 }
   0x9   :  { %4630 = sst [smem:[#allocation19_spill]] %s4599_s8 }
   0xa   :  { %4631 = sst [smem:[#allocation20_spill]] %s4600_s9 }
   0xb   :  { %4632 = sst [smem:[#allocation21_spill]] %s4601_s10 }
   0xc   :  { %4633 = sst [smem:[#allocation22_spill]] %s4602_s11 }
   0xd   :  { %32 = vsyncpa [#allocation6], 0 }
   0xe   :  { %33 = vsyncpa [#allocation7], 0  ;;  %s3766_s7 = smov [#allocation5]   ;;  %s3718_s9 = scalar_lea.hbm %s4604_s13, 16384 }
   0xf   :  { %s65_s4 = sshll.u32 %s3766_s7, 4  ;;  %p3719_p0 = scmp.ne.s32.totalorder %s4604_s13, %s3718_s9  ;;  %s66_s4 = int_to_ptr.vmem [resolvable:$true] %s65_s4 }
  0x10   :  { %p3722_p1 = scmp.lt.u32.totalorder %s3718_s9, %s4604_s13 }
  0x12   :  { %p3724_p2 = pnand %p3722_p1, %p3719_p0 }
  0x14   :  { %3727 = shalt.err (!%p3724_p2)
}
  0x15   :  { %s3728_s29 = scalar_lea.vmem %s66_s4, 16384  ;;  %p3733_p4 = scmp.lt.s32.totalorder %s66_s4, %s66_s4 }
  0x16   :  { %p3729_p3 = scmp.ne.s32.totalorder %s66_s4, %s3728_s29  ;;  %p3734_p5 = scmp.lt.s32.totalorder %s3728_s29, %s3728_s29 }
  0x18   :  { %p3735_p6 = por %p3734_p5, %p3733_p4 }
  0x1a   :  { %p3736_p7 = pnand %p3735_p6, %p3729_p3 }
  0x1c   :  { %3739 = shalt.err (!%p3736_p7)
}
  0x1d   :  { %s3767_s1 = smov 128   ;;  %s3768_s6 = smov 8  }
  0x1e   :  { %71 = dma.hbm_to_vmem [thread:$0]  %s4604_s13, 16384, %s66_s4, [#allocation6], %s3767_s1, %s3767_s1, %s3768_s6  }
  0x1f   :  { %3762 = dma.done.wait [#allocation6], 16384  }
  0x20   :  { %3763 = vsyncadd [#allocation6], 4294950912  ;;  %v3769_v0 = vmov 0   ;;  %s4634_s8 = sld [smem:[#allocation11_spill]]  ;;  %vm102_vm0 = vcmask 130048   ;;  %v3770_v9 = vmov 0.0  }
  0x21   :  { %3485 = vset.pattern.permute.xlu1 %v3769_v0  ;;  %3484 = vset.pattern.permute.xlu0 %v3769_v0  ;;  %103 = vst.msk [vmem:[#allocation2] sm:$0xff] %vm102_vm0, %v3770_v9  ;;  %104 = vst.msk [vmem:[#allocation2 + $0x8] sm:$0xff] %vm102_vm0, %v3770_v9  ;;  %s4635_s3 = sld [smem:[#allocation17_spill]]  ;;  %vm3771_vm1 = vmmov 0   ;;  %s4636_s4 = sld [smem:[#allocation13_spill]]  ;;  %vm187_vm2 = vcmask 128000  }
  0x22   :  { %105 = vst.msk [vmem:[#allocation2 + $0x10] sm:$0xff] %vm102_vm0, %v3770_v9  ;;  %106 = vst.msk [vmem:[#allocation2 + $0x18] sm:$0xff] %vm102_vm0, %v3770_v9  ;;  %3282 = vmatprep.subr.bf16.mxu1 %v3770_v9  ;;  %3306 = vmatprep.subr.bf16.mxu0 %v3770_v9  ;;  %s4637_s29 = sld [smem:[#allocation12_spill]]  ;;  %s4638_s6 = sld [smem:[#allocation14_spill]]  ;;  %vm111_vm3 = vcmask 261120   ;;  %vm120_vm4 = vcmask 257024  }
  0x23   :  { %107 = vst.msk [vmem:[#allocation2 + $0x20] sm:$0xff] %vm102_vm0, %v3770_v9  ;;  %108 = vst.msk [vmem:[#allocation2 + $0x28] sm:$0xff] %vm102_vm0, %v3770_v9  ;;  %3284 = vmatprep.mubr.msk.bf16.mxu1 %vm3771_vm1, %v3770_v9  ;;  %3308 = vmatprep.mubr.msk.bf16.mxu0 %vm3771_vm1, %v3770_v9  ;;  %s4640_s9 = sld [smem:[#allocation16_spill]]  ;;  %s4641_s13 = sld [smem:[#allocation21_spill]]  ;;  %vm434_vm5 = vcmask 260096   ;;  %vm888_vm6 = vcmask 516096  }
  0x24   :  { %109 = vst.msk [vmem:[#allocation2 + $0x30] sm:$0xff] %vm102_vm0, %v3770_v9  ;;  %110 = vst.msk [vmem:[#allocation2 + $0x38] sm:$0xff] %vm102_vm0, %v3770_v9  ;;  %s4643_s11 = sld [smem:[#allocation19_spill]]  ;;  %s4644_s7 = sld [smem:[#allocation20_spill]]  ;;  %vm896_vm7 = vcmask 1040896   ;;  %vm2814_vm8 = vcmask 523264  }
  0x25   :  { %112 = vst.msk [vmem:[#allocation3] sm:$0xff] %vm111_vm3, %v3770_v9  ;;  %113 = vst.msk [vmem:[#allocation3 + $0x8] sm:$0xff] %vm111_vm3, %v3770_v9 }
  0x26   :  { %v128_v1 = vld [vmem:[%s4634_s8 + $0x1] sm:$0xff]  ;;  %v129_v3 = vld [vmem:[%s4634_s8 + $0x9] sm:$0x3f]  ;;  %v190_v5 = vld [vmem:[%s4634_s8 + $0x17] sm:$0x3f]  ;;  %114 = vst.msk [vmem:[#allocation3 + $0x10] sm:$0xff] %vm111_vm3, %v3770_v9 }
  0x27   :  { %v126_v2 = vld [vmem:[%s4634_s8] sm:$0xff]  ;;  %150 = vperm.xlu1 %3485, %v128_v1   ;;  %v127_v4 = vld [vmem:[%s4634_s8 + $0x8] sm:$0x3f]  ;;  %v189_v6 = vld [vmem:[%s4634_s8 + $0xf] sm:$0xff]  ;;  %115 = vst.msk [vmem:[#allocation3 + $0x18] sm:$0xff] %vm111_vm3, %v3770_v9 }
  0x28   :  { %132 = vperm.xlu0 %3484, %v126_v2   ;;  %v192_v7 = vld [vmem:[%s4634_s8 + $0x18] sm:$0x3f]  ;;  %v191_v8 = vld [vmem:[%s4634_s8 + $0x10] sm:$0xff]  ;;  %v228_v10 = vld [vmem:[%s4634_s8 + $0x26] sm:$0x3f]  ;;  %116 = vst.msk [vmem:[#allocation3 + $0x20] sm:$0xff] %vm111_vm3, %v3770_v9 }
  0x29   :  { %v227_v11 = vld [vmem:[%s4634_s8 + $0x1e] sm:$0xff]  ;;  %v230_v12 = vld [vmem:[%s4634_s8 + $0x27] sm:$0x3f]  ;;  %v266_v14 = vld [vmem:[%s4634_s8 + $0x35] sm:$0x3f]  ;;  %117 = vst.msk [vmem:[#allocation3 + $0x28] sm:$0xff] %vm111_vm3, %v3770_v9 }
  0x2a   :  { %v229_v13 = vld [vmem:[%s4634_s8 + $0x1f] sm:$0xff]  ;;  %v265_v15 = vld [vmem:[%s4634_s8 + $0x2d] sm:$0xff]  ;;  %v268_v17 = vld [vmem:[%s4634_s8 + $0x36] sm:$0x3f]  ;;  %118 = vst.msk [vmem:[#allocation3 + $0x30] sm:$0xff] %vm111_vm3, %v3770_v9 }
  0x2b   :  { %155 = vperm.xlu1 %3485, %v129_v3   ;;  %v3989_v16 = vld [vmem:[%s4635_s3] sm:$0xff]   ;;  %v267_v18 = vld [vmem:[%s4634_s8 + $0x2e] sm:$0xff]  ;;  %s4639_s3 = sld [smem:[#allocation15_spill]]  ;;  %119 = vst.msk [vmem:[#allocation3 + $0x38] sm:$0xff] %vm111_vm3, %v3770_v9  ;;  %s4642_s8 = sld [smem:[#allocation18_spill]] }
  0x2c   :  { %137 = vperm.xlu0 %3484, %v127_v4   ;;  %3283 = vmatpush3.bf16.msra.mxu1 %v3989_v16  ;;  %v4008_v19 = vld [vmem:[%s4636_s4] ss:$0 sm:$0xff]  ;;  %121 = vst.msk [vmem:[#allocation3 + $0x40] sm:$0xf] %vm120_vm4, %v3770_v9  ;;  %s3773_s4 = smov [#allocation8]  }
  0x2d   :  { %3307 = vmatpush3.bf16.msra.mxu0 %v3989_v16  ;;  %3288 = vmatprep.subr.bf16.mxu1 %v3770_v9  ;;  %v4013_v20 = vld [vmem:[%s4637_s29] ss:$0 sm:$0xff] }
  0x2e   :  { %3312 = vmatprep.subr.bf16.mxu0 %v3770_v9  ;;  %v4020_v25 = vld [vmem:[%s4638_s6] ss:$0 sm:$0xff] }
  0x2f   :  { %200 = vperm.xlu1 %3485, %v190_v5   ;;  %v4050_v1 = vld [vmem:[%s4640_s9] sm:$0xff]  }
  0x30   :  { %195 = vperm.xlu0 %3484, %v189_v6  }
  0x31   :  { %v4025_v27 = vld [vmem:[%s4639_s3] ss:$0 sm:$0xff] }
  0x33   :  { %212 = vperm.xlu1 %3485, %v192_v7  }
  0x34   :  { %207 = vperm.xlu0 %3484, %v191_v8  }
  0x37   :  { %238 = vperm.xlu1 %3485, %v228_v10  }
  0x38   :  { %233 = vperm.xlu0 %3484, %v227_v11  }
  0x3b   :  { %250 = vperm.xlu1 %3485, %v230_v12  }
  0x3c   :  { %245 = vperm.xlu0 %3484, %v229_v13  }
  0x3f   :  { %276 = vperm.xlu1 %3485, %v266_v14  }
  0x40   :  { %271 = vperm.xlu0 %3484, %v265_v15  }
  0x43   :  { %288 = vperm.xlu1 %3485, %v268_v17  }
  0x44   :  { %283 = vperm.xlu0 %3484, %v267_v18  }
  0xa6   :  { %v151_v21 = vpop.permute.xlu1 %150 }
  0xa7   :  { %v133_v22 = vpop.permute.xlu0 %132  ;;  %v164_v23 = vmul.f32 %v4008_v19, %v151_v21 }
  0xa8   :  { %v146_v24 = vmul.f32 %v4013_v20, %v133_v22 }
  0xaa   :  { %v166_v26 = vadd.f32 %v164_v23, %v146_v24  ;;  %v156_v28 = vpop.permute.xlu1 %155 }
  0xab   :  { %v138_v29 = vpop.permute.xlu0 %137  ;;  %v165_v31 = vmul.f32 %v4008_v19, %v156_v28 }
  0xac   :  { %v174_v30 = vmul.f32 %v4020_v25, %v166_v26  ;;  %v147_v32 = vmul.f32 %v4013_v20, %v138_v29 }
  0xae   :  { %v182_v33 = vadd.f32 %v4025_v27, %v174_v30  ;;  %v167_v34 = vadd.f32 %v165_v31, %v147_v32  ;;  %v201_v35 = vpop.permute.xlu1 %200 }
  0xaf   :  { %v196_v36 = vpop.permute.xlu0 %195  ;;  %v204_v40 = vmul.f32 %v4013_v20, %v201_v35 }
  0xb0   :  { %v184_v37 = vmax.f32 %v182_v33, 0.0  ;;  %v175_v38 = vmul.f32 %v4020_v25, %v167_v34  ;;  %v203_v44 = vmul.f32 %v4013_v20, %v196_v36 }
  0xb2   :  { %v183_v39 = vadd.f32 %v4025_v27, %v175_v38  ;;  %186 = vst.msk [vmem:[#allocation2 + $0x1] sm:$0xff] %vm102_vm0, %v184_v37  ;;  %v213_v41 = vpop.permute.xlu1 %212 }
  0xb3   :  { %v208_v42 = vpop.permute.xlu0 %207  ;;  %v216_v45 = vmul.f32 %v4008_v19, %v213_v41 }
  0xb4   :  { %v185_v43 = vmax.f32 %v183_v39, 0.0  ;;  %v215_v46 = vmul.f32 %v4008_v19, %v208_v42 }
  0xb5   :  { %v218_v47 = vadd.f32 %v216_v45, %v204_v40 }
  0xb6   :  { %188 = vst.msk [vmem:[#allocation2 + $0x9] sm:$0x3f] %vm187_vm2, %v185_v43  ;;  %v217_v48 = vadd.f32 %v215_v46, %v203_v44  ;;  %v239_v49 = vpop.permute.xlu1 %238 }
  0xb7   :  { %v234_v50 = vpop.permute.xlu0 %233  ;;  %v220_v51 = vmul.f32 %v4020_v25, %v218_v47  ;;  %v242_v55 = vmul.f32 %v4013_v20, %v239_v49  ;;  %v4125_v49 = vld [vmem:[%s4641_s13] sm:$0xff]  }
  0xb8   :  { %v219_v52 = vmul.f32 %v4020_v25, %v217_v48  ;;  %v241_v56 = vmul.f32 %v4013_v20, %v234_v50  ;;  %v4134_v50 = vld [vmem:[%s4641_s13 + $0x8] sm:$0xff]   ;;  %s4645_s13 = sld [smem:[#allocation22_spill]] }
  0xb9   :  { %v222_v53 = vadd.f32 %v4025_v27, %v220_v51  ;;  %v312_v63 = vld [vmem:[#allocation2 + $0x1] sm:$0xff]  ;;  %v4144_v51 = vld [vmem:[%s4642_s8] ss:$0 sm:$0xff] }
  0xba   :  { %v221_v54 = vadd.f32 %v4025_v27, %v219_v52  ;;  %v251_v57 = vpop.permute.xlu1 %250  ;;  %v4149_v52 = vld [vmem:[%s4643_s11] ss:$0 sm:$0xff] }
  0xbb   :  { %v246_v58 = vpop.permute.xlu0 %245  ;;  %v224_v59 = vmax.f32 %v222_v53, 0.0  ;;  %v254_v61 = vmul.f32 %v4008_v19, %v251_v57 }
  0xbc   :  { %v223_v60 = vmax.f32 %v221_v54, 0.0  ;;  %v253_v62 = vmul.f32 %v4008_v19, %v246_v58 }
  0xbd   :  { %v313_v0 = vld [vmem:[#allocation2 + $0x9] sm:$0x7f]  ;;  %226 = vst.msk [vmem:[#allocation2 + $0x19] sm:$0x3f] %vm187_vm2, %v224_v59  ;;  %v256_v2 = vadd.f32 %v254_v61, %v242_v55 }
  0xbe   :  { %225 = vst.msk [vmem:[#allocation2 + $0x11] sm:$0xff] %vm102_vm0, %v223_v60  ;;  %v255_v3 = vadd.f32 %v253_v62, %v241_v56  ;;  %v314_v4 = vpack.c.bf16 %v313_v0, %v312_v63  ;;  %v277_v5 = vpop.permute.xlu1 %276  ;;  %v310_v26 = vld [vmem:[#allocation2 + $0x8] sm:$0x7f] }
  0xbf   :  { %v272_v6 = vpop.permute.xlu0 %271  ;;  %v258_v7 = vmul.f32 %v4020_v25, %v256_v2  ;;  %v280_v12 = vmul.f32 %v4013_v20, %v277_v5  ;;  %v4160_v2 = vld [vmem:[%s4644_s7] sm:$0xff]  }
  0xc0   :  { %v257_v8 = vmul.f32 %v4020_v25, %v255_v3  ;;  %3285 = vmatmul.mubr.msk.bf16.vlgmr.msra.gmra.mrb[0].mxu1 %vm102_vm0, %v314_v4  ;;  %v279_v13 = vmul.f32 %v4013_v20, %v272_v6  ;;  %v309_v20 = vld [vmem:[#allocation2] sm:$0xff] }
  0xc1   :  { %3289 = vmatpush3.bf16.msra.mxu1 %v4050_v1  ;;  %3290 = vmatprep.mubr.msk.bf16.mxu1 %vm3771_vm1, %v3770_v9  ;;  %v260_v10 = vadd.f32 %v4025_v27, %v258_v7  ;;  %v311_v32 = vpack.c.bf16 %v310_v26, %v309_v20 }
  0xc2   :  { %v259_v11 = vadd.f32 %v4025_v27, %v257_v8  ;;  %3294 = vmatprep.subr.bf16.mxu1 %v3770_v9  ;;  %v289_v14 = vpop.permute.xlu1 %288 }
  0xc3   :  { %v284_v15 = vpop.permute.xlu0 %283  ;;  %v262_v17 = vmax.f32 %v260_v10, 0.0  ;;  %v292_v21 = vmul.f32 %v4008_v19, %v289_v14 }
  0xc4   :  { %v261_v18 = vmax.f32 %v259_v11, 0.0  ;;  %v291_v22 = vmul.f32 %v4008_v19, %v284_v15  ;;  %v440_v36 = vld [vmem:[#allocation2 + $0x19] sm:$0x7f] }
  0xc5   :  { %264 = vst.msk [vmem:[#allocation2 + $0x29] sm:$0x3f] %vm187_vm2, %v262_v17  ;;  %v294_v23 = vadd.f32 %v292_v21, %v280_v12  ;;  %v436_v41 = vld [vmem:[#allocation2 + $0x10] sm:$0xff]  ;;  %v437_v42 = vld [vmem:[#allocation2 + $0x18] sm:$0x7f]  ;;  %v4170_v12 = vld [vmem:[%s4644_s7 + $0x8] sm:$0xff]  }
  0xc6   :  { %263 = vst.msk [vmem:[#allocation2 + $0x21] sm:$0xff] %vm102_vm0, %v261_v18  ;;  %v293_v24 = vadd.f32 %v291_v22, %v279_v13  ;;  %v438_v43 = vpack.c.bf16 %v437_v42, %v436_v41 }
  0xc7   :  { %v296_v28 = vmul.f32 %v4020_v25, %v294_v23 }
  0xc8   :  { %v295_v29 = vmul.f32 %v4020_v25, %v293_v24 }
  0xc9   :  { %v298_v30 = vadd.f32 %v4025_v27, %v296_v28 }
  0xca   :  { %v297_v31 = vadd.f32 %v4025_v27, %v295_v29  ;;  %v439_v27 = vld [vmem:[#allocation2 + $0x11] sm:$0xff] }
  0xcb   :  { %v300_v33 = vmax.f32 %v298_v30, 0.0  ;;  %v441_v37 = vpack.c.bf16 %v440_v36, %v439_v27 }
  0xcc   :  { %v299_v34 = vmax.f32 %v297_v31, 0.0  ;;  %3291 = vmatmul.mubr.msk.bf16.vlgmr.msra.gmra.mrb[0].mxu1 %vm102_vm0, %v311_v32  ;;  %v542_v35 = vld [vmem:[#allocation2 + $0x29] sm:$0x7f] }
  0xcd   :  { %3295 = vmatpush3.bf16.msra.mxu1 %v3989_v16  ;;  %v541_v19 = vld [vmem:[#allocation2 + $0x21] sm:$0xff]  ;;  %3296 = vmatprep.mubr.msk.bf16.mxu1 %vm3771_vm1, %v3770_v9  ;;  %302 = vst.msk [vmem:[#allocation2 + $0x39] sm:$0x3f] %vm187_vm2, %v300_v33 }
  0xce   :  { %301 = vst.msk [vmem:[#allocation2 + $0x31] sm:$0xff] %vm102_vm0, %v299_v34  ;;  %v543_v25 = vpack.c.bf16 %v542_v35, %v541_v19  ;;  %3300 = vmatprep.subr.bf16.mxu1 %v3770_v9  ;;  %v538_v38 = vld [vmem:[#allocation2 + $0x20] sm:$0xff]  ;;  %v539_v39 = vld [vmem:[#allocation2 + $0x28] sm:$0x7f] }
  0xcf   :  { %v540_v40 = vpack.c.bf16 %v539_v39, %v538_v38 }
  0xd0   :  { %3309 = vmatmul.mubr.msk.bf16.vlgmr.msra.gmra.mrb[0].mxu0 %vm102_vm0, %v543_v25 }
  0xd1   :  { %3313 = vmatpush3.bf16.msra.mxu0 %v4050_v1  ;;  %3314 = vmatprep.mubr.msk.bf16.mxu0 %vm3771_vm1, %v3770_v9 }
  0xd2   :  { %3330 = vmatprep.subr.bf16.mxu0 %v3770_v9 }
  0xd4   :  { %3297 = vmatmul.mubr.msk.bf16.vlgmr.msra.gmra.mrb[4].mxu1 %vm102_vm0, %v441_v37  ;;  %v644_v45 = vld [vmem:[#allocation2 + $0x39] sm:$0x7f] }
  0xd5   :  { %3301 = vmatpush3.bf16.msra.mxu1 %v4050_v1  ;;  %3302 = vmatprep.mubr.msk.bf16.mxu1 %vm3771_vm1, %v3770_v9  ;;  %v643_v44 = vld [vmem:[#allocation2 + $0x31] sm:$0xff] }
  0xd6   :  { %3318 = vmatprep.subr.bf16.mxu1 %v3770_v9  ;;  %v645_v46 = vpack.c.bf16 %v644_v45, %v643_v44  ;;  %v640_v47 = vld [vmem:[#allocation2 + $0x30] sm:$0xff]  ;;  %v641_v48 = vld [vmem:[#allocation2 + $0x38] sm:$0x7f] }
  0xdc   :  { %3315 = vmatmul.mubr.msk.bf16.vlgmr.msra.gmra.mrb[0].mxu0 %vm102_vm0, %v540_v40 }
  0xdd   :  { %3334 = vmatprep.mubr.msk.bf16.mxu0 %vm3771_vm1, %v3770_v9  ;;  %3331 = vmatpush3.bf16.msra.mxu0 %v4125_v49 }
  0xde   :  { %3332 = vmatprep.subr.bf16.mxu0 %v3770_v9 }
  0xe0   :  { %3303 = vmatmul.mubr.msk.bf16.vlgmr.msra.gmra.mrb[4].mxu1 %vm102_vm0, %v438_v43 }
  0xe1   :  { %3319 = vmatpush3.bf16.msra.mxu1 %v3989_v16  ;;  %3320 = vmatprep.mubr.msk.bf16.mxu1 %vm3771_vm1, %v3770_v9  ;;  %v642_v16 = vpack.c.bf16 %v641_v48, %v640_v47 }
  0xe2   :  { %3324 = vmatprep.subr.bf16.mxu1 %v3770_v9  ;;  %3333 = vmatpush3.bf16.msra.mxu0 %v4134_v50 }
  0xe3   :  { %3338 = vmatprep.subr.bf16.mxu0 %v3770_v9 }
  0xe8   :  { %3321 = vmatmul.mubr.msk.bf16.vlgmr.msra.gmra.mrb[8].mxu1 %vm102_vm0, %v645_v46 }
  0xe9   :  { %3325 = vmatpush3.bf16.msra.mxu1 %v4050_v1  ;;  %3326 = vmatprep.mubr.msk.bf16.mxu1 %vm3771_vm1, %v3770_v9 }
  0xea   :  { %3346 = vmatprep.subr.bf16.mxu1 %v3770_v9 }
  0xf4   :  { %3327 = vmatmul.mubr.msk.bf16.vlgmr.msra.gmra.mrb[8].mxu1 %vm102_vm0, %v642_v16 }
  0xf5   :  { %3350 = vmatprep.mubr.msk.bf16.mxu1 %vm3771_vm1, %v3770_v9  ;;  %3347 = vmatpush3.bf16.msra.mxu1 %v4125_v49 }
  0xf6   :  { %3348 = vmatprep.subr.bf16.mxu1 %v3770_v9 }
  0xf9   :  { %3349 = vmatpush3.bf16.msra.mxu1 %v4134_v50 }
  0xfa   :  { %3354 = vmatprep.subr.bf16.mxu1 %v3770_v9 }
 0x19f   :  { %v408_v53 = vpop.f32.mrb[0].mxu1 }
 0x1a0   :  { %v421_v54 = vmul.f32 %v4144_v51, %v408_v53  ;;  %v3292_v55 = vpop.f32.mrb[1].mxu1 }
 0x1a1   :  { %v411_v56 = vpop.f32.mrb[2].mxu1 }
 0x1a2   :  { %v429_v57 = vadd.f32 %v4149_v52, %v421_v54  ;;  %v422_v58 = vmul.f32 %v4144_v51, %v411_v56  ;;  %v3293_v59 = vpop.f32.mrb[3].mxu1 }
 0x1a3   :  { %v3495_v59 = vld [vmem:[#allocation5 + $0x110] ss:$8 sps:$4 sm:$0xff]  }
 0x1a4   :  { %v431_v60 = vmax.f32 %v429_v57, 0.0  ;;  %v430_v61 = vadd.f32 %v4149_v52, %v422_v58  ;;  %v3494_v57 = vld [vmem:[#allocation5 + $0x104] ss:$8 sps:$4 sm:$0xff]   ;;  %v3497_v58 = vld [vmem:[#allocation5 + $0x114] ss:$8 sps:$4 sm:$0xff]  }
 0x1a6   :  { %v432_v62 = vmax.f32 %v430_v61, 0.0  ;;  %433 = vst.msk [vmem:[#allocation3 + $0x1] sm:$0xff] %vm111_vm3, %v431_v60  ;;  %v3500_v60 = vld [vmem:[#allocation5 + $0x124] ss:$8 sps:$4 sm:$0xff]   ;;  %v3498_v61 = vld [vmem:[#allocation5 + $0x120] ss:$8 sps:$4 sm:$0xff]  }
 0x1a8   :  { %435 = vst.msk [vmem:[#allocation3 + $0x9] sm:$0x7f] %vm434_vm5, %v432_v62  ;;  %v4230_v62 = vld [vmem:[%s4645_s13] ss:$0 sm:$0xff] }
 0x1ad   :  { %v755_v0 = vld [vmem:[#allocation3 + $0x1] sm:$0xff] }
 0x1ae   :  { %v752_v30 = vld [vmem:[#allocation3] sm:$0xff] }
 0x1af   :  { %v625_v63 = vpop.f32.mrb[0].mxu0  ;;  %v756_v1 = vld [vmem:[#allocation3 + $0x9] sm:$0xff] }
 0x1b0   :  { %v632_v3 = vmul.f32 %v4144_v51, %v625_v63  ;;  %v3316_v4 = vpop.f32.mrb[1].mxu0  ;;  %v757_v5 = vpack.c.bf16 %v756_v1, %v755_v0  ;;  %v753_v29 = vld [vmem:[#allocation3 + $0x8] sm:$0xff]  ;;  %v3501_v63 = vld [vmem:[#allocation5 + $0x130] ss:$8 sps:$4 sm:$0xff]   ;;  %v3503_v0 = vld [vmem:[#allocation5 + $0x134] ss:$8 sps:$4 sm:$0xff]  }
 0x1b1   :  { %v628_v6 = vpop.f32.mrb[2].mxu0  ;;  %v754_v31 = vpack.c.bf16 %v753_v29, %v752_v30  ;;  %v3506_v1 = vld [vmem:[#allocation5 + $0x144] ss:$8 sps:$4 sm:$0xff]  }
 0x1b2   :  { %v634_v7 = vadd.f32 %v4149_v52, %v632_v3  ;;  %v633_v8 = vmul.f32 %v4144_v51, %v628_v6  ;;  %v3317_v10 = vpop.f32.mrb[3].mxu0  ;;  %3335 = vmatmul.mubr.msk.bf16.vlgmr.msra.gmra.mrb[4].mxu0 %vm111_vm3, %v757_v5  ;;  %v3504_v6 = vld [vmem:[#allocation5 + $0x140] ss:$8 sps:$4 sm:$0xff]  }
 0x1b3   :  { %v523_v11 = vpop.f32.mrb[4].mxu1  ;;  %3339 = vmatpush3.bf16.msra.mxu0 %v4160_v2  ;;  %3342 = vmatprep.mubr.msk.bf16.mxu0 %vm3771_vm1, %v3770_v9 }
 0x1b4   :  { %v636_v13 = vmax.f32 %v634_v7, 0.0  ;;  %v635_v14 = vadd.f32 %v4149_v52, %v633_v8  ;;  %v530_v15 = vmul.f32 %v4144_v51, %v523_v11  ;;  %v3304_v17 = vpop.f32.mrb[5].mxu1  ;;  %3340 = vmatprep.subr.bf16.mxu0 %v3770_v9  ;;  %v3509_v8 = vld [vmem:[#allocation5 + $0x154] ss:$8 sps:$4 sm:$0xff]  }
 0x1b5   :  { %v526_v18 = vpop.f32.mrb[6].mxu1  ;;  %v3512_v17 = vld [vmem:[#allocation5 + $0x164] ss:$8 sps:$4 sm:$0xff]  }
 0x1b6   :  { %638 = vst.msk [vmem:[#allocation3 + $0x23] sm:$0xff] %vm111_vm3, %v636_v13  ;;  %v637_v21 = vmax.f32 %v635_v14, 0.0  ;;  %v532_v22 = vadd.f32 %v4149_v52, %v530_v15  ;;  %v531_v23 = vmul.f32 %v4144_v51, %v526_v18  ;;  %v3305_v24 = vpop.f32.mrb[7].mxu1  ;;  %v3507_v15 = vld [vmem:[#allocation5 + $0x150] ss:$8 sps:$4 sm:$0xff]  }
 0x1b7   :  { %3341 = vmatpush3.bf16.msra.mxu0 %v4170_v12 }
 0x1b8   :  { %639 = vst.msk [vmem:[#allocation3 + $0x2b] sm:$0x7f] %vm434_vm5, %v637_v21  ;;  %v534_v26 = vmax.f32 %v532_v22, 0.0  ;;  %v533_v28 = vadd.f32 %v4149_v52, %v531_v23  ;;  %3362 = vmatprep.subr.bf16.mxu0 %v3770_v9 }
 0x1ba   :  { %536 = vst.msk [vmem:[#allocation3 + $0x12] sm:$0xff] %vm111_vm3, %v534_v26  ;;  %v535_v20 = vmax.f32 %v533_v28, 0.0  ;;  %v3510_v26 = vld [vmem:[#allocation5 + $0x160] ss:$8 sps:$4 sm:$0xff]  }
 0x1bc   :  { %537 = vst.msk [vmem:[#allocation3 + $0x1a] sm:$0x7f] %vm434_vm5, %v535_v20  ;;  %v3515_v20 = vld [vmem:[#allocation5 + $0x174] ss:$8 sps:$4 sm:$0xff]  }
 0x1bd   :  { %v1141_v19 = vld [vmem:[#allocation3 + $0x23] sm:$0xff] }
 0x1be   :  { %3343 = vmatmul.mubr.msk.bf16.vlgmr.msra.gmra.mrb[4].mxu0 %vm111_vm3, %v754_v31  ;;  %v1138_v48 = vld [vmem:[#allocation3 + $0x22] sm:$0xff] }
 0x1bf   :  { %3363 = vmatpush3.bf16.msra.mxu0 %v4125_v49  ;;  %3366 = vmatprep.mubr.msk.bf16.mxu0 %vm3771_vm1, %v3770_v9  ;;  %v1142_v32 = vld [vmem:[#allocation3 + $0x2b] sm:$0xff] }
 0x1c0   :  { %3364 = vmatprep.subr.bf16.mxu0 %v3770_v9  ;;  %v1143_v25 = vpack.c.bf16 %v1142_v32, %v1141_v19  ;;  %v1139_v45 = vld [vmem:[#allocation3 + $0x2a] sm:$0xff]  ;;  %v3513_v32 = vld [vmem:[#allocation5 + $0x170] ss:$8 sps:$4 sm:$0xff]  }
 0x1c1   :  { %v967_v33 = vld [vmem:[#allocation3 + $0x12] sm:$0xff] }
 0x1c2   :  { %v964_v47 = vld [vmem:[#allocation3 + $0x11] sm:$0xff] }
 0x1c3   :  { %3365 = vmatpush3.bf16.msra.mxu0 %v4134_v50  ;;  %v968_v34 = vld [vmem:[#allocation3 + $0x1a] sm:$0xff] }
 0x1c4   :  { %v969_v35 = vpack.c.bf16 %v968_v34, %v967_v33  ;;  %3370 = vmatprep.subr.bf16.mxu0 %v3770_v9  ;;  %v965_v44 = vld [vmem:[#allocation3 + $0x19] sm:$0xff]  ;;  %v3516_v33 = vld [vmem:[#allocation5 + $0x180] ss:$8 sps:$4 sm:$0xff]   ;;  %v3518_v34 = vld [vmem:[#allocation5 + $0x184] ss:$8 sps:$4 sm:$0xff]  }
 0x1c5   :  { %v966_v16 = vpack.c.bf16 %v965_v44, %v964_v47 }
 0x1c6   :  { %3351 = vmatmul.mubr.msk.bf16.vlgmr.msra.gmra.mrb[12].mxu1 %vm111_vm3, %v969_v35  ;;  %3367 = vmatmul.mubr.msk.bf16.vlgmr.msra.gmra.mrb[8].mxu0 %vm111_vm3, %v1143_v25 }
 0x1c7   :  { %3355 = vmatpush3.bf16.msra.mxu1 %v4160_v2  ;;  %v727_v27 = vpop.f32.mrb[8].mxu1  ;;  %3371 = vmatpush3.bf16.msra.mxu0 %v4160_v2 }
 0x1c8   :  { %v734_v36 = vmul.f32 %v4144_v51, %v727_v27  ;;  %v3328_v37 = vpop.f32.mrb[9].mxu1  ;;  %3356 = vmatprep.subr.bf16.mxu1 %v3770_v9  ;;  %3372 = vmatprep.subr.bf16.mxu0 %v3770_v9 }
 0x1c9   :  { %v730_v38 = vpop.f32.mrb[10].mxu1  ;;  %3358 = vmatprep.mubr.msk.bf16.mxu1 %vm3771_vm1, %v3770_v9  ;;  %3374 = vmatprep.mubr.msk.bf16.mxu0 %vm3771_vm1, %v3770_v9 }
 0x1ca   :  { %v736_v39 = vadd.f32 %v4149_v52, %v734_v36  ;;  %v735_v40 = vmul.f32 %v4144_v51, %v730_v38  ;;  %v3329_v41 = vpop.f32.mrb[11].mxu1  ;;  %v1140_v51 = vpack.c.bf16 %v1139_v45, %v1138_v48  ;;  %v3524_v48 = vld [vmem:[#allocation5 + $0x1a4] ss:$8 sps:$4 sm:$0xff]  }
 0x1cb   :  { %3357 = vmatpush3.bf16.msra.mxu1 %v4170_v12  ;;  %3373 = vmatpush3.bf16.msra.mxu0 %v4170_v12  ;;  %v3521_v41 = vld [vmem:[#allocation5 + $0x194] ss:$8 sps:$4 sm:$0xff]  }
 0x1cc   :  { %v738_v42 = vmax.f32 %v736_v39, 0.0  ;;  %v737_v43 = vadd.f32 %v4149_v52, %v735_v40  ;;  %3378 = vmatprep.subr.bf16.mxu1 %v3770_v9  ;;  %2319 = vmatprep.subr.bf16.mxu0 %v3494_v57  ;;  %v3519_v40 = vld [vmem:[#allocation5 + $0x190] ss:$8 sps:$4 sm:$0xff]  }
 0x1ce   :  { %740 = vst.msk [vmem:[#allocation3 + $0x34] sm:$0xff] %vm111_vm3, %v738_v42  ;;  %v739_v46 = vmax.f32 %v737_v43, 0.0 }
 0x1d0   :  { %741 = vst.msk [vmem:[#allocation3 + $0x3c] sm:$0x7f] %vm434_vm5, %v739_v46 }
 0x1d2   :  { %3359 = vmatmul.mubr.msk.bf16.vlgmr.msra.gmra.mrb[12].mxu1 %vm111_vm3, %v966_v16  ;;  %3375 = vmatmul.mubr.msk.bf16.vlgmr.msra.gmra.mrb[8].mxu0 %vm111_vm3, %v1140_v51  ;;  %v3528_v16 = vld [vmem:[#allocation5] ss:$8 sps:$4 sm:$0xff]  }
 0x1d3   :  { %3379 = vmatpush3.bf16.msra.mxu1 %v4125_v49  ;;  %3382 = vmatprep.mubr.msk.bf16.mxu1 %vm3771_vm1, %v3770_v9 }
 0x1d4   :  { %3380 = vmatprep.subr.bf16.mxu1 %v3770_v9 }
 0x1d5   :  { %v1315_v52 = vld [vmem:[#allocation3 + $0x34] sm:$0xff] }
 0x1d6   :  { %v1312_v55 = vld [vmem:[#allocation3 + $0x33] sm:$0xff] }
 0x1d7   :  { %3381 = vmatpush3.bf16.msra.mxu1 %v4134_v50  ;;  %v1316_v53 = vld [vmem:[#allocation3 + $0x3c] sm:$0xff]  ;;  %v3492_v50 = vld [vmem:[#allocation5 + $0x100] ss:$8 sps:$4 sm:$0xff]  }
 0x1d8   :  { %3386 = vmatprep.subr.bf16.mxu1 %v3770_v9  ;;  %v1317_v54 = vpack.c.bf16 %v1316_v53, %v1315_v52  ;;  %v1313_v49 = vld [vmem:[#allocation3 + $0x3b] sm:$0xff]  ;;  %2320 = vmatpush1.bf16.msra.mxu0 %v3492_v50 }
 0x1d9   :  { %v1314_v56 = vpack.c.bf16 %v1313_v49, %v1312_v55  ;;  %2321 = vmatprep.subr.bf16.mxu0 %v3497_v58  ;;  %v3522_v49 = vld [vmem:[#allocation5 + $0x1a0] ss:$8 sps:$4 sm:$0xff]   ;;  %v3530_v55 = vld [vmem:[#allocation5 + $0x4] ss:$8 sps:$4 sm:$0xff]   ;;  %v3536_v50 = vld [vmem:[#allocation5 + $0x14] ss:$8 sps:$4 sm:$0xff]  }
 0x1da   :  { %3383 = vmatmul.mubr.msk.bf16.vlgmr.msra.gmra.mrb[16].mxu1 %vm111_vm3, %v1317_v54 }
 0x1db   :  { %3387 = vmatpush3.bf16.msra.mxu1 %v4160_v2  ;;  %3390 = vmatprep.mubr.msk.bf16.mxu1 %vm3771_vm1, %v3770_v9  ;;  %v4235_v2 = vld [vmem:[%s4603_s12] ss:$0 sm:$0xff]  ;;  %s3772_s12 = smov 64  }
 0x1dc   :  { %3388 = vmatprep.subr.bf16.mxu1 %v3770_v9  ;;  %2322 = vmatpush1.bf16.msra.mxu0 %v3495_v59 }
 0x1dd   :  { %2323 = vmatprep.subr.bf16.mxu0 %v3500_v60 }
 0x1df   :  { %3389 = vmatpush3.bf16.msra.mxu1 %v4170_v12 }
 0x1e0   :  { %2324 = vmatpush1.bf16.msra.mxu0 %v3498_v61  ;;  %2278 = vmatprep.subr.bf16.mxu1 %v3530_v55  ;;  %v3534_v61 = vld [vmem:[#allocation5 + $0x10] ss:$8 sps:$4 sm:$0xff]  }
 0x1e1   :  { %2325 = vmatprep.subr.bf16.mxu0 %v3503_v0 }
 0x1e4   :  { %2326 = vmatpush1.bf16.msra.mxu0 %v3501_v63 }
 0x1e5   :  { %2327 = vmatprep.subr.bf16.mxu0 %v3506_v1  ;;  %v3525_v1 = vld [vmem:[#allocation5 + $0x1b0] ss:$8 sps:$4 sm:$0xff]  }
 0x1e6   :  { %3391 = vmatmul.mubr.msk.bf16.vlgmr.msra.gmra.mrb[16].mxu1 %vm111_vm3, %v1314_v56  ;;  %v3527_v56 = vld [vmem:[#allocation5 + $0x1b4] ss:$8 sps:$4 sm:$0xff]  }
 0x1e7   :  { %2279 = vmatpush1.bf16.msra.mxu1 %v3528_v16 }
 0x1e8   :  { %2328 = vmatpush1.bf16.msra.mxu0 %v3504_v6  ;;  %2280 = vmatprep.subr.bf16.mxu1 %v3536_v50  ;;  %v3565_v50 = vld [vmem:[#allocation5 + $0x60] ss:$8 sps:$4 sm:$0xff]  }
 0x1e9   :  { %2329 = vmatprep.subr.bf16.mxu0 %v3509_v8 }
 0x1eb   :  { %2281 = vmatpush1.bf16.msra.mxu1 %v3534_v61 }
 0x1ec   :  { %2330 = vmatpush1.bf16.msra.mxu0 %v3507_v15 }
 0x1ed   :  { %2331 = vmatprep.subr.bf16.mxu0 %v3512_v17  ;;  %v3531_v17 = vld [vmem:[#allocation5 + $0x1c0] ss:$8 sps:$4 sm:$0xff]  }
 0x1f0   :  { %2332 = vmatpush1.bf16.msra.mxu0 %v3510_v26  ;;  %v3540_v26 = vld [vmem:[#allocation5 + $0x20] ss:$8 sps:$4 sm:$0xff]  }
 0x1f1   :  { %2333 = vmatprep.subr.bf16.mxu0 %v3515_v20 }
 0x1f4   :  { %2334 = vmatpush1.bf16.msra.mxu0 %v3513_v32 }
 0x1f5   :  { %2335 = vmatprep.subr.bf16.mxu0 %v3518_v34  ;;  %v3545_v34 = vld [vmem:[#allocation5 + $0x1e4] ss:$8 sps:$4 sm:$0xff]  }
 0x1f8   :  { %2336 = vmatpush1.bf16.msra.mxu0 %v3516_v33  ;;  %v3543_v33 = vld [vmem:[#allocation5 + $0x1e0] ss:$8 sps:$4 sm:$0xff]  }
 0x1f9   :  { %2337 = vmatprep.subr.bf16.mxu0 %v3521_v41  ;;  %v3552_v41 = vld [vmem:[#allocation5 + $0x40] ss:$8 sps:$4 sm:$0xff]  }
 0x1fc   :  { %2338 = vmatpush1.bf16.msra.mxu0 %v3519_v40  ;;  %v3551_v40 = vld [vmem:[#allocation5 + $0x1f4] ss:$8 sps:$4 sm:$0xff]  }
 0x1fd   :  { %2339 = vmatprep.subr.bf16.mxu0 %v3524_v48  ;;  %v3558_v48 = vld [vmem:[#allocation5 + $0x204] ss:$8 sps:$4 sm:$0xff]  }
 0x200   :  { %2340 = vmatpush1.bf16.msra.mxu0 %v3522_v49 }
 0x201   :  { %2341 = vmatprep.subr.bf16.mxu0 %v3527_v56 }
 0x204   :  { %2342 = vmatpush1.bf16.msra.mxu0 %v3525_v1 }
 0x291   :  { %v863_v3 = vpop.f32.mrb[4].mxu0 }
 0x292   :  { %v876_v4 = vmul.f32 %v4230_v62, %v863_v3  ;;  %v3344_v5 = vpop.f32.mrb[5].mxu0  ;;  %v3533_v3 = vld [vmem:[#allocation5 + $0x1c4] ss:$8 sps:$4 sm:$0xff]  }
 0x293   :  { %v866_v7 = vpop.f32.mrb[6].mxu0  ;;  %2343 = vmatprep.subr.bf16.mxu0 %v3533_v3  ;;  %v3577_v3 = vld [vmem:[#allocation5 + $0x80] ss:$8 sps:$4 sm:$0xff]  }
 0x294   :  { %v884_v10 = vadd.f32 %v4235_v2, %v876_v4  ;;  %v877_v11 = vmul.f32 %v4230_v62, %v866_v7  ;;  %v3345_v12 = vpop.f32.mrb[7].mxu0  ;;  %2344 = vmatpush1.bf16.msra.mxu0 %v3531_v17 }
 0x296   :  { %v4240_v13 = vmax.f32 %v884_v10, 0.0  ;;  %v885_v14 = vadd.f32 %v4235_v2, %v877_v11 }
 0x298   :  { %v4243_v18 = vmax.f32 %v885_v14, 0.0  ;;  %v908_v21 = vcombine.high %v4240_v13, %v4240_v13  ;;  %889 = vst.msk [vmem:[#allocation4] sm:$0x1] %vm888_vm6, %v4240_v13  ;;  %v2983_v22 = vrot.slane %v4240_v13, 10 }
 0x29a   :  { %v2987_v23 = vrot.slane %v908_v21, 11  ;;  %v2985_v24 = vrot.slane %v908_v21, 9  ;;  %910 = vst.msk [vmem:[#allocation4 + $0x8] sm:$0x1] %vm888_vm6, %v908_v21  ;;  %927 = vst.msk [vmem:[#allocation4 + $0x10] sm:$0x1] %vm888_vm6, %v4243_v18  ;;  %v4255_v28 = vcombine.high %v4243_v18, %v4243_v18 }
 0x29b   :  { %v2986_v29 = vrot.slane %v908_v21, 10  ;;  %v2989_v30 = vrot.slane %v4243_v18, 10  ;;  %901 = vst.msk [vmem:[#allocation4 + $0x4] sm:$0x1] %vm888_vm6, %v2983_v22  ;;  %v2990_v55 = vrot.slane %v4243_v18, 11  ;;  %v2988_v56 = vrot.slane %v4243_v18, 9 }
 0x29c   :  { %923 = vrot.lane.b32.xlu1 %v2987_v23, %s3772_s12  ;;  %913 = vrot.lane.b32.xlu0 %v2985_v24, %s3772_s12  ;;  %947 = vst.msk [vmem:[#allocation4 + $0x18] sm:$0x1] %vm888_vm6, %v4255_v28  ;;  %v2992_v31 = vrot.slane %v4255_v28, 10  ;;  %v3537_v23 = vld [vmem:[#allocation5 + $0x1d0] ss:$8 sps:$4 sm:$0xff]   ;;  %v2991_v17 = vrot.slane %v4255_v28, 9 }
 0x29d   :  { %920 = vst.msk [vmem:[#allocation4 + $0xc] sm:$0x1] %vm888_vm6, %v2986_v29  ;;  %938 = vst.msk [vmem:[#allocation4 + $0x14] sm:$0x1] %vm888_vm6, %v2989_v30  ;;  %v3539_v24 = vld [vmem:[#allocation5 + $0x1d4] ss:$8 sps:$4 sm:$0xff]  }
 0x29e   :  { %957 = vst.msk [vmem:[#allocation4 + $0x1c] sm:$0x1] %vm888_vm6, %v2992_v31  ;;  %v3542_v29 = vld [vmem:[#allocation5 + $0x24] ss:$8 sps:$4 sm:$0xff]   ;;  %2345 = vmatprep.subr.bf16.mxu0 %v3539_v24  ;;  %v3573_v18 = vld [vmem:[#allocation5 + $0x74] ss:$8 sps:$4 sm:$0xff]  }
 0x29f   :  { %2282 = vmatprep.subr.bf16.mxu1 %v3542_v29  ;;  %2346 = vmatpush1.bf16.msra.mxu0 %v3537_v23  ;;  %v3602_v24 = vld [vmem:[#allocation5 + $0xc0] ss:$8 sps:$4 sm:$0xff]  }
 0x2a0   :  { %2283 = vmatpush1.bf16.msra.mxu1 %v3540_v26  ;;  %2347 = vmatprep.subr.bf16.mxu0 %v3545_v34 }
 0x2a3   :  { %2348 = vmatpush1.bf16.msra.mxu0 %v3543_v33 }
 0x2a4   :  { %2349 = vmatprep.subr.bf16.mxu0 %v3551_v40 }
 0x2a5   :  { %v1051_v19 = vpop.f32.mrb[12].mxu1  ;;  %v1225_v35 = vpop.f32.mrb[8].mxu0 }
 0x2a6   :  { %v1058_v25 = vmul.f32 %v4230_v62, %v1051_v19  ;;  %v1232_v27 = vmul.f32 %v4230_v62, %v1225_v35  ;;  %v3360_v36 = vpop.f32.mrb[13].mxu1  ;;  %v3376_v37 = vpop.f32.mrb[9].mxu0 }
 0x2a7   :  { %v1054_v38 = vpop.f32.mrb[14].mxu1  ;;  %v1228_v39 = vpop.f32.mrb[10].mxu0  ;;  %v3548_v36 = vld [vmem:[#allocation5 + $0x34] ss:$8 sps:$4 sm:$0xff]  }
 0x2a8   :  { %v1060_v42 = vadd.f32 %v4235_v2, %v1058_v25  ;;  %v1234_v43 = vadd.f32 %v4235_v2, %v1232_v27  ;;  %v1059_v44 = vmul.f32 %v4230_v62, %v1054_v38  ;;  %v1233_v45 = vmul.f32 %v4230_v62, %v1228_v39  ;;  %v3361_v46 = vpop.f32.mrb[15].mxu1  ;;  %v3377_v47 = vpop.f32.mrb[11].mxu0  ;;  %v3546_v27 = vld [vmem:[#allocation5 + $0x30] ss:$8 sps:$4 sm:$0xff]   ;;  %2284 = vmatprep.subr.bf16.mxu1 %v3548_v36 }
 0x2a9   :  { %2285 = vmatpush1.bf16.msra.mxu1 %v3546_v27  ;;  %v3549_v39 = vld [vmem:[#allocation5 + $0x1f0] ss:$8 sps:$4 sm:$0xff]  }
 0x2aa   :  { %v4273_v51 = vmax.f32 %v1060_v42, 0.0  ;;  %v4275_v52 = vmax.f32 %v1234_v43, 0.0  ;;  %v1061_v53 = vadd.f32 %v4235_v2, %v1059_v44  ;;  %v1235_v54 = vadd.f32 %v4235_v2, %v1233_v45  ;;  %2350 = vmatpush1.bf16.msra.mxu0 %v3549_v39 }
 0x2ab   :  { %2360 = vmatprep.subr.bf16.mxu0 %v3558_v48 }
 0x2ac   :  { %v4279_v57 = vmax.f32 %v1061_v53, 0.0  ;;  %v4281_v58 = vmax.f32 %v1235_v54, 0.0  ;;  %v1082_v59 = vcombine.high %v4273_v51, %v4273_v51  ;;  %v1256_v60 = vcombine.high %v4275_v52, %v4275_v52  ;;  %1064 = vst.msk [vmem:[#allocation4 + $0x1] sm:$0x1] %vm888_vm6, %v4273_v51  ;;  %1238 = vst.msk [vmem:[#allocation4 + $0x2] sm:$0x1] %vm888_vm6, %v4275_v52 }
 0x2ad   :  { %v2997_v11 = vrot.slane %v4273_v51, 10  ;;  %v3011_v12 = vrot.slane %v4275_v52, 10  ;;  %v3559_v53 = vld [vmem:[#allocation5 + $0x50] ss:$8 sps:$4 sm:$0xff]   ;;  %v3561_v54 = vld [vmem:[#allocation5 + $0x54] ss:$8 sps:$4 sm:$0xff]  }
 0x2ae   :  { %v3001_v63 = vrot.slane %v1082_v59, 11  ;;  %v2999_v0 = vrot.slane %v1082_v59, 9  ;;  %1084 = vst.msk [vmem:[#allocation4 + $0x9] sm:$0x1] %vm888_vm6, %v1082_v59  ;;  %1101 = vst.msk [vmem:[#allocation4 + $0x11] sm:$0x1] %vm888_vm6, %v4279_v57  ;;  %v4301_v4 = vcombine.high %v4279_v57, %v4279_v57  ;;  %v4305_v5 = vcombine.high %v4281_v58, %v4281_v58 }
 0x2af   :  { %1258 = vst.msk [vmem:[#allocation4 + $0xa] sm:$0x1] %vm888_vm6, %v1256_v60  ;;  %1275 = vst.msk [vmem:[#allocation4 + $0x12] sm:$0x1] %vm888_vm6, %v4281_v58  ;;  %v3000_v6 = vrot.slane %v1082_v59, 10  ;;  %v3014_v7 = vrot.slane %v1256_v60, 10 }
 0x2b0   :  { %1097 = vrot.lane.b32.xlu1 %v3001_v63, %s3772_s12  ;;  %1087 = vrot.lane.b32.xlu0 %v2999_v0, %s3772_s12  ;;  %v3003_v8 = vrot.slane %v4279_v57, 10  ;;  %v3017_v10 = vrot.slane %v4281_v58, 10  ;;  %v3015_v14 = vrot.slane %v1256_v60, 11  ;;  %v3013_v15 = vrot.slane %v1256_v60, 9  ;;  %1121 = vst.msk [vmem:[#allocation4 + $0x19] sm:$0x1] %vm888_vm6, %v4301_v4 }
 0x2b1   :  { %1295 = vst.msk [vmem:[#allocation4 + $0x1a] sm:$0x1] %vm888_vm6, %v4305_v5  ;;  %1094 = vst.msk [vmem:[#allocation4 + $0xd] sm:$0x1] %vm888_vm6, %v3000_v6  ;;  %v3006_v21 = vrot.slane %v4301_v4, 10  ;;  %v3020_v22 = vrot.slane %v4305_v5, 10 }
 0x2b2   :  { %1268 = vst.msk [vmem:[#allocation4 + $0xe] sm:$0x1] %vm888_vm6, %v3014_v7  ;;  %1112 = vst.msk [vmem:[#allocation4 + $0x15] sm:$0x1] %vm888_vm6, %v3003_v8  ;;  %v3567_v59 = vld [vmem:[#allocation5 + $0x64] ss:$8 sps:$4 sm:$0xff]  }
 0x2b3   :  { %1286 = vst.msk [vmem:[#allocation4 + $0x16] sm:$0x1] %vm888_vm6, %v3017_v10  ;;  %1075 = vst.msk [vmem:[#allocation4 + $0x5] sm:$0x1] %vm888_vm6, %v2997_v11  ;;  %v3004_v60 = vrot.slane %v4279_v57, 11  ;;  %v3002_v61 = vrot.slane %v4279_v57, 9 }
 0x2b4   :  { %1249 = vst.msk [vmem:[#allocation4 + $0x6] sm:$0x1] %vm888_vm6, %v3011_v12  ;;  %1271 = vrot.lane.b32.xlu1 %v3015_v14, %s3772_s12  ;;  %1261 = vrot.lane.b32.xlu0 %v3013_v15, %s3772_s12  ;;  %1131 = vst.msk [vmem:[#allocation4 + $0x1d] sm:$0x1] %vm888_vm6, %v3006_v21  ;;  %v3571_v63 = vld [vmem:[#allocation5 + $0x70] ss:$8 sps:$4 sm:$0xff]  }
 0x2b5   :  { %1305 = vst.msk [vmem:[#allocation4 + $0x1e] sm:$0x1] %vm888_vm6, %v3020_v22  ;;  %v3018_v0 = vrot.slane %v4281_v58, 11  ;;  %v3016_v1 = vrot.slane %v4281_v58, 9  ;;  %v3579_v57 = vld [vmem:[#allocation5 + $0x84] ss:$8 sps:$4 sm:$0xff]  }
 0x2b6   :  { %v3584_v8 = vld [vmem:[#allocation5 + $0x90] ss:$8 sps:$4 sm:$0xff]   ;;  %v3586_v10 = vld [vmem:[#allocation5 + $0x94] ss:$8 sps:$4 sm:$0xff]   ;;  %v2984_v58 = vrot.slane %v4240_v13, 11  ;;  %v2982_v11 = vrot.slane %v4240_v13, 9 }
 0x2b7   :  { %v3590_v12 = vld [vmem:[#allocation5 + $0xa0] ss:$8 sps:$4 sm:$0xff]   ;;  %v3592_v14 = vld [vmem:[#allocation5 + $0xa4] ss:$8 sps:$4 sm:$0xff]   ;;  %v2993_v15 = vrot.slane %v4255_v28, 11  ;;  %v2998_v22 = vrot.slane %v4273_v51, 11 }
 0x2b8   :  { %v3596_v21 = vld [vmem:[#allocation5 + $0xb0] ss:$8 sps:$4 sm:$0xff]   ;;  %v3598_v13 = vld [vmem:[#allocation5 + $0xb4] ss:$8 sps:$4 sm:$0xff]   ;;  %v2996_v23 = vrot.slane %v4273_v51, 9  ;;  %v3007_v26 = vrot.slane %v4301_v4, 11 }
 0x2b9   :  { %v1399_v20 = vpop.f32.mrb[16].mxu1  ;;  %v3604_v28 = vld [vmem:[#allocation5 + $0xc4] ss:$8 sps:$4 sm:$0xff]   ;;  %v3005_v29 = vrot.slane %v4301_v4, 9  ;;  %v3610_v51 = vld [vmem:[#allocation5 + $0xd4] ss:$8 sps:$4 sm:$0xff]  }
 0x2ba   :  { %v1406_v30 = vmul.f32 %v4230_v62, %v1399_v20  ;;  %v3392_v31 = vpop.f32.mrb[17].mxu1  ;;  %v3608_v20 = vld [vmem:[#allocation5 + $0xd0] ss:$8 sps:$4 sm:$0xff]   ;;  %v3616_v4 = vld [vmem:[#allocation5 + $0xe4] ss:$8 sps:$4 sm:$0xff]   ;;  %v3021_v33 = vrot.slane %v4305_v5, 11 }
 0x2bb   :  { %v1402_v32 = vpop.f32.mrb[18].mxu1  ;;  %v3010_v31 = vrot.slane %v4275_v52, 9  ;;  %v3019_v34 = vrot.slane %v4305_v5, 9 }
 0x2bc   :  { %v1408_v19 = vadd.f32 %v4235_v2, %v1406_v30  ;;  %v1407_v35 = vmul.f32 %v4230_v62, %v1402_v32  ;;  %v3393_v25 = vpop.f32.mrb[19].mxu1  ;;  %v3554_v62 = vld [vmem:[#allocation5 + $0x44] ss:$8 sps:$4 sm:$0xff]   ;;  %v3012_v30 = vrot.slane %v4275_v52, 11  ;;  %v3614_v32 = vld [vmem:[#allocation5 + $0xe0] ss:$8 sps:$4 sm:$0xff]  }
 0x2bd   :  { %2286 = vmatprep.subr.bf16.mxu1 %v3554_v62 }
 0x2be   :  { %v4330_v37 = vmax.f32 %v1408_v19, 0.0  ;;  %v1409_v38 = vadd.f32 %v4235_v2, %v1407_v35  ;;  %2287 = vmatpush1.bf16.msra.mxu1 %v3552_v41  ;;  %v3622_v19 = vld [vmem:[#allocation5 + $0xf4] ss:$8 sps:$4 sm:$0xff]   ;;  %v3620_v35 = vld [vmem:[#allocation5 + $0xf0] ss:$8 sps:$4 sm:$0xff]  }
 0x2bf   :  { %2288 = vmatprep.subr.bf16.mxu1 %v3561_v54 }
 0x2c0   :  { %v1411_v42 = vmax.f32 %v1409_v38, 0.0  ;;  %v1430_v43 = vcombine.high %v4330_v37, %v4330_v37  ;;  %1412 = vst.msk [vmem:[#allocation4 + $0x3] sm:$0x1] %vm888_vm6, %v4330_v37  ;;  %v3025_v44 = vrot.slane %v4330_v37, 10  ;;  %v3026_v52 = vrot.slane %v4330_v37, 11 }
 0x2c1   :  { %v3024_v25 = vrot.slane %v4330_v37, 9 }
 0x2c2   :  { %v3029_v45 = vrot.slane %v1430_v43, 11  ;;  %v3027_v46 = vrot.slane %v1430_v43, 9  ;;  %1432 = vst.msk [vmem:[#allocation4 + $0xb] sm:$0x1] %vm888_vm6, %v1430_v43  ;;  %1449 = vst.msk [vmem:[#allocation4 + $0x13] sm:$0x1] %vm888_vm6, %v1411_v42  ;;  %v4340_v2 = vcombine.high %v1411_v42, %v1411_v42  ;;  %2289 = vmatpush1.bf16.msra.mxu1 %v3559_v53 }
 0x2c3   :  { %v3028_v47 = vrot.slane %v1430_v43, 10  ;;  %v3031_v16 = vrot.slane %v1411_v42, 10  ;;  %1423 = vst.msk [vmem:[#allocation4 + $0x7] sm:$0x1] %vm888_vm6, %v3025_v44  ;;  %2290 = vmatprep.subr.bf16.mxu1 %v3567_v59  ;;  %v3032_v6 = vrot.slane %v1411_v42, 11  ;;  %v3030_v7 = vrot.slane %v1411_v42, 9 }
 0x2c4   :  { %1445 = vrot.lane.b32.xlu1 %v3029_v45, %s3772_s12  ;;  %1435 = vrot.lane.b32.xlu0 %v3027_v46, %s3772_s12  ;;  %1469 = vst.msk [vmem:[#allocation4 + $0x1b] sm:$0x1] %vm888_vm6, %v4340_v2  ;;  %v3034_v49 = vrot.slane %v4340_v2, 10  ;;  %v3035_v5 = vrot.slane %v4340_v2, 11  ;;  %v3033_v27 = vrot.slane %v4340_v2, 9 }
 0x2c5   :  { %1442 = vst.msk [vmem:[#allocation4 + $0xf] sm:$0x1] %vm888_vm6, %v3028_v47  ;;  %1460 = vst.msk [vmem:[#allocation4 + $0x17] sm:$0x1] %vm888_vm6, %v3031_v16  ;;  %v3556_v16 = vld [vmem:[#allocation5 + $0x200] ss:$8 sps:$4 sm:$0xff]  }
 0x2c6   :  { %1479 = vst.msk [vmem:[#allocation4 + $0x1f] sm:$0x1] %vm888_vm6, %v3034_v49  ;;  %2291 = vmatpush1.bf16.msra.mxu1 %v3565_v50 }
 0x2c7   :  { %2292 = vmatprep.subr.bf16.mxu1 %v3573_v18 }
 0x2c8   :  { %941 = vrot.lane.b32.xlu1 %v2990_v55, %s3772_s12  ;;  %931 = vrot.lane.b32.xlu0 %v2988_v56, %s3772_s12  ;;  %v3564_v55 = vld [vmem:[#allocation5 + $0x214] ss:$8 sps:$4 sm:$0xff]   ;;  %v3562_v56 = vld [vmem:[#allocation5 + $0x210] ss:$8 sps:$4 sm:$0xff]  }
 0x2ca   :  { %2293 = vmatpush1.bf16.msra.mxu1 %v3571_v63 }
 0x2cb   :  { %2294 = vmatprep.subr.bf16.mxu1 %v3579_v57 }
 0x2cc   :  { %1115 = vrot.lane.b32.xlu1 %v3004_v60, %s3772_s12  ;;  %1105 = vrot.lane.b32.xlu0 %v3002_v61, %s3772_s12  ;;  %v3570_v60 = vld [vmem:[#allocation5 + $0x224] ss:$8 sps:$4 sm:$0xff]   ;;  %v3568_v61 = vld [vmem:[#allocation5 + $0x220] ss:$8 sps:$4 sm:$0xff]  }
 0x2ce   :  { %2295 = vmatpush1.bf16.msra.mxu1 %v3577_v3 }
 0x2cf   :  { %2296 = vmatprep.subr.bf16.mxu1 %v3586_v10  ;;  %v3580_v10 = vld [vmem:[#allocation5 + $0x240] ss:$8 sps:$4 sm:$0xff]  }
 0x2d0   :  { %1289 = vrot.lane.b32.xlu1 %v3018_v0, %s3772_s12  ;;  %1279 = vrot.lane.b32.xlu0 %v3016_v1, %s3772_s12  ;;  %v3576_v0 = vld [vmem:[#allocation5 + $0x234] ss:$8 sps:$4 sm:$0xff]   ;;  %v3574_v1 = vld [vmem:[#allocation5 + $0x230] ss:$8 sps:$4 sm:$0xff]  }
 0x2d2   :  { %2297 = vmatpush1.bf16.msra.mxu1 %v3584_v8 }
 0x2d3   :  { %2298 = vmatprep.subr.bf16.mxu1 %v3592_v14  ;;  %v3589_v14 = vld [vmem:[#allocation5 + $0x254] ss:$8 sps:$4 sm:$0xff]  }
 0x2d4   :  { %1463 = vrot.lane.b32.xlu1 %v3032_v6, %s3772_s12  ;;  %1453 = vrot.lane.b32.xlu0 %v3030_v7, %s3772_s12  ;;  %v3582_v6 = vld [vmem:[#allocation5 + $0x244] ss:$8 sps:$4 sm:$0xff]  }
 0x2d6   :  { %2299 = vmatpush1.bf16.msra.mxu1 %v3590_v12 }
 0x2d7   :  { %2300 = vmatprep.subr.bf16.mxu1 %v3598_v13  ;;  %v3595_v13 = vld [vmem:[#allocation5 + $0x264] ss:$8 sps:$4 sm:$0xff]  }
 0x2d8   :  { %904 = vrot.lane.b32.xlu1 %v2984_v58, %s3772_s12  ;;  %893 = vrot.lane.b32.xlu0 %v2982_v11, %s3772_s12 }
 0x2da   :  { %2301 = vmatpush1.bf16.msra.mxu1 %v3596_v21 }
 0x2db   :  { %2302 = vmatprep.subr.bf16.mxu1 %v3604_v28  ;;  %v3601_v28 = vld [vmem:[#allocation5 + $0x274] ss:$8 sps:$4 sm:$0xff]  }
 0x2dc   :  { %960 = vrot.lane.b32.xlu1 %v2993_v15, %s3772_s12  ;;  %950 = vrot.lane.b32.xlu0 %v2991_v17, %s3772_s12  ;;  %v3587_v15 = vld [vmem:[#allocation5 + $0x250] ss:$8 sps:$4 sm:$0xff]  }
 0x2de   :  { %2303 = vmatpush1.bf16.msra.mxu1 %v3602_v24 }
 0x2df   :  { %2304 = vmatprep.subr.bf16.mxu1 %v3610_v51  ;;  %v3607_v51 = vld [vmem:[#allocation5 + $0x284] ss:$8 sps:$4 sm:$0xff]  }
 0x2e0   :  { %1078 = vrot.lane.b32.xlu1 %v2998_v22, %s3772_s12  ;;  %1068 = vrot.lane.b32.xlu0 %v2996_v23, %s3772_s12  ;;  %v3593_v22 = vld [vmem:[#allocation5 + $0x260] ss:$8 sps:$4 sm:$0xff]  }
 0x2e2   :  { %2305 = vmatpush1.bf16.msra.mxu1 %v3608_v20 }
 0x2e3   :  { %2306 = vmatprep.subr.bf16.mxu1 %v3616_v4  ;;  %v3613_v4 = vld [vmem:[#allocation5 + $0x294] ss:$8 sps:$4 sm:$0xff]  }
 0x2e4   :  { %1134 = vrot.lane.b32.xlu1 %v3007_v26, %s3772_s12  ;;  %1124 = vrot.lane.b32.xlu0 %v3005_v29, %s3772_s12  ;;  %v3599_v26 = vld [vmem:[#allocation5 + $0x270] ss:$8 sps:$4 sm:$0xff]  }
 0x2e6   :  { %2307 = vmatpush1.bf16.msra.mxu1 %v3614_v32 }
 0x2e7   :  { %2308 = vmatprep.subr.bf16.mxu1 %v3622_v19 }
 0x2e8   :  { %1252 = vrot.lane.b32.xlu1 %v3012_v30, %s3772_s12  ;;  %1242 = vrot.lane.b32.xlu0 %v3010_v31, %s3772_s12  ;;  %v3605_v30 = vld [vmem:[#allocation5 + $0x280] ss:$8 sps:$4 sm:$0xff]  }
 0x2ea   :  { %2309 = vmatpush1.bf16.msra.mxu1 %v3620_v35  ;;  %v3619_v35 = vld [vmem:[#allocation5 + $0x2a4] ss:$8 sps:$4 sm:$0xff]  }
 0x2ec   :  { %1308 = vrot.lane.b32.xlu1 %v3021_v33, %s3772_s12  ;;  %1298 = vrot.lane.b32.xlu0 %v3019_v34, %s3772_s12  ;;  %v3611_v33 = vld [vmem:[#allocation5 + $0x290] ss:$8 sps:$4 sm:$0xff]  }
 0x2f0   :  { %1426 = vrot.lane.b32.xlu1 %v3026_v52, %s3772_s12  ;;  %1416 = vrot.lane.b32.xlu0 %v3024_v25, %s3772_s12  ;;  %v3617_v52 = vld [vmem:[#allocation5 + $0x2a0] ss:$8 sps:$4 sm:$0xff]  }
 0x2f4   :  { %1482 = vrot.lane.b32.xlu1 %v3035_v5, %s3772_s12  ;;  %1472 = vrot.lane.b32.xlu0 %v3033_v27, %s3772_s12  ;;  %v3626_v5 = vld [vmem:[#allocation5 + $0x2b4] ss:$8 sps:$4 sm:$0xff]  }
 0x30e   :  { %v924_v36 = vpop.permute.xlu1 %923  ;;  %v914_v38 = vpop.permute.xlu0 %913 }
 0x30f   :  { %926 = vst.msk [vmem:[#allocation4 + $0xc] sm:$0x1] %vm896_vm7, %v924_v36  ;;  %916 = vst.msk [vmem:[#allocation4 + $0x8] sm:$0x1] %vm896_vm7, %v914_v38  ;;  %v3624_v38 = vld [vmem:[#allocation5 + $0x2b0] ss:$8 sps:$4 sm:$0xff]  }
 0x322   :  { %v1098_v37 = vpop.permute.xlu1 %1097  ;;  %v1088_v39 = vpop.permute.xlu0 %1087 }
 0x323   :  { %1100 = vst.msk [vmem:[#allocation4 + $0xd] sm:$0x1] %vm896_vm7, %v1098_v37  ;;  %1090 = vst.msk [vmem:[#allocation4 + $0x9] sm:$0x1] %vm896_vm7, %v1088_v39  ;;  %v3629_v39 = vld [vmem:[#allocation5 + $0x2c4] ss:$8 sps:$4 sm:$0xff]  }
 0x326   :  { %v1272_v40 = vpop.permute.xlu1 %1271  ;;  %v1262_v41 = vpop.permute.xlu0 %1261 }
 0x327   :  { %1274 = vst.msk [vmem:[#allocation4 + $0xe] sm:$0x1] %vm896_vm7, %v1272_v40  ;;  %1264 = vst.msk [vmem:[#allocation4 + $0xa] sm:$0x1] %vm896_vm7, %v1262_v41  ;;  %v3627_v40 = vld [vmem:[#allocation5 + $0x2c0] ss:$8 sps:$4 sm:$0xff]  }
 0x328   :  { %v3632_v41 = vld [vmem:[#allocation5 + $0x2d4] ss:$8 sps:$4 sm:$0xff]  }
 0x336   :  { %v1446_v42 = vpop.permute.xlu1 %1445  ;;  %v1436_v43 = vpop.permute.xlu0 %1435 }
 0x337   :  { %1448 = vst.msk [vmem:[#allocation4 + $0xf] sm:$0x1] %vm896_vm7, %v1446_v42  ;;  %1438 = vst.msk [vmem:[#allocation4 + $0xb] sm:$0x1] %vm896_vm7, %v1436_v43  ;;  %v3630_v42 = vld [vmem:[#allocation5 + $0x2d0] ss:$8 sps:$4 sm:$0xff]  }
 0x338   :  { %v3635_v43 = vld [vmem:[#allocation5 + $0x2e4] ss:$8 sps:$4 sm:$0xff]  }
 0x33a   :  { %v942_v62 = vpop.permute.xlu1 %941  ;;  %v932_v44 = vpop.permute.xlu0 %931 }
 0x33b   :  { %944 = vst.msk [vmem:[#allocation4 + $0x14] sm:$0x1] %vm896_vm7, %v942_v62  ;;  %934 = vst.msk [vmem:[#allocation4 + $0x10] sm:$0x1] %vm896_vm7, %v932_v44  ;;  %v3633_v62 = vld [vmem:[#allocation5 + $0x2e0] ss:$8 sps:$4 sm:$0xff]  }
 0x33c   :  { %v3638_v44 = vld [vmem:[#allocation5 + $0x2f4] ss:$8 sps:$4 sm:$0xff]  }
 0x33e   :  { %v1116_v45 = vpop.permute.xlu1 %1115  ;;  %v1106_v46 = vpop.permute.xlu0 %1105  ;;  %v1487_v2 = vld [vmem:[#allocation4 + $0x8] sm:$0xff] }
 0x33f   :  { %1118 = vst.msk [vmem:[#allocation4 + $0x15] sm:$0x1] %vm896_vm7, %v1116_v45  ;;  %1108 = vst.msk [vmem:[#allocation4 + $0x11] sm:$0x1] %vm896_vm7, %v1106_v46  ;;  %v1495_v47 = vcombine.high %v1487_v2, %v1487_v2  ;;  %v1504_v49 = vpack.c.bf16 %v1487_v2, %v1487_v2  ;;  %v3636_v46 = vld [vmem:[#allocation5 + $0x2f0] ss:$8 sps:$4 sm:$0xff]  }
 0x340   :  { %v3641_v2 = vld [vmem:[#allocation5 + $0x304] ss:$8 sps:$4 sm:$0xff]  }
 0x341   :  { %v1505_v48 = vpack.c.bf16 %v1495_v47, %v1495_v47 }
 0x342   :  { %v1290_v53 = vpop.permute.xlu1 %1289  ;;  %v1280_v54 = vpop.permute.xlu0 %1279 }
 0x343   :  { %1292 = vst.msk [vmem:[#allocation4 + $0x16] sm:$0x1] %vm896_vm7, %v1290_v53  ;;  %1282 = vst.msk [vmem:[#allocation4 + $0x12] sm:$0x1] %vm896_vm7, %v1280_v54  ;;  %2351 = vmatprep.mubr.bf16.mxu0 %v1505_v48  ;;  %v3639_v48 = vld [vmem:[#allocation5 + $0x300] ss:$8 sps:$4 sm:$0xff]  }
 0x344   :  { %2352 = vmatmul.mubr.bf16.vlgmr.msra.gmra.mrb[12].mxu0 %v1504_v49  ;;  %v3645_v53 = vld [vmem:[#allocation5 + $0x314] ss:$8 sps:$4 sm:$0xff]   ;;  %v3643_v49 = vld [vmem:[#allocation5 + $0x310] ss:$8 sps:$4 sm:$0xff]  }
 0x345   :  { %2361 = vmatpush1.bf16.msra.mxu0 %v3556_v16 }
 0x346   :  { %v1464_v50 = vpop.permute.xlu1 %1463  ;;  %v1454_v59 = vpop.permute.xlu0 %1453  ;;  %2362 = vmatprep.subr.bf16.mxu0 %v3564_v55  ;;  %v3648_v55 = vld [vmem:[#allocation5 + $0x324] ss:$8 sps:$4 sm:$0xff]  }
 0x347   :  { %1466 = vst.msk [vmem:[#allocation4 + $0x17] sm:$0x1] %vm896_vm7, %v1464_v50  ;;  %1456 = vst.msk [vmem:[#allocation4 + $0x13] sm:$0x1] %vm896_vm7, %v1454_v59  ;;  %v3651_v50 = vld [vmem:[#allocation5 + $0x334] ss:$8 sps:$4 sm:$0xff]  }
 0x348   :  { %v3649_v59 = vld [vmem:[#allocation5 + $0x330] ss:$8 sps:$4 sm:$0xff]  }
 0x349   :  { %2363 = vmatpush1.bf16.msra.mxu0 %v3562_v56  ;;  %v3646_v56 = vld [vmem:[#allocation5 + $0x320] ss:$8 sps:$4 sm:$0xff]  }
 0x34a   :  { %v905_v63 = vpop.permute.xlu1 %904  ;;  %v894_v18 = vpop.permute.xlu0 %893  ;;  %2364 = vmatprep.subr.bf16.mxu0 %v3570_v60  ;;  %v3654_v60 = vld [vmem:[#allocation5 + $0x344] ss:$8 sps:$4 sm:$0xff]  }
 0x34b   :  { %907 = vst.msk [vmem:[#allocation4 + $0x4] sm:$0x1] %vm896_vm7, %v905_v63  ;;  %897 = vst.msk [vmem:[#allocation4] sm:$0x1] %vm896_vm7, %v894_v18  ;;  %v3657_v63 = vld [vmem:[#allocation5 + $0x354] ss:$8 sps:$4 sm:$0xff]  }
 0x34c   :  { %v3655_v18 = vld [vmem:[#allocation5 + $0x350] ss:$8 sps:$4 sm:$0xff]  }
 0x34d   :  { %2365 = vmatpush1.bf16.msra.mxu0 %v3568_v61  ;;  %v3652_v61 = vld [vmem:[#allocation5 + $0x340] ss:$8 sps:$4 sm:$0xff]  }
 0x34e   :  { %v961_v3 = vpop.permute.xlu1 %960  ;;  %v951_v57 = vpop.permute.xlu0 %950  ;;  %2366 = vmatprep.subr.bf16.mxu0 %v3576_v0  ;;  %v4415_v7 = vld [vmem:[#allocation4 + $0x10] sm:$0xff]  ;;  %v3660_v0 = vld [vmem:[#allocation5 + $0x364] ss:$8 sps:$4 sm:$0xff]  }
 0x34f   :  { %963 = vst.msk [vmem:[#allocation4 + $0x1c] sm:$0x1] %vm896_vm7, %v961_v3  ;;  %953 = vst.msk [vmem:[#allocation4 + $0x18] sm:$0x1] %vm896_vm7, %v951_v57  ;;  %v1496_v8 = vcombine.high %v4415_v7, %v4415_v7  ;;  %v1506_v16 = vpack.c.bf16 %v4415_v7, %v4415_v7  ;;  %v3663_v3 = vld [vmem:[#allocation5 + $0x374] ss:$8 sps:$4 sm:$0xff]  }
 0x350   :  { %v3661_v57 = vld [vmem:[#allocation5 + $0x370] ss:$8 sps:$4 sm:$0xff]   ;;  %v3664_v7 = vld [vmem:[#allocation5 + $0x380] ss:$8 sps:$4 sm:$0xff]  }
 0x351   :  { %2367 = vmatpush1.bf16.msra.mxu0 %v3574_v1  ;;  %v1507_v58 = vpack.c.bf16 %v1496_v8, %v1496_v8  ;;  %v3658_v1 = vld [vmem:[#allocation5 + $0x360] ss:$8 sps:$4 sm:$0xff]   ;;  %v3669_v8 = vld [vmem:[#allocation5 + $0x394] ss:$8 sps:$4 sm:$0xff]  }
 0x352   :  { %v1079_v11 = vpop.permute.xlu1 %1078  ;;  %v1069_v12 = vpop.permute.xlu0 %1068  ;;  %2368 = vmatprep.subr.bf16.mxu0 %v3582_v6  ;;  %v3666_v6 = vld [vmem:[#allocation5 + $0x384] ss:$8 sps:$4 sm:$0xff]  }
 0x353   :  { %1081 = vst.msk [vmem:[#allocation4 + $0x5] sm:$0x1] %vm896_vm7, %v1079_v11  ;;  %1071 = vst.msk [vmem:[#allocation4 + $0x1] sm:$0x1] %vm896_vm7, %v1069_v12  ;;  %2392 = vmatprep.mubr.bf16.mxu0 %v1507_v58  ;;  %v3672_v58 = vld [vmem:[#allocation5 + $0x3a4] ss:$8 sps:$4 sm:$0xff]  }
 0x354   :  { %v3670_v11 = vld [vmem:[#allocation5 + $0x3a0] ss:$8 sps:$4 sm:$0xff]   ;;  %v3675_v12 = vld [vmem:[#allocation5 + $0x3b4] ss:$8 sps:$4 sm:$0xff]  }
 0x355   :  { %2369 = vmatpush1.bf16.msra.mxu0 %v3580_v10  ;;  %v3667_v10 = vld [vmem:[#allocation5 + $0x390] ss:$8 sps:$4 sm:$0xff]  }
 0x356   :  { %v1135_v17 = vpop.permute.xlu1 %1134  ;;  %v1125_v21 = vpop.permute.xlu0 %1124  ;;  %2370 = vmatprep.subr.bf16.mxu0 %v3589_v14  ;;  %v3673_v14 = vld [vmem:[#allocation5 + $0x3b0] ss:$8 sps:$4 sm:$0xff]  }
 0x357   :  { %1137 = vst.msk [vmem:[#allocation4 + $0x1d] sm:$0x1] %vm896_vm7, %v1135_v17  ;;  %1127 = vst.msk [vmem:[#allocation4 + $0x19] sm:$0x1] %vm896_vm7, %v1125_v21  ;;  %v3676_v17 = vld [vmem:[#allocation5 + $0x3c0] ss:$8 sps:$4 sm:$0xff]  }
 0x358   :  { %v3681_v21 = vld [vmem:[#allocation5 + $0x3d4] ss:$8 sps:$4 sm:$0xff]  }
 0x359   :  { %2371 = vmatpush1.bf16.msra.mxu0 %v3587_v15  ;;  %v3678_v15 = vld [vmem:[#allocation5 + $0x3c4] ss:$8 sps:$4 sm:$0xff]  }
 0x35a   :  { %v1253_v23 = vpop.permute.xlu1 %1252  ;;  %v1243_v24 = vpop.permute.xlu0 %1242  ;;  %2372 = vmatprep.subr.bf16.mxu0 %v3595_v13  ;;  %v3679_v13 = vld [vmem:[#allocation5 + $0x3d0] ss:$8 sps:$4 sm:$0xff]  }
 0x35b   :  { %1255 = vst.msk [vmem:[#allocation4 + $0x6] sm:$0x1] %vm896_vm7, %v1253_v23  ;;  %1245 = vst.msk [vmem:[#allocation4 + $0x2] sm:$0x1] %vm896_vm7, %v1243_v24  ;;  %v3682_v23 = vld [vmem:[#allocation5 + $0x3e0] ss:$8 sps:$4 sm:$0xff]  }
 0x35c   :  { %v3687_v24 = vld [vmem:[#allocation5 + $0x3f4] ss:$8 sps:$4 sm:$0xff]  }
 0x35d   :  { %2373 = vmatpush1.bf16.msra.mxu0 %v3593_v22  ;;  %v3684_v22 = vld [vmem:[#allocation5 + $0x3e4] ss:$8 sps:$4 sm:$0xff]  }
 0x35e   :  { %v1309_v29 = vpop.permute.xlu1 %1308  ;;  %v1299_v20 = vpop.permute.xlu0 %1298  ;;  %2374 = vmatprep.subr.bf16.mxu0 %v3601_v28  ;;  %v3685_v28 = vld [vmem:[#allocation5 + $0x3f0] ss:$8 sps:$4 sm:$0xff]  }
 0x35f   :  { %1311 = vst.msk [vmem:[#allocation4 + $0x1e] sm:$0x1] %vm896_vm7, %v1309_v29  ;;  %1301 = vst.msk [vmem:[#allocation4 + $0x1a] sm:$0x1] %vm896_vm7, %v1299_v20  ;;  %v3688_v29 = vld [vmem:[%s4607_s16 + $0x40] sm:$0xff]  }
 0x360   :  { %v3689_v20 = vld [vmem:[%s4607_s16] sm:$0xff]   ;;  %3243 = vmatprep.subr.bf16.mxu1 %v3688_v29 }
 0x361   :  { %2375 = vmatpush1.bf16.msra.mxu0 %v3599_v26 }
 0x362   :  { %v1427_v31 = vpop.permute.xlu1 %1426  ;;  %v1417_v32 = vpop.permute.xlu0 %1416  ;;  %2376 = vmatprep.subr.bf16.mxu0 %v3607_v51  ;;  %v3690_v51 = vld [vmem:[%s4607_s16 + $0x48] sm:$0xff]  }
 0x363   :  { %1429 = vst.msk [vmem:[#allocation4 + $0x7] sm:$0x1] %vm896_vm7, %v1427_v31  ;;  %1419 = vst.msk [vmem:[#allocation4 + $0x3] sm:$0x1] %vm896_vm7, %v1417_v32  ;;  %v3692_v31 = vld [vmem:[%s4607_s16 + $0x50] sm:$0xff]  }
 0x364   :  { %v3693_v32 = vld [vmem:[%s4607_s16 + $0x10] sm:$0xff]  }
 0x365   :  { %2377 = vmatpush1.bf16.msra.mxu0 %v3605_v30  ;;  %v3691_v30 = vld [vmem:[%s4607_s16 + $0x8] sm:$0xff]  }
 0x366   :  { %v1483_v34 = vpop.permute.xlu1 %1482  ;;  %v1473_v19 = vpop.permute.xlu0 %1472  ;;  %2378 = vmatprep.subr.bf16.mxu0 %v3613_v4  ;;  %v3694_v4 = vld [vmem:[%s4607_s16 + $0x58] sm:$0xff]  }
 0x367   :  { %1485 = vst.msk [vmem:[#allocation4 + $0x1f] sm:$0x1] %vm896_vm7, %v1483_v34  ;;  %1475 = vst.msk [vmem:[#allocation4 + $0x1b] sm:$0x1] %vm896_vm7, %v1473_v19  ;;  %v3696_v34 = vld [vmem:[%s4607_s16 + $0x60] sm:$0xff]  }
 0x368   :  { %v3697_v19 = vld [vmem:[%s4607_s16 + $0x20] sm:$0xff]  }
 0x369   :  { %2379 = vmatpush1.bf16.msra.mxu0 %v3611_v33  ;;  %v3695_v33 = vld [vmem:[%s4607_s16 + $0x18] sm:$0xff]  }
 0x36a   :  { %2380 = vmatprep.subr.bf16.mxu0 %v3619_v35  ;;  %v1486_v25 = vld [vmem:[#allocation4] sm:$0xff] }
 0x36b   :  { %v1494_v27 = vcombine.high %v1486_v25, %v1486_v25  ;;  %v1502_v37 = vpack.c.bf16 %v1486_v25, %v1486_v25  ;;  %v3698_v35 = vld [vmem:[%s4607_s16 + $0x68] sm:$0xff]   ;;  %v3700_v25 = vld [vmem:[%s4607_s16 + $0x70] sm:$0xff]  }
 0x36d   :  { %2381 = vmatpush1.bf16.msra.mxu0 %v3617_v52  ;;  %v1503_v36 = vpack.c.bf16 %v1494_v27, %v1494_v27  ;;  %v3699_v52 = vld [vmem:[%s4607_s16 + $0x28] sm:$0xff]   ;;  %v3702_v27 = vld [vmem:[%s4607_s16 + $0x78] sm:$0xff]  }
 0x36e   :  { %2382 = vmatprep.subr.bf16.mxu0 %v3626_v5  ;;  %v4433_v45 = vld [vmem:[#allocation4 + $0x18] sm:$0xff]  ;;  %v3701_v5 = vld [vmem:[%s4607_s16 + $0x30] sm:$0xff]  }
 0x36f   :  { %2310 = vmatprep.mubr.bf16.mxu1 %v1503_v36  ;;  %v1497_v47 = vcombine.high %v4433_v45, %v4433_v45  ;;  %v1508_v26 = vpack.c.bf16 %v4433_v45, %v4433_v45  ;;  %v3703_v36 = vld [vmem:[%s4607_s16 + $0x38] sm:$0xff]   ;;  %v2456_v45 = vld [vmem:[%s4606_s15] sm:$0x3] }
 0x370   :  { %2311 = vmatmul.mubr.bf16.vlgmr.msra.gmra.mrb[20].mxu1 %v1502_v37 }
 0x371   :  { %2383 = vmatpush1.bf16.msra.mxu0 %v3624_v38  ;;  %v1509_v54 = vpack.c.bf16 %v1497_v47, %v1497_v47  ;;  %3244 = vmatpush3.bf16.msra.mxu1 %v3689_v20  ;;  %v3713_v20 = vld [vmem:[%s4613_s22 + $0x8] sm:$0xff]  }
 0x372   :  { %2384 = vmatprep.subr.bf16.mxu0 %v3629_v39  ;;  %3245 = vmatprep.subr.bf16.mxu1 %v3690_v51  ;;  %v3714_v51 = vld [vmem:[%s4613_s22 + $0x10] sm:$0xff]  }
 0x375   :  { %2385 = vmatpush1.bf16.msra.mxu0 %v3627_v40  ;;  %3246 = vmatpush3.bf16.msra.mxu1 %v3691_v30  ;;  %v3715_v30 = vld [vmem:[%s4613_s22 + $0x18] sm:$0xff]  }
 0x376   :  { %2386 = vmatprep.subr.bf16.mxu0 %v3632_v41  ;;  %3247 = vmatprep.subr.bf16.mxu1 %v3692_v31  ;;  %v2444_v41 = vlaneseq  ;;  %v3190_v31 = vld [vmem:[%s4611_s20] ss:$0 sm:$0xff] }
 0x379   :  { %2387 = vmatpush1.bf16.msra.mxu0 %v3630_v42  ;;  %3248 = vmatpush3.bf16.msra.mxu1 %v3693_v32  ;;  %v2445_v42 = vshrl.u32 %v2444_v41, 7 }
 0x37a   :  { %2388 = vmatprep.subr.bf16.mxu0 %v3635_v43  ;;  %3249 = vmatprep.subr.bf16.mxu1 %v3694_v4  ;;  %v3191_v4 = vld [vmem:[%s4612_s21] ss:$0 sm:$0xff] }
 0x37b   :  { %v2446_v43 = vsub.s32 0, %v2445_v42 }
 0x37d   :  { %2389 = vmatpush1.bf16.msra.mxu0 %v3633_v62  ;;  %3250 = vmatpush3.bf16.msra.mxu1 %v3695_v33  ;;  %v2442_v62 = vld [vmem:[%s4605_s14] sm:$0x3] }
 0x37e   :  { %2390 = vmatprep.subr.bf16.mxu0 %v3638_v44  ;;  %3251 = vmatprep.subr.bf16.mxu1 %v3696_v34  ;;  %v2450_v44 = vsub.s32 1, %v2445_v42 }
 0x380   :  { %v2451_v47 = vrot.slane %v2442_v62, %v2450_v44 }
 0x381   :  { %2391 = vmatpush1.bf16.msra.mxu0 %v3636_v46  ;;  %3252 = vmatpush3.bf16.msra.mxu1 %v3697_v19  ;;  %v2447_v46 = vrot.slane %v2442_v62, %v2446_v43 }
 0x382   :  { %2401 = vmatprep.subr.bf16.mxu0 %v3641_v2  ;;  %3253 = vmatprep.subr.bf16.mxu1 %v3698_v35 }
 0x384   :  { %2393 = vmatmul.mubr.bf16.vlgmr.msra.gmra.mrb[12].mxu0 %v1506_v16  ;;  %v2461_v16 = vrot.slane %v2456_v45, %v2446_v43 }
 0x385   :  { %2402 = vmatpush1.bf16.msra.mxu0 %v3639_v48  ;;  %2433 = vmatprep.mubr.bf16.mxu0 %v1509_v54 }
 0x386   :  { %2403 = vmatprep.subr.bf16.mxu0 %v3645_v53  ;;  %3254 = vmatpush3.bf16.msra.mxu1 %v3699_v52 }
 0x387   :  { %3255 = vmatprep.subr.bf16.mxu1 %v3700_v25 }
 0x389   :  { %2404 = vmatpush1.bf16.msra.mxu0 %v3643_v49  ;;  %v2465_v49 = vrot.slane %v2456_v45, %v2450_v44  ;;  %v3199_v45 = vld [vmem:[%s4617_s26] ss:$0 sm:$0xff] }
 0x38a   :  { %2405 = vmatprep.subr.bf16.mxu0 %v3648_v55  ;;  %3256 = vmatpush3.bf16.msra.mxu1 %v3701_v5 }
 0x38b   :  { %3257 = vmatprep.subr.bf16.mxu1 %v3702_v27  ;;  %v3716_v27 = vld [vmem:[%s4616_s25] sm:$0xff]  }
 0x38d   :  { %2406 = vmatpush1.bf16.msra.mxu0 %v3646_v56 }
 0x38e   :  { %2407 = vmatprep.subr.bf16.mxu0 %v3651_v50  ;;  %3258 = vmatpush3.bf16.msra.mxu1 %v3703_v36  ;;  %v3717_v36 = vld [vmem:[%s4616_s25 + $0x8] sm:$0xff]  }
 0x38f   :  { %3394 = vmatprep.subr.bf16.mxu1 %v3770_v9 }
 0x391   :  { %2408 = vmatpush1.bf16.msra.mxu0 %v3649_v59 }
 0x392   :  { %2409 = vmatprep.subr.bf16.mxu0 %v3654_v60 }
 0x395   :  { %2410 = vmatpush1.bf16.msra.mxu0 %v3652_v61 }
 0x396   :  { %2411 = vmatprep.subr.bf16.mxu0 %v3657_v63 }
 0x399   :  { %2412 = vmatpush1.bf16.msra.mxu0 %v3655_v18 }
 0x39a   :  { %2413 = vmatprep.subr.bf16.mxu0 %v3660_v0 }
 0x39d   :  { %2414 = vmatpush1.bf16.msra.mxu0 %v3658_v1  ;;  %v3704_v1 = vld [vmem:[%s4610_s19] sm:$0xff]  }
 0x39e   :  { %2415 = vmatprep.subr.bf16.mxu0 %v3663_v3 }
 0x3a1   :  { %2416 = vmatpush1.bf16.msra.mxu0 %v3661_v57  ;;  %v3705_v57 = vld [vmem:[%s4610_s19 + $0x8] sm:$0xff]  }
 0x3a2   :  { %2417 = vmatprep.subr.bf16.mxu0 %v3666_v6  ;;  %v3706_v6 = vld [vmem:[%s4610_s19 + $0x10] sm:$0xff]  }
 0x3a5   :  { %2418 = vmatpush1.bf16.msra.mxu0 %v3664_v7  ;;  %v3707_v7 = vld [vmem:[%s4610_s19 + $0x18] sm:$0xff]  }
 0x3a6   :  { %2419 = vmatprep.subr.bf16.mxu0 %v3669_v8  ;;  %v3708_v8 = vld [vmem:[%s4610_s19 + $0x20] sm:$0xff]  }
 0x3a9   :  { %2420 = vmatpush1.bf16.msra.mxu0 %v3667_v10  ;;  %v3709_v10 = vld [vmem:[%s4610_s19 + $0x28] sm:$0xff]  }
 0x3aa   :  { %2421 = vmatprep.subr.bf16.mxu0 %v3672_v58  ;;  %v3710_v58 = vld [vmem:[%s4610_s19 + $0x30] sm:$0xff]  }
 0x3ad   :  { %2422 = vmatpush1.bf16.msra.mxu0 %v3670_v11  ;;  %v3711_v11 = vld [vmem:[%s4610_s19 + $0x38] sm:$0xff]  }
 0x3ae   :  { %2423 = vmatprep.subr.bf16.mxu0 %v3675_v12 }
 0x3b1   :  { %2424 = vmatpush1.bf16.msra.mxu0 %v3673_v14 }
 0x3b2   :  { %2425 = vmatprep.subr.bf16.mxu0 %v3678_v15  ;;  %v3180_v15 = vld [vmem:[%s4608_s17] ss:$0 sm:$0xff] }
 0x3b5   :  { %2426 = vmatpush1.bf16.msra.mxu0 %v3676_v17 }
 0x3b6   :  { %2427 = vmatprep.subr.bf16.mxu0 %v3681_v21 }
 0x3b9   :  { %2428 = vmatpush1.bf16.msra.mxu0 %v3679_v13  ;;  %v3181_v13 = vld [vmem:[%s4609_s18] ss:$0 sm:$0xff] }
 0x3ba   :  { %2429 = vmatprep.subr.bf16.mxu0 %v3684_v22 }
 0x3bd   :  { %2430 = vmatpush1.bf16.msra.mxu0 %v3682_v23 }
 0x3be   :  { %2431 = vmatprep.subr.bf16.mxu0 %v3687_v24 }
 0x3c1   :  { %2432 = vmatpush1.bf16.msra.mxu0 %v3685_v28 }
 0x3c4   :  { %2434 = vmatmul.mubr.bf16.vlgmr.msra.gmra.mrb[12].mxu0 %v1508_v26  ;;  %v3712_v26 = vld [vmem:[%s4613_s22] sm:$0xff]  }
 0x443   :  { %v2312_v38 = vpop.f32.mrb[20].mxu1 }
 0x444   :  { %v2314_v37 = vpop.f32.mrb[21].mxu1 }
 0x445   :  { %v2316_v39 = vpop.f32.mrb[22].mxu1 }
 0x446   :  { %v2317_v40 = vpop.f32.mrb[23].mxu1  ;;  %v3198_v39 = vld [vmem:[%s4615_s24] ss:$0 sm:$0xff] }
 0x497   :  { %v2435_v2 = vpop.f32.mrb[12].mxu0 }
 0x498   :  { %v3434_v48 = vadd.f32 %v2435_v2, %v2312_v38  ;;  %v2437_v53 = vpop.f32.mrb[13].mxu0  ;;  %v3197_v38 = vld [vmem:[%s4614_s23] ss:$0 sm:$0xff]  ;;  %s2949_s23 = sshll.u32 %s3773_s4, 4  ;;  %s2950_s23 = int_to_ptr.vmem [resolvable:$true] %s2949_s23 }
 0x499   :  { %v3435_v54 = vadd.f32 %v2437_v53, %v2314_v37  ;;  %v2439_v55 = vpop.f32.mrb[14].mxu0  ;;  %s3740_s24 = scalar_lea.vmem %s2950_s23, 64  ;;  %p3745_p9 = scmp.lt.s32.totalorder %s2950_s23, %s2950_s23 }
 0x49a   :  { %v2454_v56 = vmul.f32 %v3434_v48, %v2447_v46  ;;  %v2440_v50 = vpop.f32.mrb[15].mxu0  ;;  %p3741_p8 = scmp.ne.s32.totalorder %s2950_s23, %s3740_s24  ;;  %p3746_p10 = scmp.lt.s32.totalorder %s3740_s24, %s3740_s24 }
 0x49b   :  { %v2455_v59 = vmul.f32 %v3435_v54, %v2451_v47 }
 0x49c   :  { %v2468_v60 = vadd.f32 %v2461_v16, %v2454_v56  ;;  %p3747_p11 = por %p3746_p10, %p3745_p9 }
 0x49d   :  { %v2469_v61 = vadd.f32 %v2465_v49, %v2455_v59 }
 0x49e   :  { %v2470_v63 = vmax.f32 %v2468_v60, 0.0  ;;  %p3748_p12 = pnand %p3747_p11, %p3741_p8 }
 0x49f   :  { %v2471_v18 = vmax.f32 %v2469_v61, 0.0 }
 0x4a0   :  { %v2472_v3 = vpack.c.bf16 %v2470_v63, %v2470_v63 }
 0x4a1   :  { %v2473_v0 = vpack.c.bf16 %v2471_v18, %v2471_v18 }
 0x4a3   :  { %2634 = vmatprep.mubr.bf16.mxu1 %v2473_v0 }
 0x4a4   :  { %2635 = vmatmul.mubr.bf16.vlgmr.msra.gmra.mrb[24].mxu1 %v2472_v3 }
 0x4a5   :  { %3395 = vmatpush3.bf16.msra.mxu1 %v3704_v1  ;;  %3410 = vmatprep.mubr.msk.bf16.mxu1 %vm3771_vm1, %v3770_v9 }
 0x4a6   :  { %3396 = vmatprep.subr.bf16.mxu1 %v3770_v9 }
 0x4a9   :  { %3397 = vmatpush3.bf16.msra.mxu1 %v3705_v57 }
 0x4aa   :  { %3398 = vmatprep.subr.bf16.mxu1 %v3770_v9 }
 0x4ad   :  { %3399 = vmatpush3.bf16.msra.mxu1 %v3706_v6 }
 0x4ae   :  { %3400 = vmatprep.subr.bf16.mxu1 %v3770_v9 }
 0x4b1   :  { %3401 = vmatpush3.bf16.msra.mxu1 %v3707_v7 }
 0x4b2   :  { %3402 = vmatprep.subr.bf16.mxu1 %v3770_v9 }
 0x4b5   :  { %3403 = vmatpush3.bf16.msra.mxu1 %v3708_v8 }
 0x4b6   :  { %3404 = vmatprep.subr.bf16.mxu1 %v3770_v9 }
 0x4b9   :  { %3405 = vmatpush3.bf16.msra.mxu1 %v3709_v10 }
 0x4ba   :  { %3406 = vmatprep.subr.bf16.mxu1 %v3770_v9 }
 0x4bd   :  { %3407 = vmatpush3.bf16.msra.mxu1 %v3710_v58 }
 0x4be   :  { %3408 = vmatprep.subr.bf16.mxu1 %v3770_v9 }
 0x4c1   :  { %3409 = vmatpush3.bf16.msra.mxu1 %v3711_v11 }
 0x4c2   :  { %3414 = vmatprep.subr.bf16.mxu1 %v3770_v9 }
 0x577   :  { %v3259_v12 = vpop.f32.mrb[24].mxu1 }
 0x578   :  { %v3260_v14 = vpop.f32.mrb[25].mxu1 }
 0x579   :  { %v3261_v17 = vadd.f32 %v3260_v14, %v3259_v12  ;;  %v3262_v21 = vpop.f32.mrb[26].mxu1 }
 0x57a   :  { %v3263_v22 = vpop.f32.mrb[27].mxu1 }
 0x57b   :  { %v2649_v23 = vmul.f32 %v3261_v17, %v3180_v15 }
 0x57d   :  { %v2657_v24 = vadd.f32 %v3181_v13, %v2649_v23 }
 0x57f   :  { %v2658_v28 = vmax.f32 %v2657_v24, 0.0 }
 0x581   :  { %v2659_v29 = vpack.c.bf16 %v2658_v28, %v2658_v28 }
 0x583   :  { %3411 = vmatmul.mubr.bf16.vlgmr.msra.gmra.mrb[28].mxu1 %v2659_v29 }
 0x584   :  { %3415 = vmatpush3.bf16.msra.mxu1 %v3712_v26  ;;  %3422 = vmatprep.mubr.msk.bf16.mxu1 %vm3771_vm1, %v3770_v9 }
 0x585   :  { %3416 = vmatprep.subr.bf16.mxu1 %v3770_v9 }
 0x588   :  { %3417 = vmatpush3.bf16.msra.mxu1 %v3713_v20 }
 0x589   :  { %3418 = vmatprep.subr.bf16.mxu1 %v3770_v9 }
 0x58c   :  { %3419 = vmatpush3.bf16.msra.mxu1 %v3714_v51 }
 0x58d   :  { %3420 = vmatprep.subr.bf16.mxu1 %v3770_v9 }
 0x590   :  { %3421 = vmatpush3.bf16.msra.mxu1 %v3715_v30 }
 0x591   :  { %3426 = vmatprep.subr.bf16.mxu1 %v3770_v9 }
 0x656   :  { %v2758_v32 = vpop.f32.mrb[28].mxu1 }
 0x657   :  { %v2771_v33 = vmul.f32 %v3190_v31, %v2758_v32  ;;  %v3412_v34 = vpop.f32.mrb[29].mxu1 }
 0x658   :  { %v2761_v19 = vpop.f32.mrb[30].mxu1 }
 0x659   :  { %v2779_v35 = vadd.f32 %v3191_v4, %v2771_v33  ;;  %v3413_v52 = vpop.f32.mrb[31].mxu1 }
 0x65b   :  { %v2780_v25 = vmax.f32 %v2779_v35, 0.0 }
 0x65d   :  { %v2781_v5 = vpack.c.bf16 %v2780_v25, %v2780_v25 }
 0x65f   :  { %3423 = vmatmul.mubr.msk.bf16.vlgmr.msra.gmra.mrb[32].mxu1 %vm2814_vm8, %v2781_v5 }
 0x660   :  { %3430 = vmatprep.mubr.msk.bf16.mxu1 %vm3771_vm1, %v3770_v9  ;;  %3427 = vmatpush3.bf16.msra.mxu1 %v3716_v27 }
 0x661   :  { %3428 = vmatprep.subr.bf16.mxu1 %v3770_v9 }
 0x664   :  { %3429 = vmatpush3.bf16.msra.mxu1 %v3717_v36 }
 0x732   :  { %v2852_v37 = vpop.f32.mrb[32].mxu1 }
 0x733   :  { %v2865_v40 = vmul.f32 %v3197_v38, %v2852_v37  ;;  %v3424_v41 = vpop.f32.mrb[33].mxu1 }
 0x734   :  { %v2855_v42 = vpop.f32.mrb[34].mxu1 }
 0x735   :  { %v2873_v43 = vadd.f32 %v3198_v39, %v2865_v40  ;;  %v3425_v62 = vpop.f32.mrb[35].mxu1 }
 0x737   :  { %v2874_v9 = vmax.f32 %v2873_v43, 0.0 }
 0x739   :  { %v2875_v44 = vpack.c.bf16 %v2874_v9, %v2874_v9 }
 0x73b   :  { %3431 = vmatmul.mubr.msk.bf16.vlgmr.msra.gmra.mrb[36].mxu1 %vm111_vm3, %v2875_v44 }
 0x80e   :  { %v2936_v46 = vpop.f32.mrb[36].mxu1 }
 0x80f   :  { %v2937_v2 = vadd.f32 %v3199_v45, %v2936_v46  ;;  %v3432_v47 = vpop.f32.mrb[37].mxu1 }
 0x810   :  { %v2939_v48 = vpop.f32.mrb[38].mxu1 }
 0x811   :  { %2942 = vst [vmem:[#allocation8] sm:$0xf] %v2937_v2  ;;  %v3433_v16 = vpop.f32.mrb[39].mxu1 }
 0x812   :  { %3751 = shalt.err (!%p3748_p12)
}
 0x813   :  { %s3752_s26 = scalar_lea.hbm %s4618_s27, 64 }
 0x814   :  { %p3753_p13 = scmp.ne.s32.totalorder %s4618_s27, %s3752_s26  ;;  %p3756_p0 = scmp.lt.u32.totalorder %s3752_s26, %s4618_s27 }
 0x816   :  { %p3758_p1 = pnand %p3756_p0, %p3753_p13 }
 0x818   :  { %3761 = shalt.err (!%p3758_p1)
}
 0x819   :  { %2952 = dma.vmem_to_hbm [thread:$0]  %s2950_s23, 64, %s4618_s27, [#allocation7]  }
 0x81a   :  { %3764 = dma.done.wait [#allocation7], 64  }
 0x81b   :  { %3765 = vsyncadd [#allocation7], 4294967232 }
 0x81c   :  { %2956 = vsyncpa [#allocation6], 1 }
 0x81d   :  { %2957 = vsyncpa [#allocation7], 1 }

</bundles_post_ra>
